<compile_context>
chip_gen: v5e
topology: v5e:2x2
jax: 0.10.0
libtpu: 0.0.40
codegen_flags: <defaults>
</compile_context>

<pallas_src>
import math

import jax
import jax.numpy as jnp
from jax.experimental import pallas as pl

# ----------------------- config (small synthetic shapes) --------------------
B = 4            # total batch: rows alternate key / case, so B must be even
S = 16           # sequence length
H = 32           # hidden size
NH = 4           # attention heads
DH = H // NH     # head dim
FF = 64          # FFN intermediate size
V = 64           # vocab size
SCALE = 1.0 / math.sqrt(DH)

# torch slices [:, 1:510] and [:, 1:-1]; with S=16 PyTorch clamps 510 -> S.
PRE_END = min(510, S)      # pre  = rows 1 .. PRE_END-1   (15 rows)
POST_END = S - 1           # post = rows 1 .. POST_END-1  (14 rows)
# The extract epilogue derives both sums from ONE full-width reduction
# (full_sum - row0 [- last row]); that identity needs these bounds.
assert PRE_END == S and POST_END == S - 1


# --------------------------- in-kernel helpers -------------------------------

def _ln(x, g, b, eps=1e-12):
    mu = jnp.mean(x, axis=-1, keepdims=True)
    var = jnp.mean(jnp.square(x - mu), axis=-1, keepdims=True)
    return (x - mu) * jax.lax.rsqrt(var + eps) * g + b


def _gelu_erf(x):
    # HF/PyTorch BERT 'gelu' is the exact erf form.  Mosaic has no guaranteed
    # erf lowering, so erf uses the Abramowitz–Stegun 7.1.26 rational
    # approximation (|err| < 1.5e-7, i.e. f32-exact) built only from
    # VPU/EUP-friendly ops (abs / exp / polynomial / select).
    z = x * (1.0 / math.sqrt(2.0))
    a = jnp.abs(z)
    t = 1.0 / (1.0 + 0.3275911 * a)
    poly = t * (0.254829592 + t * (-0.284496736 + t * (1.421413741
               + t * (-1.453152027 + t * 1.061405429))))
    erf_abs = 1.0 - poly * jnp.exp(-a * a)
    erf = jnp.where(z < 0.0, -erf_abs, erf_abs)
    return 0.5 * x * (1.0 + erf)


# Row indices of the packed small-vector input (shape [NUM_VEC, H]).
(_EMB_G, _EMB_B, _BO, _LN1_G, _LN1_B, _FB2, _LN2_G, _LN2_B, _BP) = range(9)
NUM_VEC = 9


# ------------- single fused kernel: encoder + pooler + extraction -----------

def _fused_kernel(x_ref, m_ref, wqkv_ref, bqkv_ref, wo_ref, w1_ref, fb1_ref,
                  w2_ref, wp_ref, vec_ref, o_ref):
    vec = vec_ref[...]                                              # [9, H]
    emb_g = vec[_EMB_G:_EMB_G + 1, :]
    emb_b = vec[_EMB_B:_EMB_B + 1, :]
    bo    = vec[_BO:_BO + 1, :]
    ln1_g = vec[_LN1_G:_LN1_G + 1, :]
    ln1_b = vec[_LN1_B:_LN1_B + 1, :]
    fb2   = vec[_FB2:_FB2 + 1, :]
    ln2_g = vec[_LN2_G:_LN2_G + 1, :]
    ln2_b = vec[_LN2_B:_LN2_B + 1, :]
    bp    = vec[_BP:_BP + 1, :]

    # embedding LayerNorm prologue over the whole batch at once
    x = _ln(x_ref[...], emb_g, emb_b)                               # [B*S, H]

    # fused QKV projection: one [B*S,H] x [H,3H] MXU push for the whole batch
    qkv = (jnp.dot(x, wqkv_ref[...], preferred_element_type=jnp.float32)
           + bqkv_ref[...])                                         # [B*S, 3H]

    wo = wo_ref[...]                                                # [H, H]
    mask = m_ref[...]                                               # [B, S]

    attn_rows = []
    for b in range(B):                                              # unrolled
        bias = (1.0 - mask[b:b + 1, :]) * (-1e9)                    # [1, S]
        qkv_b = qkv[b * S:(b + 1) * S, :]                           # [S, 3H]
        attn_b = jnp.zeros((S, H), jnp.float32)
        for h in range(NH):                                         # unrolled
            qh = qkv_b[:, h * DH:(h + 1) * DH]                      # [S, DH]
            kh = qkv_b[:, H + h * DH:H + (h + 1) * DH]
            vh = qkv_b[:, 2 * H + h * DH:2 * H + (h + 1) * DH]
            # q @ k^T without an explicit transpose op
            s = jax.lax.dot_general(qh, kh, (((1,), (1,)), ((), ())),
                                    preferred_element_type=jnp.float32)
            s = s * SCALE + bias                                    # [S, S]
            s = s - jnp.max(s, axis=-1, keepdims=True)
            p = jnp.exp(s)
            p = p / jnp.sum(p, axis=-1, keepdims=True)              # exact softmax
            ctx_h = jnp.dot(p, vh, preferred_element_type=jnp.float32)  # [S, DH]
            # per-head output projection accumulation: no lane-axis ctx concat
            attn_b = attn_b + jnp.dot(ctx_h, wo[h * DH:(h + 1) * DH, :],
                                      preferred_element_type=jnp.float32)
        attn_rows.append(attn_b)
    attn_out = jnp.concatenate(attn_rows, axis=0) + bo              # [B*S, H]

    # residual + LayerNorm, FFN (exact-erf GELU), residual + LayerNorm
    h1 = _ln(x + attn_out, ln1_g, ln1_b)
    ff = (jnp.dot(h1, w1_ref[...], preferred_element_type=jnp.float32)
          + fb1_ref[...])
    ff = _gelu_erf(ff)
    ff = (jnp.dot(ff, w2_ref[...], preferred_element_type=jnp.float32)
          + fb2)
    h2 = _ln(h1 + ff, ln2_g, ln2_b)                                 # last_hidden

    # ---- pooler + pair extraction epilogue (on resident activations) ----
    cls = jnp.concatenate([h2[b * S:b * S + 1, :] for b in range(B)], axis=0)
    pooled = jnp.tanh(
        jnp.dot(cls, wp_ref[...], preferred_element_type=jnp.float32) + bp)

    out_rows = []
    for i in range(B // 2):                                         # unrolled
        odd = h2[(2 * i + 1) * S:(2 * i + 2) * S, :]                # [S, H]
        # one full-width cross-sublane reduce; both means derived from it
        full_sum = jnp.sum(odd, axis=0, keepdims=True)
        pre_sum = full_sum - odd[0:1, :]                            # rows 1:S
        post_sum = pre_sum - odd[S - 1:S, :]                        # rows 1:S-1
        pre = pre_sum * (1.0 / (PRE_END - 1))
        post = post_sum * (1.0 / (POST_END - 1))
        key = pooled[2 * i:2 * i + 1, :]                            # pooled[::2]
        case = pooled[2 * i + 1:2 * i + 2, :]                       # pooled[1::2]
        out_rows.append(jnp.concatenate([key, case, pre, post], axis=-1))
    # lane-dense [B//2, 4H] = [2, 128] slab: one unmasked store
    o_ref[...] = jnp.concatenate(out_rows, axis=0)


# --------------------------- synthetic BERT encoder -------------------------

def init_params(key):
    ks = jax.random.split(key, 12)

    def w(k, shape, scale=0.02):
        return (scale * jax.random.normal(k, shape)).astype(jnp.float32)

    zeros = lambda s: jnp.zeros(s, jnp.float32)
    ones = lambda s: jnp.ones(s, jnp.float32)

    wq, wk, wv = w(ks[3], (H, H)), w(ks[4], (H, H)), w(ks[5], (H, H))
    p = {
        "word_emb": w(ks[0], (V, H)),
        "pos_emb": w(ks[1], (S, H)),
        "type_emb": w(ks[2], (2, H)),
        "emb_ln_g": ones((1, H)), "emb_ln_b": zeros((1, H)),
        "wqkv": jnp.concatenate([wq, wk, wv], axis=1),     # fused [H, 3H]
        "bqkv": zeros((1, 3 * H)),
        "wo": w(ks[6], (H, H)), "bo": zeros((1, H)),
        "ln1_g": ones((1, H)), "ln1_b": zeros((1, H)),
        "w1": w(ks[7], (H, FF)), "fb1": zeros((1, FF)),
        "w2": w(ks[8], (FF, H)), "fb2": zeros((1, H)),
        "ln2_g": ones((1, H)), "ln2_b": zeros((1, H)),
        "wp": w(ks[9], (H, H)), "bp": zeros((1, H)),       # pooler
        # self.linear = nn.Linear(hidden_size, 1) exists in __init__ but is
        # never used in forward(); kept only for parameter-shape parity.
        "w_head": w(ks[10], (H, 1)), "b_head": zeros((1, 1)),
    }
    return p


def interact_extractor_forward(p, input_ids, attention_mask, token_type_ids):
    # embedding gather stays in plain JAX (no clean Pallas gather at this size)
    emb = (p["word_emb"][input_ids]
           + p["pos_emb"][None, :S, :]
           + p["type_emb"][token_type_ids])                        # [B, S, H]
    emb_flat = emb.reshape(B * S, H)                               # [B*S, H]
    mask_f = attention_mask.astype(jnp.float32)                    # [B, S]
    vec_pack = jnp.concatenate(
        [p["emb_ln_g"], p["emb_ln_b"], p["bo"], p["ln1_g"], p["ln1_b"],
         p["fb2"], p["ln2_g"], p["ln2_b"], p["bp"]], axis=0)       # [9, H]
    assert vec_pack.shape == (NUM_VEC, H)

    # single fused pallas_call, no grid: everything (~50 KB) resides in VMEM.
    # torch.no_grad() is irrelevant here; this is inference only.
    return pl.pallas_call(
        _fused_kernel,
        out_shape=jax.ShapeDtypeStruct((B // 2, 4 * H), jnp.float32),
    )(emb_flat, mask_f, p["wqkv"], p["bqkv"], p["wo"], p["w1"], p["fb1"],
      p["w2"], p["wp"], vec_pack)


# ------------------------------------ main -----------------------------------

if __name__ == "__main__":
    key = jax.random.PRNGKey(0)
    kp, kid, ktt = jax.random.split(key, 3)

    params = init_params(kp)
    input_ids = jax.random.randint(kid, (B, S), 0, V, dtype=jnp.int32)
    attention_mask = jnp.ones((B, S), dtype=jnp.int32)
    token_type_ids = jax.random.randint(ktt, (B, S), 0, 2, dtype=jnp.int32)

    fwd = jax.jit(interact_extractor_forward)
    out = fwd(params, input_ids, attention_mask, token_type_ids)
    out = jax.block_until_ready(out)

    assert out.shape == (B // 2, 4 * H), out.shape
    assert bool(jnp.all(jnp.isfinite(out)))
    print("KERNEL_OK")
</pallas_src>

<mosaic_0001>
module attributes {stable_mosaic.version = 11 : i64} {
  func.func @_fused_kernel(%arg0: memref<64x32xf32, #tpu.memory_space<vmem>>, %arg1: memref<4x16xf32, #tpu.memory_space<vmem>>, %arg2: memref<32x96xf32, #tpu.memory_space<vmem>>, %arg3: memref<1x96xf32, #tpu.memory_space<vmem>>, %arg4: memref<32x32xf32, #tpu.memory_space<vmem>>, %arg5: memref<32x64xf32, #tpu.memory_space<vmem>>, %arg6: memref<1x64xf32, #tpu.memory_space<vmem>>, %arg7: memref<64x32xf32, #tpu.memory_space<vmem>>, %arg8: memref<32x32xf32, #tpu.memory_space<vmem>>, %arg9: memref<9x32xf32, #tpu.memory_space<vmem>>, %arg10: memref<2x128xf32, #tpu.memory_space<vmem>>) attributes {dimension_semantics = [], scalar_prefetch = 0 : i64, scratch_operands = 0 : i64, tpu.core_type = #tpu.core_type<tc>} {
    %c0 = arith.constant 0 : index
    %c0_0 = arith.constant 0 : index
    %0 = vector.load %arg9[%c0, %c0_0] : memref<9x32xf32, #tpu.memory_space<vmem>>, vector<9x32xf32>
    %1 = vector.extract_strided_slice %0 {offsets = [0, 0], sizes = [1, 32], strides = [1, 1]} : vector<9x32xf32> to vector<1x32xf32>
    %2 = vector.extract_strided_slice %0 {offsets = [1, 0], sizes = [1, 32], strides = [1, 1]} : vector<9x32xf32> to vector<1x32xf32>
    %3 = vector.extract_strided_slice %0 {offsets = [2, 0], sizes = [1, 32], strides = [1, 1]} : vector<9x32xf32> to vector<1x32xf32>
    %4 = vector.extract_strided_slice %0 {offsets = [3, 0], sizes = [1, 32], strides = [1, 1]} : vector<9x32xf32> to vector<1x32xf32>
    %5 = vector.extract_strided_slice %0 {offsets = [4, 0], sizes = [1, 32], strides = [1, 1]} : vector<9x32xf32> to vector<1x32xf32>
    %6 = vector.extract_strided_slice %0 {offsets = [5, 0], sizes = [1, 32], strides = [1, 1]} : vector<9x32xf32> to vector<1x32xf32>
    %7 = vector.extract_strided_slice %0 {offsets = [6, 0], sizes = [1, 32], strides = [1, 1]} : vector<9x32xf32> to vector<1x32xf32>
    %8 = vector.extract_strided_slice %0 {offsets = [7, 0], sizes = [1, 32], strides = [1, 1]} : vector<9x32xf32> to vector<1x32xf32>
    %9 = vector.extract_strided_slice %0 {offsets = [8, 0], sizes = [1, 32], strides = [1, 1]} : vector<9x32xf32> to vector<1x32xf32>
    %c0_1 = arith.constant 0 : index
    %c0_2 = arith.constant 0 : index
    %10 = vector.load %arg0[%c0_1, %c0_2] : memref<64x32xf32, #tpu.memory_space<vmem>>, vector<64x32xf32>
    %cst = arith.constant dense<0.000000e+00> : vector<64xf32>
    %11 = vector.multi_reduction <add>, %10, %cst [1] : vector<64x32xf32> to vector<64xf32>
    %12 = vector.shape_cast %11 : vector<64xf32> to vector<64x1xf32>
    %cst_3 = arith.constant 3.200000e+01 : f32
    %13 = vector.broadcast %cst_3 : f32 to vector<64x1xf32>
    %14 = arith.divf %12, %13 : vector<64x1xf32>
    %15 = vector.broadcast %14 : vector<64x1xf32> to vector<64x32xf32>
    %16 = arith.subf %10, %15 : vector<64x32xf32>
    %17 = arith.mulf %16, %16 : vector<64x32xf32>
    %cst_4 = arith.constant dense<0.000000e+00> : vector<64xf32>
    %18 = vector.multi_reduction <add>, %17, %cst_4 [1] : vector<64x32xf32> to vector<64xf32>
    %19 = vector.shape_cast %18 : vector<64xf32> to vector<64x1xf32>
    %cst_5 = arith.constant 3.200000e+01 : f32
    %20 = vector.broadcast %cst_5 : f32 to vector<64x1xf32>
    %21 = arith.divf %19, %20 : vector<64x1xf32>
    %22 = vector.broadcast %14 : vector<64x1xf32> to vector<64x32xf32>
    %23 = arith.subf %10, %22 : vector<64x32xf32>
    %cst_6 = arith.constant 9.99999996E-13 : f32
    %24 = vector.broadcast %cst_6 : f32 to vector<64x1xf32>
    %25 = arith.addf %21, %24 : vector<64x1xf32>
    %26 = math.rsqrt %25 : vector<64x1xf32>
    %27 = vector.broadcast %26 : vector<64x1xf32> to vector<64x32xf32>
    %28 = arith.mulf %23, %27 : vector<64x32xf32>
    %29 = vector.broadcast %1 : vector<1x32xf32> to vector<64x32xf32>
    %30 = arith.mulf %28, %29 : vector<64x32xf32>
    %31 = vector.broadcast %2 : vector<1x32xf32> to vector<64x32xf32>
    %32 = arith.addf %30, %31 : vector<64x32xf32>
    %c0_7 = arith.constant 0 : index
    %c0_8 = arith.constant 0 : index
    %33 = vector.load %arg2[%c0_7, %c0_8] : memref<32x96xf32, #tpu.memory_space<vmem>>, vector<32x96xf32>
    %cst_9 = arith.constant dense<0.000000e+00> : vector<64x96xf32>
    %34 = tpu.matmul %32, %33, %cst_9 {dimension_numbers = #tpu.dot_dimension_numbers<[1], [0], [0], [1], [0, 0, 1, 1], [], []>} : vector<64x32xf32>, vector<32x96xf32>, vector<64x96xf32> -> vector<64x96xf32>
    %c0_10 = arith.constant 0 : index
    %c0_11 = arith.constant 0 : index
    %35 = vector.load %arg3[%c0_10, %c0_11] : memref<1x96xf32, #tpu.memory_space<vmem>>, vector<1x96xf32>
    %36 = vector.broadcast %35 : vector<1x96xf32> to vector<64x96xf32>
    %37 = arith.addf %34, %36 : vector<64x96xf32>
    %c0_12 = arith.constant 0 : index
    %c0_13 = arith.constant 0 : index
    %38 = vector.load %arg4[%c0_12, %c0_13] : memref<32x32xf32, #tpu.memory_space<vmem>>, vector<32x32xf32>
    %c0_14 = arith.constant 0 : index
    %c0_15 = arith.constant 0 : index
    %39 = vector.load %arg1[%c0_14, %c0_15] : memref<4x16xf32, #tpu.memory_space<vmem>>, vector<4x16xf32>
    %40 = vector.extract_strided_slice %39 {offsets = [0, 0], sizes = [1, 16], strides = [1, 1]} : vector<4x16xf32> to vector<1x16xf32>
    %cst_16 = arith.constant 1.000000e+00 : f32
    %41 = vector.broadcast %cst_16 : f32 to vector<1x16xf32>
    %42 = arith.subf %41, %40 : vector<1x16xf32>
    %cst_17 = arith.constant -1.000000e+09 : f32
    %43 = vector.broadcast %cst_17 : f32 to vector<1x16xf32>
    %44 = arith.mulf %42, %43 : vector<1x16xf32>
    %45 = vector.extract_strided_slice %37 {offsets = [0, 0], sizes = [16, 96], strides = [1, 1]} : vector<64x96xf32> to vector<16x96xf32>
    %cst_18 = arith.constant 0.000000e+00 : f32
    %46 = vector.broadcast %cst_18 : f32 to vector<16x32xf32>
    %47 = vector.extract_strided_slice %45 {offsets = [0, 0], sizes = [16, 8], strides = [1, 1]} : vector<16x96xf32> to vector<16x8xf32>
    %48 = vector.extract_strided_slice %45 {offsets = [0, 32], sizes = [16, 8], strides = [1, 1]} : vector<16x96xf32> to vector<16x8xf32>
    %49 = vector.extract_strided_slice %45 {offsets = [0, 64], sizes = [16, 8], strides = [1, 1]} : vector<16x96xf32> to vector<16x8xf32>
    %cst_19 = arith.constant dense<0.000000e+00> : vector<16x16xf32>
    %50 = tpu.matmul %47, %48, %cst_19 {dimension_numbers = #tpu.dot_dimension_numbers<[1], [1], [0], [0], [0, 0, 1, 0], [], []>} : vector<16x8xf32>, vector<16x8xf32>, vector<16x16xf32> -> vector<16x16xf32>
    %cst_20 = arith.constant 0.353553385 : f32
    %51 = vector.broadcast %cst_20 : f32 to vector<16x16xf32>
    %52 = arith.mulf %50, %51 : vector<16x16xf32>
    %53 = vector.broadcast %44 : vector<1x16xf32> to vector<16x16xf32>
    %54 = arith.addf %52, %53 : vector<16x16xf32>
    %cst_21 = arith.constant dense<0xFF800000> : vector<16xf32>
    %55 = vector.multi_reduction <maximumf>, %54, %cst_21 [1] : vector<16x16xf32> to vector<16xf32>
    %56 = vector.shape_cast %55 : vector<16xf32> to vector<16x1xf32>
    %57 = vector.broadcast %56 : vector<16x1xf32> to vector<16x16xf32>
    %58 = arith.subf %54, %57 : vector<16x16xf32>
    %59 = math.exp %58 : vector<16x16xf32>
    %cst_22 = arith.constant dense<0.000000e+00> : vector<16xf32>
    %60 = vector.multi_reduction <add>, %59, %cst_22 [1] : vector<16x16xf32> to vector<16xf32>
    %61 = vector.shape_cast %60 : vector<16xf32> to vector<16x1xf32>
    %62 = vector.broadcast %61 : vector<16x1xf32> to vector<16x16xf32>
    %63 = arith.divf %59, %62 : vector<16x16xf32>
    %cst_23 = arith.constant dense<0.000000e+00> : vector<16x8xf32>
    %64 = tpu.matmul %63, %49, %cst_23 {dimension_numbers = #tpu.dot_dimension_numbers<[1], [0], [0], [1], [0, 0, 1, 1], [], []>} : vector<16x16xf32>, vector<16x8xf32>, vector<16x8xf32> -> vector<16x8xf32>
    %65 = vector.extract_strided_slice %38 {offsets = [0, 0], sizes = [8, 32], strides = [1, 1]} : vector<32x32xf32> to vector<8x32xf32>
    %cst_24 = arith.constant dense<0.000000e+00> : vector<16x32xf32>
    %66 = tpu.matmul %64, %65, %cst_24 {dimension_numbers = #tpu.dot_dimension_numbers<[1], [0], [0], [1], [0, 0, 1, 1], [], []>} : vector<16x8xf32>, vector<8x32xf32>, vector<16x32xf32> -> vector<16x32xf32>
    %67 = arith.addf %46, %66 : vector<16x32xf32>
    %68 = vector.extract_strided_slice %45 {offsets = [0, 8], sizes = [16, 8], strides = [1, 1]} : vector<16x96xf32> to vector<16x8xf32>
    %69 = vector.extract_strided_slice %45 {offsets = [0, 40], sizes = [16, 8], strides = [1, 1]} : vector<16x96xf32> to vector<16x8xf32>
    %70 = vector.extract_strided_slice %45 {offsets = [0, 72], sizes = [16, 8], strides = [1, 1]} : vector<16x96xf32> to vector<16x8xf32>
    %cst_25 = arith.constant dense<0.000000e+00> : vector<16x16xf32>
    %71 = tpu.matmul %68, %69, %cst_25 {dimension_numbers = #tpu.dot_dimension_numbers<[1], [1], [0], [0], [0, 0, 1, 0], [], []>} : vector<16x8xf32>, vector<16x8xf32>, vector<16x16xf32> -> vector<16x16xf32>
    %cst_26 = arith.constant 0.353553385 : f32
    %72 = vector.broadcast %cst_26 : f32 to vector<16x16xf32>
    %73 = arith.mulf %71, %72 : vector<16x16xf32>
    %74 = vector.broadcast %44 : vector<1x16xf32> to vector<16x16xf32>
    %75 = arith.addf %73, %74 : vector<16x16xf32>
    %cst_27 = arith.constant dense<0xFF800000> : vector<16xf32>
    %76 = vector.multi_reduction <maximumf>, %75, %cst_27 [1] : vector<16x16xf32> to vector<16xf32>
    %77 = vector.shape_cast %76 : vector<16xf32> to vector<16x1xf32>
    %78 = vector.broadcast %77 : vector<16x1xf32> to vector<16x16xf32>
    %79 = arith.subf %75, %78 : vector<16x16xf32>
    %80 = math.exp %79 : vector<16x16xf32>
    %cst_28 = arith.constant dense<0.000000e+00> : vector<16xf32>
    %81 = vector.multi_reduction <add>, %80, %cst_28 [1] : vector<16x16xf32> to vector<16xf32>
    %82 = vector.shape_cast %81 : vector<16xf32> to vector<16x1xf32>
    %83 = vector.broadcast %82 : vector<16x1xf32> to vector<16x16xf32>
    %84 = arith.divf %80, %83 : vector<16x16xf32>
    %cst_29 = arith.constant dense<0.000000e+00> : vector<16x8xf32>
    %85 = tpu.matmul %84, %70, %cst_29 {dimension_numbers = #tpu.dot_dimension_numbers<[1], [0], [0], [1], [0, 0, 1, 1], [], []>} : vector<16x16xf32>, vector<16x8xf32>, vector<16x8xf32> -> vector<16x8xf32>
    %86 = vector.extract_strided_slice %38 {offsets = [8, 0], sizes = [8, 32], strides = [1, 1]} : vector<32x32xf32> to vector<8x32xf32>
    %cst_30 = arith.constant dense<0.000000e+00> : vector<16x32xf32>
    %87 = tpu.matmul %85, %86, %cst_30 {dimension_numbers = #tpu.dot_dimension_numbers<[1], [0], [0], [1], [0, 0, 1, 1], [], []>} : vector<16x8xf32>, vector<8x32xf32>, vector<16x32xf32> -> vector<16x32xf32>
    %88 = arith.addf %67, %87 : vector<16x32xf32>
    %89 = vector.extract_strided_slice %45 {offsets = [0, 16], sizes = [16, 8], strides = [1, 1]} : vector<16x96xf32> to vector<16x8xf32>
    %90 = vector.extract_strided_slice %45 {offsets = [0, 48], sizes = [16, 8], strides = [1, 1]} : vector<16x96xf32> to vector<16x8xf32>
    %91 = vector.extract_strided_slice %45 {offsets = [0, 80], sizes = [16, 8], strides = [1, 1]} : vector<16x96xf32> to vector<16x8xf32>
    %cst_31 = arith.constant dense<0.000000e+00> : vector<16x16xf32>
    %92 = tpu.matmul %89, %90, %cst_31 {dimension_numbers = #tpu.dot_dimension_numbers<[1], [1], [0], [0], [0, 0, 1, 0], [], []>} : vector<16x8xf32>, vector<16x8xf32>, vector<16x16xf32> -> vector<16x16xf32>
    %cst_32 = arith.constant 0.353553385 : f32
    %93 = vector.broadcast %cst_32 : f32 to vector<16x16xf32>
    %94 = arith.mulf %92, %93 : vector<16x16xf32>
    %95 = vector.broadcast %44 : vector<1x16xf32> to vector<16x16xf32>
    %96 = arith.addf %94, %95 : vector<16x16xf32>
    %cst_33 = arith.constant dense<0xFF800000> : vector<16xf32>
    %97 = vector.multi_reduction <maximumf>, %96, %cst_33 [1] : vector<16x16xf32> to vector<16xf32>
    %98 = vector.shape_cast %97 : vector<16xf32> to vector<16x1xf32>
    %99 = vector.broadcast %98 : vector<16x1xf32> to vector<16x16xf32>
    %100 = arith.subf %96, %99 : vector<16x16xf32>
    %101 = math.exp %100 : vector<16x16xf32>
    %cst_34 = arith.constant dense<0.000000e+00> : vector<16xf32>
    %102 = vector.multi_reduction <add>, %101, %cst_34 [1] : vector<16x16xf32> to vector<16xf32>
    %103 = vector.shape_cast %102 : vector<16xf32> to vector<16x1xf32>
    %104 = vector.broadcast %103 : vector<16x1xf32> to vector<16x16xf32>
    %105 = arith.divf %101, %104 : vector<16x16xf32>
    %cst_35 = arith.constant dense<0.000000e+00> : vector<16x8xf32>
    %106 = tpu.matmul %105, %91, %cst_35 {dimension_numbers = #tpu.dot_dimension_numbers<[1], [0], [0], [1], [0, 0, 1, 1], [], []>} : vector<16x16xf32>, vector<16x8xf32>, vector<16x8xf32> -> vector<16x8xf32>
    %107 = vector.extract_strided_slice %38 {offsets = [16, 0], sizes = [8, 32], strides = [1, 1]} : vector<32x32xf32> to vector<8x32xf32>
    %cst_36 = arith.constant dense<0.000000e+00> : vector<16x32xf32>
    %108 = tpu.matmul %106, %107, %cst_36 {dimension_numbers = #tpu.dot_dimension_numbers<[1], [0], [0], [1], [0, 0, 1, 1], [], []>} : vector<16x8xf32>, vector<8x32xf32>, vector<16x32xf32> -> vector<16x32xf32>
    %109 = arith.addf %88, %108 : vector<16x32xf32>
    %110 = vector.extract_strided_slice %45 {offsets = [0, 24], sizes = [16, 8], strides = [1, 1]} : vector<16x96xf32> to vector<16x8xf32>
    %111 = vector.extract_strided_slice %45 {offsets = [0, 56], sizes = [16, 8], strides = [1, 1]} : vector<16x96xf32> to vector<16x8xf32>
    %112 = vector.extract_strided_slice %45 {offsets = [0, 88], sizes = [16, 8], strides = [1, 1]} : vector<16x96xf32> to vector<16x8xf32>
    %cst_37 = arith.constant dense<0.000000e+00> : vector<16x16xf32>
    %113 = tpu.matmul %110, %111, %cst_37 {dimension_numbers = #tpu.dot_dimension_numbers<[1], [1], [0], [0], [0, 0, 1, 0], [], []>} : vector<16x8xf32>, vector<16x8xf32>, vector<16x16xf32> -> vector<16x16xf32>
    %cst_38 = arith.constant 0.353553385 : f32
    %114 = vector.broadcast %cst_38 : f32 to vector<16x16xf32>
    %115 = arith.mulf %113, %114 : vector<16x16xf32>
    %116 = vector.broadcast %44 : vector<1x16xf32> to vector<16x16xf32>
    %117 = arith.addf %115, %116 : vector<16x16xf32>
    %cst_39 = arith.constant dense<0xFF800000> : vector<16xf32>
    %118 = vector.multi_reduction <maximumf>, %117, %cst_39 [1] : vector<16x16xf32> to vector<16xf32>
    %119 = vector.shape_cast %118 : vector<16xf32> to vector<16x1xf32>
    %120 = vector.broadcast %119 : vector<16x1xf32> to vector<16x16xf32>
    %121 = arith.subf %117, %120 : vector<16x16xf32>
    %122 = math.exp %121 : vector<16x16xf32>
    %cst_40 = arith.constant dense<0.000000e+00> : vector<16xf32>
    %123 = vector.multi_reduction <add>, %122, %cst_40 [1] : vector<16x16xf32> to vector<16xf32>
    %124 = vector.shape_cast %123 : vector<16xf32> to vector<16x1xf32>
    %125 = vector.broadcast %124 : vector<16x1xf32> to vector<16x16xf32>
    %126 = arith.divf %122, %125 : vector<16x16xf32>
    %cst_41 = arith.constant dense<0.000000e+00> : vector<16x8xf32>
    %127 = tpu.matmul %126, %112, %cst_41 {dimension_numbers = #tpu.dot_dimension_numbers<[1], [0], [0], [1], [0, 0, 1, 1], [], []>} : vector<16x16xf32>, vector<16x8xf32>, vector<16x8xf32> -> vector<16x8xf32>
    %128 = vector.extract_strided_slice %38 {offsets = [24, 0], sizes = [8, 32], strides = [1, 1]} : vector<32x32xf32> to vector<8x32xf32>
    %cst_42 = arith.constant dense<0.000000e+00> : vector<16x32xf32>
    %129 = tpu.matmul %127, %128, %cst_42 {dimension_numbers = #tpu.dot_dimension_numbers<[1], [0], [0], [1], [0, 0, 1, 1], [], []>} : vector<16x8xf32>, vector<8x32xf32>, vector<16x32xf32> -> vector<16x32xf32>
    %130 = arith.addf %109, %129 : vector<16x32xf32>
    %131 = vector.extract_strided_slice %39 {offsets = [1, 0], sizes = [1, 16], strides = [1, 1]} : vector<4x16xf32> to vector<1x16xf32>
    %cst_43 = arith.constant 1.000000e+00 : f32
    %132 = vector.broadcast %cst_43 : f32 to vector<1x16xf32>
    %133 = arith.subf %132, %131 : vector<1x16xf32>
    %cst_44 = arith.constant -1.000000e+09 : f32
    %134 = vector.broadcast %cst_44 : f32 to vector<1x16xf32>
    %135 = arith.mulf %133, %134 : vector<1x16xf32>
    %136 = vector.extract_strided_slice %37 {offsets = [16, 0], sizes = [16, 96], strides = [1, 1]} : vector<64x96xf32> to vector<16x96xf32>
    %cst_45 = arith.constant 0.000000e+00 : f32
    %137 = vector.broadcast %cst_45 : f32 to vector<16x32xf32>
    %138 = vector.extract_strided_slice %136 {offsets = [0, 0], sizes = [16, 8], strides = [1, 1]} : vector<16x96xf32> to vector<16x8xf32>
    %139 = vector.extract_strided_slice %136 {offsets = [0, 32], sizes = [16, 8], strides = [1, 1]} : vector<16x96xf32> to vector<16x8xf32>
    %140 = vector.extract_strided_slice %136 {offsets = [0, 64], sizes = [16, 8], strides = [1, 1]} : vector<16x96xf32> to vector<16x8xf32>
    %cst_46 = arith.constant dense<0.000000e+00> : vector<16x16xf32>
    %141 = tpu.matmul %138, %139, %cst_46 {dimension_numbers = #tpu.dot_dimension_numbers<[1], [1], [0], [0], [0, 0, 1, 0], [], []>} : vector<16x8xf32>, vector<16x8xf32>, vector<16x16xf32> -> vector<16x16xf32>
    %cst_47 = arith.constant 0.353553385 : f32
    %142 = vector.broadcast %cst_47 : f32 to vector<16x16xf32>
    %143 = arith.mulf %141, %142 : vector<16x16xf32>
    %144 = vector.broadcast %135 : vector<1x16xf32> to vector<16x16xf32>
    %145 = arith.addf %143, %144 : vector<16x16xf32>
    %cst_48 = arith.constant dense<0xFF800000> : vector<16xf32>
    %146 = vector.multi_reduction <maximumf>, %145, %cst_48 [1] : vector<16x16xf32> to vector<16xf32>
    %147 = vector.shape_cast %146 : vector<16xf32> to vector<16x1xf32>
    %148 = vector.broadcast %147 : vector<16x1xf32> to vector<16x16xf32>
    %149 = arith.subf %145, %148 : vector<16x16xf32>
    %150 = math.exp %149 : vector<16x16xf32>
    %cst_49 = arith.constant dense<0.000000e+00> : vector<16xf32>
    %151 = vector.multi_reduction <add>, %150, %cst_49 [1] : vector<16x16xf32> to vector<16xf32>
    %152 = vector.shape_cast %151 : vector<16xf32> to vector<16x1xf32>
    %153 = vector.broadcast %152 : vector<16x1xf32> to vector<16x16xf32>
    %154 = arith.divf %150, %153 : vector<16x16xf32>
    %cst_50 = arith.constant dense<0.000000e+00> : vector<16x8xf32>
    %155 = tpu.matmul %154, %140, %cst_50 {dimension_numbers = #tpu.dot_dimension_numbers<[1], [0], [0], [1], [0, 0, 1, 1], [], []>} : vector<16x16xf32>, vector<16x8xf32>, vector<16x8xf32> -> vector<16x8xf32>
    %156 = vector.extract_strided_slice %38 {offsets = [0, 0], sizes = [8, 32], strides = [1, 1]} : vector<32x32xf32> to vector<8x32xf32>
    %cst_51 = arith.constant dense<0.000000e+00> : vector<16x32xf32>
    %157 = tpu.matmul %155, %156, %cst_51 {dimension_numbers = #tpu.dot_dimension_numbers<[1], [0], [0], [1], [0, 0, 1, 1], [], []>} : vector<16x8xf32>, vector<8x32xf32>, vector<16x32xf32> -> vector<16x32xf32>
    %158 = arith.addf %137, %157 : vector<16x32xf32>
    %159 = vector.extract_strided_slice %136 {offsets = [0, 8], sizes = [16, 8], strides = [1, 1]} : vector<16x96xf32> to vector<16x8xf32>
    %160 = vector.extract_strided_slice %136 {offsets = [0, 40], sizes = [16, 8], strides = [1, 1]} : vector<16x96xf32> to vector<16x8xf32>
    %161 = vector.extract_strided_slice %136 {offsets = [0, 72], sizes = [16, 8], strides = [1, 1]} : vector<16x96xf32> to vector<16x8xf32>
    %cst_52 = arith.constant dense<0.000000e+00> : vector<16x16xf32>
    %162 = tpu.matmul %159, %160, %cst_52 {dimension_numbers = #tpu.dot_dimension_numbers<[1], [1], [0], [0], [0, 0, 1, 0], [], []>} : vector<16x8xf32>, vector<16x8xf32>, vector<16x16xf32> -> vector<16x16xf32>
    %cst_53 = arith.constant 0.353553385 : f32
    %163 = vector.broadcast %cst_53 : f32 to vector<16x16xf32>
    %164 = arith.mulf %162, %163 : vector<16x16xf32>
    %165 = vector.broadcast %135 : vector<1x16xf32> to vector<16x16xf32>
    %166 = arith.addf %164, %165 : vector<16x16xf32>
    %cst_54 = arith.constant dense<0xFF800000> : vector<16xf32>
    %167 = vector.multi_reduction <maximumf>, %166, %cst_54 [1] : vector<16x16xf32> to vector<16xf32>
    %168 = vector.shape_cast %167 : vector<16xf32> to vector<16x1xf32>
    %169 = vector.broadcast %168 : vector<16x1xf32> to vector<16x16xf32>
    %170 = arith.subf %166, %169 : vector<16x16xf32>
    %171 = math.exp %170 : vector<16x16xf32>
    %cst_55 = arith.constant dense<0.000000e+00> : vector<16xf32>
    %172 = vector.multi_reduction <add>, %171, %cst_55 [1] : vector<16x16xf32> to vector<16xf32>
    %173 = vector.shape_cast %172 : vector<16xf32> to vector<16x1xf32>
    %174 = vector.broadcast %173 : vector<16x1xf32> to vector<16x16xf32>
    %175 = arith.divf %171, %174 : vector<16x16xf32>
    %cst_56 = arith.constant dense<0.000000e+00> : vector<16x8xf32>
    %176 = tpu.matmul %175, %161, %cst_56 {dimension_numbers = #tpu.dot_dimension_numbers<[1], [0], [0], [1], [0, 0, 1, 1], [], []>} : vector<16x16xf32>, vector<16x8xf32>, vector<16x8xf32> -> vector<16x8xf32>
    %177 = vector.extract_strided_slice %38 {offsets = [8, 0], sizes = [8, 32], strides = [1, 1]} : vector<32x32xf32> to vector<8x32xf32>
    %cst_57 = arith.constant dense<0.000000e+00> : vector<16x32xf32>
    %178 = tpu.matmul %176, %177, %cst_57 {dimension_numbers = #tpu.dot_dimension_numbers<[1], [0], [0], [1], [0, 0, 1, 1], [], []>} : vector<16x8xf32>, vector<8x32xf32>, vector<16x32xf32> -> vector<16x32xf32>
    %179 = arith.addf %158, %178 : vector<16x32xf32>
    %180 = vector.extract_strided_slice %136 {offsets = [0, 16], sizes = [16, 8], strides = [1, 1]} : vector<16x96xf32> to vector<16x8xf32>
    %181 = vector.extract_strided_slice %136 {offsets = [0, 48], sizes = [16, 8], strides = [1, 1]} : vector<16x96xf32> to vector<16x8xf32>
    %182 = vector.extract_strided_slice %136 {offsets = [0, 80], sizes = [16, 8], strides = [1, 1]} : vector<16x96xf32> to vector<16x8xf32>
    %cst_58 = arith.constant dense<0.000000e+00> : vector<16x16xf32>
    %183 = tpu.matmul %180, %181, %cst_58 {dimension_numbers = #tpu.dot_dimension_numbers<[1], [1], [0], [0], [0, 0, 1, 0], [], []>} : vector<16x8xf32>, vector<16x8xf32>, vector<16x16xf32> -> vector<16x16xf32>
    %cst_59 = arith.constant 0.353553385 : f32
    %184 = vector.broadcast %cst_59 : f32 to vector<16x16xf32>
    %185 = arith.mulf %183, %184 : vector<16x16xf32>
    %186 = vector.broadcast %135 : vector<1x16xf32> to vector<16x16xf32>
    %187 = arith.addf %185, %186 : vector<16x16xf32>
    %cst_60 = arith.constant dense<0xFF800000> : vector<16xf32>
    %188 = vector.multi_reduction <maximumf>, %187, %cst_60 [1] : vector<16x16xf32> to vector<16xf32>
    %189 = vector.shape_cast %188 : vector<16xf32> to vector<16x1xf32>
    %190 = vector.broadcast %189 : vector<16x1xf32> to vector<16x16xf32>
    %191 = arith.subf %187, %190 : vector<16x16xf32>
    %192 = math.exp %191 : vector<16x16xf32>
    %cst_61 = arith.constant dense<0.000000e+00> : vector<16xf32>
    %193 = vector.multi_reduction <add>, %192, %cst_61 [1] : vector<16x16xf32> to vector<16xf32>
    %194 = vector.shape_cast %193 : vector<16xf32> to vector<16x1xf32>
    %195 = vector.broadcast %194 : vector<16x1xf32> to vector<16x16xf32>
    %196 = arith.divf %192, %195 : vector<16x16xf32>
    %cst_62 = arith.constant dense<0.000000e+00> : vector<16x8xf32>
    %197 = tpu.matmul %196, %182, %cst_62 {dimension_numbers = #tpu.dot_dimension_numbers<[1], [0], [0], [1], [0, 0, 1, 1], [], []>} : vector<16x16xf32>, vector<16x8xf32>, vector<16x8xf32> -> vector<16x8xf32>
    %198 = vector.extract_strided_slice %38 {offsets = [16, 0], sizes = [8, 32], strides = [1, 1]} : vector<32x32xf32> to vector<8x32xf32>
    %cst_63 = arith.constant dense<0.000000e+00> : vector<16x32xf32>
    %199 = tpu.matmul %197, %198, %cst_63 {dimension_numbers = #tpu.dot_dimension_numbers<[1], [0], [0], [1], [0, 0, 1, 1], [], []>} : vector<16x8xf32>, vector<8x32xf32>, vector<16x32xf32> -> vector<16x32xf32>
    %200 = arith.addf %179, %199 : vector<16x32xf32>
    %201 = vector.extract_strided_slice %136 {offsets = [0, 24], sizes = [16, 8], strides = [1, 1]} : vector<16x96xf32> to vector<16x8xf32>
    %202 = vector.extract_strided_slice %136 {offsets = [0, 56], sizes = [16, 8], strides = [1, 1]} : vector<16x96xf32> to vector<16x8xf32>
    %203 = vector.extract_strided_slice %136 {offsets = [0, 88], sizes = [16, 8], strides = [1, 1]} : vector<16x96xf32> to vector<16x8xf32>
    %cst_64 = arith.constant dense<0.000000e+00> : vector<16x16xf32>
    %204 = tpu.matmul %201, %202, %cst_64 {dimension_numbers = #tpu.dot_dimension_numbers<[1], [1], [0], [0], [0, 0, 1, 0], [], []>} : vector<16x8xf32>, vector<16x8xf32>, vector<16x16xf32> -> vector<16x16xf32>
    %cst_65 = arith.constant 0.353553385 : f32
    %205 = vector.broadcast %cst_65 : f32 to vector<16x16xf32>
    %206 = arith.mulf %204, %205 : vector<16x16xf32>
    %207 = vector.broadcast %135 : vector<1x16xf32> to vector<16x16xf32>
    %208 = arith.addf %206, %207 : vector<16x16xf32>
    %cst_66 = arith.constant dense<0xFF800000> : vector<16xf32>
    %209 = vector.multi_reduction <maximumf>, %208, %cst_66 [1] : vector<16x16xf32> to vector<16xf32>
    %210 = vector.shape_cast %209 : vector<16xf32> to vector<16x1xf32>
    %211 = vector.broadcast %210 : vector<16x1xf32> to vector<16x16xf32>
    %212 = arith.subf %208, %211 : vector<16x16xf32>
    %213 = math.exp %212 : vector<16x16xf32>
    %cst_67 = arith.constant dense<0.000000e+00> : vector<16xf32>
    %214 = vector.multi_reduction <add>, %213, %cst_67 [1] : vector<16x16xf32> to vector<16xf32>
    %215 = vector.shape_cast %214 : vector<16xf32> to vector<16x1xf32>
    %216 = vector.broadcast %215 : vector<16x1xf32> to vector<16x16xf32>
    %217 = arith.divf %213, %216 : vector<16x16xf32>
    %cst_68 = arith.constant dense<0.000000e+00> : vector<16x8xf32>
    %218 = tpu.matmul %217, %203, %cst_68 {dimension_numbers = #tpu.dot_dimension_numbers<[1], [0], [0], [1], [0, 0, 1, 1], [], []>} : vector<16x16xf32>, vector<16x8xf32>, vector<16x8xf32> -> vector<16x8xf32>
    %219 = vector.extract_strided_slice %38 {offsets = [24, 0], sizes = [8, 32], strides = [1, 1]} : vector<32x32xf32> to vector<8x32xf32>
    %cst_69 = arith.constant dense<0.000000e+00> : vector<16x32xf32>
    %220 = tpu.matmul %218, %219, %cst_69 {dimension_numbers = #tpu.dot_dimension_numbers<[1], [0], [0], [1], [0, 0, 1, 1], [], []>} : vector<16x8xf32>, vector<8x32xf32>, vector<16x32xf32> -> vector<16x32xf32>
    %221 = arith.addf %200, %220 : vector<16x32xf32>
    %222 = vector.extract_strided_slice %39 {offsets = [2, 0], sizes = [1, 16], strides = [1, 1]} : vector<4x16xf32> to vector<1x16xf32>
    %cst_70 = arith.constant 1.000000e+00 : f32
    %223 = vector.broadcast %cst_70 : f32 to vector<1x16xf32>
    %224 = arith.subf %223, %222 : vector<1x16xf32>
    %cst_71 = arith.constant -1.000000e+09 : f32
    %225 = vector.broadcast %cst_71 : f32 to vector<1x16xf32>
    %226 = arith.mulf %224, %225 : vector<1x16xf32>
    %227 = vector.extract_strided_slice %37 {offsets = [32, 0], sizes = [16, 96], strides = [1, 1]} : vector<64x96xf32> to vector<16x96xf32>
    %cst_72 = arith.constant 0.000000e+00 : f32
    %228 = vector.broadcast %cst_72 : f32 to vector<16x32xf32>
    %229 = vector.extract_strided_slice %227 {offsets = [0, 0], sizes = [16, 8], strides = [1, 1]} : vector<16x96xf32> to vector<16x8xf32>
    %230 = vector.extract_strided_slice %227 {offsets = [0, 32], sizes = [16, 8], strides = [1, 1]} : vector<16x96xf32> to vector<16x8xf32>
    %231 = vector.extract_strided_slice %227 {offsets = [0, 64], sizes = [16, 8], strides = [1, 1]} : vector<16x96xf32> to vector<16x8xf32>
    %cst_73 = arith.constant dense<0.000000e+00> : vector<16x16xf32>
    %232 = tpu.matmul %229, %230, %cst_73 {dimension_numbers = #tpu.dot_dimension_numbers<[1], [1], [0], [0], [0, 0, 1, 0], [], []>} : vector<16x8xf32>, vector<16x8xf32>, vector<16x16xf32> -> vector<16x16xf32>
    %cst_74 = arith.constant 0.353553385 : f32
    %233 = vector.broadcast %cst_74 : f32 to vector<16x16xf32>
    %234 = arith.mulf %232, %233 : vector<16x16xf32>
    %235 = vector.broadcast %226 : vector<1x16xf32> to vector<16x16xf32>
    %236 = arith.addf %234, %235 : vector<16x16xf32>
    %cst_75 = arith.constant dense<0xFF800000> : vector<16xf32>
    %237 = vector.multi_reduction <maximumf>, %236, %cst_75 [1] : vector<16x16xf32> to vector<16xf32>
    %238 = vector.shape_cast %237 : vector<16xf32> to vector<16x1xf32>
    %239 = vector.broadcast %238 : vector<16x1xf32> to vector<16x16xf32>
    %240 = arith.subf %236, %239 : vector<16x16xf32>
    %241 = math.exp %240 : vector<16x16xf32>
    %cst_76 = arith.constant dense<0.000000e+00> : vector<16xf32>
    %242 = vector.multi_reduction <add>, %241, %cst_76 [1] : vector<16x16xf32> to vector<16xf32>
    %243 = vector.shape_cast %242 : vector<16xf32> to vector<16x1xf32>
    %244 = vector.broadcast %243 : vector<16x1xf32> to vector<16x16xf32>
    %245 = arith.divf %241, %244 : vector<16x16xf32>
    %cst_77 = arith.constant dense<0.000000e+00> : vector<16x8xf32>
    %246 = tpu.matmul %245, %231, %cst_77 {dimension_numbers = #tpu.dot_dimension_numbers<[1], [0], [0], [1], [0, 0, 1, 1], [], []>} : vector<16x16xf32>, vector<16x8xf32>, vector<16x8xf32> -> vector<16x8xf32>
    %247 = vector.extract_strided_slice %38 {offsets = [0, 0], sizes = [8, 32], strides = [1, 1]} : vector<32x32xf32> to vector<8x32xf32>
    %cst_78 = arith.constant dense<0.000000e+00> : vector<16x32xf32>
    %248 = tpu.matmul %246, %247, %cst_78 {dimension_numbers = #tpu.dot_dimension_numbers<[1], [0], [0], [1], [0, 0, 1, 1], [], []>} : vector<16x8xf32>, vector<8x32xf32>, vector<16x32xf32> -> vector<16x32xf32>
    %249 = arith.addf %228, %248 : vector<16x32xf32>
    %250 = vector.extract_strided_slice %227 {offsets = [0, 8], sizes = [16, 8], strides = [1, 1]} : vector<16x96xf32> to vector<16x8xf32>
    %251 = vector.extract_strided_slice %227 {offsets = [0, 40], sizes = [16, 8], strides = [1, 1]} : vector<16x96xf32> to vector<16x8xf32>
    %252 = vector.extract_strided_slice %227 {offsets = [0, 72], sizes = [16, 8], strides = [1, 1]} : vector<16x96xf32> to vector<16x8xf32>
    %cst_79 = arith.constant dense<0.000000e+00> : vector<16x16xf32>
    %253 = tpu.matmul %250, %251, %cst_79 {dimension_numbers = #tpu.dot_dimension_numbers<[1], [1], [0], [0], [0, 0, 1, 0], [], []>} : vector<16x8xf32>, vector<16x8xf32>, vector<16x16xf32> -> vector<16x16xf32>
    %cst_80 = arith.constant 0.353553385 : f32
    %254 = vector.broadcast %cst_80 : f32 to vector<16x16xf32>
    %255 = arith.mulf %253, %254 : vector<16x16xf32>
    %256 = vector.broadcast %226 : vector<1x16xf32> to vector<16x16xf32>
    %257 = arith.addf %255, %256 : vector<16x16xf32>
    %cst_81 = arith.constant dense<0xFF800000> : vector<16xf32>
    %258 = vector.multi_reduction <maximumf>, %257, %cst_81 [1] : vector<16x16xf32> to vector<16xf32>
    %259 = vector.shape_cast %258 : vector<16xf32> to vector<16x1xf32>
    %260 = vector.broadcast %259 : vector<16x1xf32> to vector<16x16xf32>
    %261 = arith.subf %257, %260 : vector<16x16xf32>
    %262 = math.exp %261 : vector<16x16xf32>
    %cst_82 = arith.constant dense<0.000000e+00> : vector<16xf32>
    %263 = vector.multi_reduction <add>, %262, %cst_82 [1] : vector<16x16xf32> to vector<16xf32>
    %264 = vector.shape_cast %263 : vector<16xf32> to vector<16x1xf32>
    %265 = vector.broadcast %264 : vector<16x1xf32> to vector<16x16xf32>
    %266 = arith.divf %262, %265 : vector<16x16xf32>
    %cst_83 = arith.constant dense<0.000000e+00> : vector<16x8xf32>
    %267 = tpu.matmul %266, %252, %cst_83 {dimension_numbers = #tpu.dot_dimension_numbers<[1], [0], [0], [1], [0, 0, 1, 1], [], []>} : vector<16x16xf32>, vector<16x8xf32>, vector<16x8xf32> -> vector<16x8xf32>
    %268 = vector.extract_strided_slice %38 {offsets = [8, 0], sizes = [8, 32], strides = [1, 1]} : vector<32x32xf32> to vector<8x32xf32>
    %cst_84 = arith.constant dense<0.000000e+00> : vector<16x32xf32>
    %269 = tpu.matmul %267, %268, %cst_84 {dimension_numbers = #tpu.dot_dimension_numbers<[1], [0], [0], [1], [0, 0, 1, 1], [], []>} : vector<16x8xf32>, vector<8x32xf32>, vector<16x32xf32> -> vector<16x32xf32>
    %270 = arith.addf %249, %269 : vector<16x32xf32>
    %271 = vector.extract_strided_slice %227 {offsets = [0, 16], sizes = [16, 8], strides = [1, 1]} : vector<16x96xf32> to vector<16x8xf32>
    %272 = vector.extract_strided_slice %227 {offsets = [0, 48], sizes = [16, 8], strides = [1, 1]} : vector<16x96xf32> to vector<16x8xf32>
    %273 = vector.extract_strided_slice %227 {offsets = [0, 80], sizes = [16, 8], strides = [1, 1]} : vector<16x96xf32> to vector<16x8xf32>
    %cst_85 = arith.constant dense<0.000000e+00> : vector<16x16xf32>
    %274 = tpu.matmul %271, %272, %cst_85 {dimension_numbers = #tpu.dot_dimension_numbers<[1], [1], [0], [0], [0, 0, 1, 0], [], []>} : vector<16x8xf32>, vector<16x8xf32>, vector<16x16xf32> -> vector<16x16xf32>
    %cst_86 = arith.constant 0.353553385 : f32
    %275 = vector.broadcast %cst_86 : f32 to vector<16x16xf32>
    %276 = arith.mulf %274, %275 : vector<16x16xf32>
    %277 = vector.broadcast %226 : vector<1x16xf32> to vector<16x16xf32>
    %278 = arith.addf %276, %277 : vector<16x16xf32>
    %cst_87 = arith.constant dense<0xFF800000> : vector<16xf32>
    %279 = vector.multi_reduction <maximumf>, %278, %cst_87 [1] : vector<16x16xf32> to vector<16xf32>
    %280 = vector.shape_cast %279 : vector<16xf32> to vector<16x1xf32>
    %281 = vector.broadcast %280 : vector<16x1xf32> to vector<16x16xf32>
    %282 = arith.subf %278, %281 : vector<16x16xf32>
    %283 = math.exp %282 : vector<16x16xf32>
    %cst_88 = arith.constant dense<0.000000e+00> : vector<16xf32>
    %284 = vector.multi_reduction <add>, %283, %cst_88 [1] : vector<16x16xf32> to vector<16xf32>
    %285 = vector.shape_cast %284 : vector<16xf32> to vector<16x1xf32>
    %286 = vector.broadcast %285 : vector<16x1xf32> to vector<16x16xf32>
    %287 = arith.divf %283, %286 : vector<16x16xf32>
    %cst_89 = arith.constant dense<0.000000e+00> : vector<16x8xf32>
    %288 = tpu.matmul %287, %273, %cst_89 {dimension_numbers = #tpu.dot_dimension_numbers<[1], [0], [0], [1], [0, 0, 1, 1], [], []>} : vector<16x16xf32>, vector<16x8xf32>, vector<16x8xf32> -> vector<16x8xf32>
    %289 = vector.extract_strided_slice %38 {offsets = [16, 0], sizes = [8, 32], strides = [1, 1]} : vector<32x32xf32> to vector<8x32xf32>
    %cst_90 = arith.constant dense<0.000000e+00> : vector<16x32xf32>
    %290 = tpu.matmul %288, %289, %cst_90 {dimension_numbers = #tpu.dot_dimension_numbers<[1], [0], [0], [1], [0, 0, 1, 1], [], []>} : vector<16x8xf32>, vector<8x32xf32>, vector<16x32xf32> -> vector<16x32xf32>
    %291 = arith.addf %270, %290 : vector<16x32xf32>
    %292 = vector.extract_strided_slice %227 {offsets = [0, 24], sizes = [16, 8], strides = [1, 1]} : vector<16x96xf32> to vector<16x8xf32>
    %293 = vector.extract_strided_slice %227 {offsets = [0, 56], sizes = [16, 8], strides = [1, 1]} : vector<16x96xf32> to vector<16x8xf32>
    %294 = vector.extract_strided_slice %227 {offsets = [0, 88], sizes = [16, 8], strides = [1, 1]} : vector<16x96xf32> to vector<16x8xf32>
    %cst_91 = arith.constant dense<0.000000e+00> : vector<16x16xf32>
    %295 = tpu.matmul %292, %293, %cst_91 {dimension_numbers = #tpu.dot_dimension_numbers<[1], [1], [0], [0], [0, 0, 1, 0], [], []>} : vector<16x8xf32>, vector<16x8xf32>, vector<16x16xf32> -> vector<16x16xf32>
    %cst_92 = arith.constant 0.353553385 : f32
    %296 = vector.broadcast %cst_92 : f32 to vector<16x16xf32>
    %297 = arith.mulf %295, %296 : vector<16x16xf32>
    %298 = vector.broadcast %226 : vector<1x16xf32> to vector<16x16xf32>
    %299 = arith.addf %297, %298 : vector<16x16xf32>
    %cst_93 = arith.constant dense<0xFF800000> : vector<16xf32>
    %300 = vector.multi_reduction <maximumf>, %299, %cst_93 [1] : vector<16x16xf32> to vector<16xf32>
    %301 = vector.shape_cast %300 : vector<16xf32> to vector<16x1xf32>
    %302 = vector.broadcast %301 : vector<16x1xf32> to vector<16x16xf32>
    %303 = arith.subf %299, %302 : vector<16x16xf32>
    %304 = math.exp %303 : vector<16x16xf32>
    %cst_94 = arith.constant dense<0.000000e+00> : vector<16xf32>
    %305 = vector.multi_reduction <add>, %304, %cst_94 [1] : vector<16x16xf32> to vector<16xf32>
    %306 = vector.shape_cast %305 : vector<16xf32> to vector<16x1xf32>
    %307 = vector.broadcast %306 : vector<16x1xf32> to vector<16x16xf32>
    %308 = arith.divf %304, %307 : vector<16x16xf32>
    %cst_95 = arith.constant dense<0.000000e+00> : vector<16x8xf32>
    %309 = tpu.matmul %308, %294, %cst_95 {dimension_numbers = #tpu.dot_dimension_numbers<[1], [0], [0], [1], [0, 0, 1, 1], [], []>} : vector<16x16xf32>, vector<16x8xf32>, vector<16x8xf32> -> vector<16x8xf32>
    %310 = vector.extract_strided_slice %38 {offsets = [24, 0], sizes = [8, 32], strides = [1, 1]} : vector<32x32xf32> to vector<8x32xf32>
    %cst_96 = arith.constant dense<0.000000e+00> : vector<16x32xf32>
    %311 = tpu.matmul %309, %310, %cst_96 {dimension_numbers = #tpu.dot_dimension_numbers<[1], [0], [0], [1], [0, 0, 1, 1], [], []>} : vector<16x8xf32>, vector<8x32xf32>, vector<16x32xf32> -> vector<16x32xf32>
    %312 = arith.addf %291, %311 : vector<16x32xf32>
    %313 = vector.extract_strided_slice %39 {offsets = [3, 0], sizes = [1, 16], strides = [1, 1]} : vector<4x16xf32> to vector<1x16xf32>
    %cst_97 = arith.constant 1.000000e+00 : f32
    %314 = vector.broadcast %cst_97 : f32 to vector<1x16xf32>
    %315 = arith.subf %314, %313 : vector<1x16xf32>
    %cst_98 = arith.constant -1.000000e+09 : f32
    %316 = vector.broadcast %cst_98 : f32 to vector<1x16xf32>
    %317 = arith.mulf %315, %316 : vector<1x16xf32>
    %318 = vector.extract_strided_slice %37 {offsets = [48, 0], sizes = [16, 96], strides = [1, 1]} : vector<64x96xf32> to vector<16x96xf32>
    %cst_99 = arith.constant 0.000000e+00 : f32
    %319 = vector.broadcast %cst_99 : f32 to vector<16x32xf32>
    %320 = vector.extract_strided_slice %318 {offsets = [0, 0], sizes = [16, 8], strides = [1, 1]} : vector<16x96xf32> to vector<16x8xf32>
    %321 = vector.extract_strided_slice %318 {offsets = [0, 32], sizes = [16, 8], strides = [1, 1]} : vector<16x96xf32> to vector<16x8xf32>
    %322 = vector.extract_strided_slice %318 {offsets = [0, 64], sizes = [16, 8], strides = [1, 1]} : vector<16x96xf32> to vector<16x8xf32>
    %cst_100 = arith.constant dense<0.000000e+00> : vector<16x16xf32>
    %323 = tpu.matmul %320, %321, %cst_100 {dimension_numbers = #tpu.dot_dimension_numbers<[1], [1], [0], [0], [0, 0, 1, 0], [], []>} : vector<16x8xf32>, vector<16x8xf32>, vector<16x16xf32> -> vector<16x16xf32>
    %cst_101 = arith.constant 0.353553385 : f32
    %324 = vector.broadcast %cst_101 : f32 to vector<16x16xf32>
    %325 = arith.mulf %323, %324 : vector<16x16xf32>
    %326 = vector.broadcast %317 : vector<1x16xf32> to vector<16x16xf32>
    %327 = arith.addf %325, %326 : vector<16x16xf32>
    %cst_102 = arith.constant dense<0xFF800000> : vector<16xf32>
    %328 = vector.multi_reduction <maximumf>, %327, %cst_102 [1] : vector<16x16xf32> to vector<16xf32>
    %329 = vector.shape_cast %328 : vector<16xf32> to vector<16x1xf32>
    %330 = vector.broadcast %329 : vector<16x1xf32> to vector<16x16xf32>
    %331 = arith.subf %327, %330 : vector<16x16xf32>
    %332 = math.exp %331 : vector<16x16xf32>
    %cst_103 = arith.constant dense<0.000000e+00> : vector<16xf32>
    %333 = vector.multi_reduction <add>, %332, %cst_103 [1] : vector<16x16xf32> to vector<16xf32>
    %334 = vector.shape_cast %333 : vector<16xf32> to vector<16x1xf32>
    %335 = vector.broadcast %334 : vector<16x1xf32> to vector<16x16xf32>
    %336 = arith.divf %332, %335 : vector<16x16xf32>
    %cst_104 = arith.constant dense<0.000000e+00> : vector<16x8xf32>
    %337 = tpu.matmul %336, %322, %cst_104 {dimension_numbers = #tpu.dot_dimension_numbers<[1], [0], [0], [1], [0, 0, 1, 1], [], []>} : vector<16x16xf32>, vector<16x8xf32>, vector<16x8xf32> -> vector<16x8xf32>
    %338 = vector.extract_strided_slice %38 {offsets = [0, 0], sizes = [8, 32], strides = [1, 1]} : vector<32x32xf32> to vector<8x32xf32>
    %cst_105 = arith.constant dense<0.000000e+00> : vector<16x32xf32>
    %339 = tpu.matmul %337, %338, %cst_105 {dimension_numbers = #tpu.dot_dimension_numbers<[1], [0], [0], [1], [0, 0, 1, 1], [], []>} : vector<16x8xf32>, vector<8x32xf32>, vector<16x32xf32> -> vector<16x32xf32>
    %340 = arith.addf %319, %339 : vector<16x32xf32>
    %341 = vector.extract_strided_slice %318 {offsets = [0, 8], sizes = [16, 8], strides = [1, 1]} : vector<16x96xf32> to vector<16x8xf32>
    %342 = vector.extract_strided_slice %318 {offsets = [0, 40], sizes = [16, 8], strides = [1, 1]} : vector<16x96xf32> to vector<16x8xf32>
    %343 = vector.extract_strided_slice %318 {offsets = [0, 72], sizes = [16, 8], strides = [1, 1]} : vector<16x96xf32> to vector<16x8xf32>
    %cst_106 = arith.constant dense<0.000000e+00> : vector<16x16xf32>
    %344 = tpu.matmul %341, %342, %cst_106 {dimension_numbers = #tpu.dot_dimension_numbers<[1], [1], [0], [0], [0, 0, 1, 0], [], []>} : vector<16x8xf32>, vector<16x8xf32>, vector<16x16xf32> -> vector<16x16xf32>
    %cst_107 = arith.constant 0.353553385 : f32
    %345 = vector.broadcast %cst_107 : f32 to vector<16x16xf32>
    %346 = arith.mulf %344, %345 : vector<16x16xf32>
    %347 = vector.broadcast %317 : vector<1x16xf32> to vector<16x16xf32>
    %348 = arith.addf %346, %347 : vector<16x16xf32>
    %cst_108 = arith.constant dense<0xFF800000> : vector<16xf32>
    %349 = vector.multi_reduction <maximumf>, %348, %cst_108 [1] : vector<16x16xf32> to vector<16xf32>
    %350 = vector.shape_cast %349 : vector<16xf32> to vector<16x1xf32>
    %351 = vector.broadcast %350 : vector<16x1xf32> to vector<16x16xf32>
    %352 = arith.subf %348, %351 : vector<16x16xf32>
    %353 = math.exp %352 : vector<16x16xf32>
    %cst_109 = arith.constant dense<0.000000e+00> : vector<16xf32>
    %354 = vector.multi_reduction <add>, %353, %cst_109 [1] : vector<16x16xf32> to vector<16xf32>
    %355 = vector.shape_cast %354 : vector<16xf32> to vector<16x1xf32>
    %356 = vector.broadcast %355 : vector<16x1xf32> to vector<16x16xf32>
    %357 = arith.divf %353, %356 : vector<16x16xf32>
    %cst_110 = arith.constant dense<0.000000e+00> : vector<16x8xf32>
    %358 = tpu.matmul %357, %343, %cst_110 {dimension_numbers = #tpu.dot_dimension_numbers<[1], [0], [0], [1], [0, 0, 1, 1], [], []>} : vector<16x16xf32>, vector<16x8xf32>, vector<16x8xf32> -> vector<16x8xf32>
    %359 = vector.extract_strided_slice %38 {offsets = [8, 0], sizes = [8, 32], strides = [1, 1]} : vector<32x32xf32> to vector<8x32xf32>
    %cst_111 = arith.constant dense<0.000000e+00> : vector<16x32xf32>
    %360 = tpu.matmul %358, %359, %cst_111 {dimension_numbers = #tpu.dot_dimension_numbers<[1], [0], [0], [1], [0, 0, 1, 1], [], []>} : vector<16x8xf32>, vector<8x32xf32>, vector<16x32xf32> -> vector<16x32xf32>
    %361 = arith.addf %340, %360 : vector<16x32xf32>
    %362 = vector.extract_strided_slice %318 {offsets = [0, 16], sizes = [16, 8], strides = [1, 1]} : vector<16x96xf32> to vector<16x8xf32>
    %363 = vector.extract_strided_slice %318 {offsets = [0, 48], sizes = [16, 8], strides = [1, 1]} : vector<16x96xf32> to vector<16x8xf32>
    %364 = vector.extract_strided_slice %318 {offsets = [0, 80], sizes = [16, 8], strides = [1, 1]} : vector<16x96xf32> to vector<16x8xf32>
    %cst_112 = arith.constant dense<0.000000e+00> : vector<16x16xf32>
    %365 = tpu.matmul %362, %363, %cst_112 {dimension_numbers = #tpu.dot_dimension_numbers<[1], [1], [0], [0], [0, 0, 1, 0], [], []>} : vector<16x8xf32>, vector<16x8xf32>, vector<16x16xf32> -> vector<16x16xf32>
    %cst_113 = arith.constant 0.353553385 : f32
    %366 = vector.broadcast %cst_113 : f32 to vector<16x16xf32>
    %367 = arith.mulf %365, %366 : vector<16x16xf32>
    %368 = vector.broadcast %317 : vector<1x16xf32> to vector<16x16xf32>
    %369 = arith.addf %367, %368 : vector<16x16xf32>
    %cst_114 = arith.constant dense<0xFF800000> : vector<16xf32>
    %370 = vector.multi_reduction <maximumf>, %369, %cst_114 [1] : vector<16x16xf32> to vector<16xf32>
    %371 = vector.shape_cast %370 : vector<16xf32> to vector<16x1xf32>
    %372 = vector.broadcast %371 : vector<16x1xf32> to vector<16x16xf32>
    %373 = arith.subf %369, %372 : vector<16x16xf32>
    %374 = math.exp %373 : vector<16x16xf32>
    %cst_115 = arith.constant dense<0.000000e+00> : vector<16xf32>
    %375 = vector.multi_reduction <add>, %374, %cst_115 [1] : vector<16x16xf32> to vector<16xf32>
    %376 = vector.shape_cast %375 : vector<16xf32> to vector<16x1xf32>
    %377 = vector.broadcast %376 : vector<16x1xf32> to vector<16x16xf32>
    %378 = arith.divf %374, %377 : vector<16x16xf32>
    %cst_116 = arith.constant dense<0.000000e+00> : vector<16x8xf32>
    %379 = tpu.matmul %378, %364, %cst_116 {dimension_numbers = #tpu.dot_dimension_numbers<[1], [0], [0], [1], [0, 0, 1, 1], [], []>} : vector<16x16xf32>, vector<16x8xf32>, vector<16x8xf32> -> vector<16x8xf32>
    %380 = vector.extract_strided_slice %38 {offsets = [16, 0], sizes = [8, 32], strides = [1, 1]} : vector<32x32xf32> to vector<8x32xf32>
    %cst_117 = arith.constant dense<0.000000e+00> : vector<16x32xf32>
    %381 = tpu.matmul %379, %380, %cst_117 {dimension_numbers = #tpu.dot_dimension_numbers<[1], [0], [0], [1], [0, 0, 1, 1], [], []>} : vector<16x8xf32>, vector<8x32xf32>, vector<16x32xf32> -> vector<16x32xf32>
    %382 = arith.addf %361, %381 : vector<16x32xf32>
    %383 = vector.extract_strided_slice %318 {offsets = [0, 24], sizes = [16, 8], strides = [1, 1]} : vector<16x96xf32> to vector<16x8xf32>
    %384 = vector.extract_strided_slice %318 {offsets = [0, 56], sizes = [16, 8], strides = [1, 1]} : vector<16x96xf32> to vector<16x8xf32>
    %385 = vector.extract_strided_slice %318 {offsets = [0, 88], sizes = [16, 8], strides = [1, 1]} : vector<16x96xf32> to vector<16x8xf32>
    %cst_118 = arith.constant dense<0.000000e+00> : vector<16x16xf32>
    %386 = tpu.matmul %383, %384, %cst_118 {dimension_numbers = #tpu.dot_dimension_numbers<[1], [1], [0], [0], [0, 0, 1, 0], [], []>} : vector<16x8xf32>, vector<16x8xf32>, vector<16x16xf32> -> vector<16x16xf32>
    %cst_119 = arith.constant 0.353553385 : f32
    %387 = vector.broadcast %cst_119 : f32 to vector<16x16xf32>
    %388 = arith.mulf %386, %387 : vector<16x16xf32>
    %389 = vector.broadcast %317 : vector<1x16xf32> to vector<16x16xf32>
    %390 = arith.addf %388, %389 : vector<16x16xf32>
    %cst_120 = arith.constant dense<0xFF800000> : vector<16xf32>
    %391 = vector.multi_reduction <maximumf>, %390, %cst_120 [1] : vector<16x16xf32> to vector<16xf32>
    %392 = vector.shape_cast %391 : vector<16xf32> to vector<16x1xf32>
    %393 = vector.broadcast %392 : vector<16x1xf32> to vector<16x16xf32>
    %394 = arith.subf %390, %393 : vector<16x16xf32>
    %395 = math.exp %394 : vector<16x16xf32>
    %cst_121 = arith.constant dense<0.000000e+00> : vector<16xf32>
    %396 = vector.multi_reduction <add>, %395, %cst_121 [1] : vector<16x16xf32> to vector<16xf32>
    %397 = vector.shape_cast %396 : vector<16xf32> to vector<16x1xf32>
    %398 = vector.broadcast %397 : vector<16x1xf32> to vector<16x16xf32>
    %399 = arith.divf %395, %398 : vector<16x16xf32>
    %cst_122 = arith.constant dense<0.000000e+00> : vector<16x8xf32>
    %400 = tpu.matmul %399, %385, %cst_122 {dimension_numbers = #tpu.dot_dimension_numbers<[1], [0], [0], [1], [0, 0, 1, 1], [], []>} : vector<16x16xf32>, vector<16x8xf32>, vector<16x8xf32> -> vector<16x8xf32>
    %401 = vector.extract_strided_slice %38 {offsets = [24, 0], sizes = [8, 32], strides = [1, 1]} : vector<32x32xf32> to vector<8x32xf32>
    %cst_123 = arith.constant dense<0.000000e+00> : vector<16x32xf32>
    %402 = tpu.matmul %400, %401, %cst_123 {dimension_numbers = #tpu.dot_dimension_numbers<[1], [0], [0], [1], [0, 0, 1, 1], [], []>} : vector<16x8xf32>, vector<8x32xf32>, vector<16x32xf32> -> vector<16x32xf32>
    %403 = arith.addf %382, %402 : vector<16x32xf32>
    %404 = tpu.concatenate %130, %221, %312, %403 in 0 : vector<16x32xf32>, vector<16x32xf32>, vector<16x32xf32>, vector<16x32xf32> -> vector<64x32xf32>
    %405 = vector.broadcast %3 : vector<1x32xf32> to vector<64x32xf32>
    %406 = arith.addf %404, %405 : vector<64x32xf32>
    %407 = arith.addf %32, %406 : vector<64x32xf32>
    %cst_124 = arith.constant dense<0.000000e+00> : vector<64xf32>
    %408 = vector.multi_reduction <add>, %407, %cst_124 [1] : vector<64x32xf32> to vector<64xf32>
    %409 = vector.shape_cast %408 : vector<64xf32> to vector<64x1xf32>
    %cst_125 = arith.constant 3.200000e+01 : f32
    %410 = vector.broadcast %cst_125 : f32 to vector<64x1xf32>
    %411 = arith.divf %409, %410 : vector<64x1xf32>
    %412 = vector.broadcast %411 : vector<64x1xf32> to vector<64x32xf32>
    %413 = arith.subf %407, %412 : vector<64x32xf32>
    %414 = arith.mulf %413, %413 : vector<64x32xf32>
    %cst_126 = arith.constant dense<0.000000e+00> : vector<64xf32>
    %415 = vector.multi_reduction <add>, %414, %cst_126 [1] : vector<64x32xf32> to vector<64xf32>
    %416 = vector.shape_cast %415 : vector<64xf32> to vector<64x1xf32>
    %cst_127 = arith.constant 3.200000e+01 : f32
    %417 = vector.broadcast %cst_127 : f32 to vector<64x1xf32>
    %418 = arith.divf %416, %417 : vector<64x1xf32>
    %419 = vector.broadcast %411 : vector<64x1xf32> to vector<64x32xf32>
    %420 = arith.subf %407, %419 : vector<64x32xf32>
    %cst_128 = arith.constant 9.99999996E-13 : f32
    %421 = vector.broadcast %cst_128 : f32 to vector<64x1xf32>
    %422 = arith.addf %418, %421 : vector<64x1xf32>
    %423 = math.rsqrt %422 : vector<64x1xf32>
    %424 = vector.broadcast %423 : vector<64x1xf32> to vector<64x32xf32>
    %425 = arith.mulf %420, %424 : vector<64x32xf32>
    %426 = vector.broadcast %4 : vector<1x32xf32> to vector<64x32xf32>
    %427 = arith.mulf %425, %426 : vector<64x32xf32>
    %428 = vector.broadcast %5 : vector<1x32xf32> to vector<64x32xf32>
    %429 = arith.addf %427, %428 : vector<64x32xf32>
    %c0_129 = arith.constant 0 : index
    %c0_130 = arith.constant 0 : index
    %430 = vector.load %arg5[%c0_129, %c0_130] : memref<32x64xf32, #tpu.memory_space<vmem>>, vector<32x64xf32>
    %cst_131 = arith.constant dense<0.000000e+00> : vector<64x64xf32>
    %431 = tpu.matmul %429, %430, %cst_131 {dimension_numbers = #tpu.dot_dimension_numbers<[1], [0], [0], [1], [0, 0, 1, 1], [], []>} : vector<64x32xf32>, vector<32x64xf32>, vector<64x64xf32> -> vector<64x64xf32>
    %c0_132 = arith.constant 0 : index
    %c0_133 = arith.constant 0 : index
    %432 = vector.load %arg6[%c0_132, %c0_133] : memref<1x64xf32, #tpu.memory_space<vmem>>, vector<1x64xf32>
    %433 = vector.broadcast %432 : vector<1x64xf32> to vector<64x64xf32>
    %434 = arith.addf %431, %433 : vector<64x64xf32>
    %cst_134 = arith.constant 0.707106769 : f32
    %435 = vector.broadcast %cst_134 : f32 to vector<64x64xf32>
    %436 = arith.mulf %434, %435 : vector<64x64xf32>
    %437 = math.absf %436 : vector<64x64xf32>
    %cst_135 = arith.constant 0.327591091 : f32
    %438 = vector.broadcast %cst_135 : f32 to vector<64x64xf32>
    %439 = arith.mulf %438, %437 : vector<64x64xf32>
    %cst_136 = arith.constant 1.000000e+00 : f32
    %440 = vector.broadcast %cst_136 : f32 to vector<64x64xf32>
    %441 = arith.addf %440, %439 : vector<64x64xf32>
    %cst_137 = arith.constant 1.000000e+00 : f32
    %442 = vector.broadcast %cst_137 : f32 to vector<64x64xf32>
    %443 = arith.divf %442, %441 : vector<64x64xf32>
    %cst_138 = arith.constant 1.06140542 : f32
    %444 = vector.broadcast %cst_138 : f32 to vector<64x64xf32>
    %445 = arith.mulf %443, %444 : vector<64x64xf32>
    %cst_139 = arith.constant -1.45315206 : f32
    %446 = vector.broadcast %cst_139 : f32 to vector<64x64xf32>
    %447 = arith.addf %446, %445 : vector<64x64xf32>
    %448 = arith.mulf %443, %447 : vector<64x64xf32>
    %cst_140 = arith.constant 1.42141378 : f32
    %449 = vector.broadcast %cst_140 : f32 to vector<64x64xf32>
    %450 = arith.addf %449, %448 : vector<64x64xf32>
    %451 = arith.mulf %443, %450 : vector<64x64xf32>
    %cst_141 = arith.constant -0.284496725 : f32
    %452 = vector.broadcast %cst_141 : f32 to vector<64x64xf32>
    %453 = arith.addf %452, %451 : vector<64x64xf32>
    %454 = arith.mulf %443, %453 : vector<64x64xf32>
    %cst_142 = arith.constant 0.254829586 : f32
    %455 = vector.broadcast %cst_142 : f32 to vector<64x64xf32>
    %456 = arith.addf %455, %454 : vector<64x64xf32>
    %457 = arith.mulf %443, %456 : vector<64x64xf32>
    %cst_143 = arith.constant 0.000000e+00 : f32
    %458 = vector.broadcast %cst_143 : f32 to vector<64x64xf32>
    %459 = arith.subf %458, %437 : vector<64x64xf32>
    %460 = arith.mulf %459, %437 : vector<64x64xf32>
    %461 = math.exp %460 : vector<64x64xf32>
    %462 = arith.mulf %457, %461 : vector<64x64xf32>
    %cst_144 = arith.constant 1.000000e+00 : f32
    %463 = vector.broadcast %cst_144 : f32 to vector<64x64xf32>
    %464 = arith.subf %463, %462 : vector<64x64xf32>
    %cst_145 = arith.constant 0.000000e+00 : f32
    %465 = vector.broadcast %cst_145 : f32 to vector<64x64xf32>
    %466 = arith.cmpf olt, %436, %465 : vector<64x64xf32>
    %cst_146 = arith.constant 0.000000e+00 : f32
    %467 = vector.broadcast %cst_146 : f32 to vector<64x64xf32>
    %468 = arith.subf %467, %464 : vector<64x64xf32>
    %469 = arith.select %466, %468, %464 : vector<64x64xi1>, vector<64x64xf32>
    %cst_147 = arith.constant 5.000000e-01 : f32
    %470 = vector.broadcast %cst_147 : f32 to vector<64x64xf32>
    %471 = arith.mulf %470, %434 : vector<64x64xf32>
    %cst_148 = arith.constant 1.000000e+00 : f32
    %472 = vector.broadcast %cst_148 : f32 to vector<64x64xf32>
    %473 = arith.addf %472, %469 : vector<64x64xf32>
    %474 = arith.mulf %471, %473 : vector<64x64xf32>
    %c0_149 = arith.constant 0 : index
    %c0_150 = arith.constant 0 : index
    %475 = vector.load %arg7[%c0_149, %c0_150] : memref<64x32xf32, #tpu.memory_space<vmem>>, vector<64x32xf32>
    %cst_151 = arith.constant dense<0.000000e+00> : vector<64x32xf32>
    %476 = tpu.matmul %474, %475, %cst_151 {dimension_numbers = #tpu.dot_dimension_numbers<[1], [0], [0], [1], [0, 0, 1, 1], [], []>} : vector<64x64xf32>, vector<64x32xf32>, vector<64x32xf32> -> vector<64x32xf32>
    %477 = vector.broadcast %6 : vector<1x32xf32> to vector<64x32xf32>
    %478 = arith.addf %476, %477 : vector<64x32xf32>
    %479 = arith.addf %429, %478 : vector<64x32xf32>
    %cst_152 = arith.constant dense<0.000000e+00> : vector<64xf32>
    %480 = vector.multi_reduction <add>, %479, %cst_152 [1] : vector<64x32xf32> to vector<64xf32>
    %481 = vector.shape_cast %480 : vector<64xf32> to vector<64x1xf32>
    %cst_153 = arith.constant 3.200000e+01 : f32
    %482 = vector.broadcast %cst_153 : f32 to vector<64x1xf32>
    %483 = arith.divf %481, %482 : vector<64x1xf32>
    %484 = vector.broadcast %483 : vector<64x1xf32> to vector<64x32xf32>
    %485 = arith.subf %479, %484 : vector<64x32xf32>
    %486 = arith.mulf %485, %485 : vector<64x32xf32>
    %cst_154 = arith.constant dense<0.000000e+00> : vector<64xf32>
    %487 = vector.multi_reduction <add>, %486, %cst_154 [1] : vector<64x32xf32> to vector<64xf32>
    %488 = vector.shape_cast %487 : vector<64xf32> to vector<64x1xf32>
    %cst_155 = arith.constant 3.200000e+01 : f32
    %489 = vector.broadcast %cst_155 : f32 to vector<64x1xf32>
    %490 = arith.divf %488, %489 : vector<64x1xf32>
    %491 = vector.broadcast %483 : vector<64x1xf32> to vector<64x32xf32>
    %492 = arith.subf %479, %491 : vector<64x32xf32>
    %cst_156 = arith.constant 9.99999996E-13 : f32
    %493 = vector.broadcast %cst_156 : f32 to vector<64x1xf32>
    %494 = arith.addf %490, %493 : vector<64x1xf32>
    %495 = math.rsqrt %494 : vector<64x1xf32>
    %496 = vector.broadcast %495 : vector<64x1xf32> to vector<64x32xf32>
    %497 = arith.mulf %492, %496 : vector<64x32xf32>
    %498 = vector.broadcast %7 : vector<1x32xf32> to vector<64x32xf32>
    %499 = arith.mulf %497, %498 : vector<64x32xf32>
    %500 = vector.broadcast %8 : vector<1x32xf32> to vector<64x32xf32>
    %501 = arith.addf %499, %500 : vector<64x32xf32>
    %502 = vector.extract_strided_slice %501 {offsets = [0, 0], sizes = [1, 32], strides = [1, 1]} : vector<64x32xf32> to vector<1x32xf32>
    %503 = vector.extract_strided_slice %501 {offsets = [16, 0], sizes = [1, 32], strides = [1, 1]} : vector<64x32xf32> to vector<1x32xf32>
    %504 = vector.extract_strided_slice %501 {offsets = [32, 0], sizes = [1, 32], strides = [1, 1]} : vector<64x32xf32> to vector<1x32xf32>
    %505 = vector.extract_strided_slice %501 {offsets = [48, 0], sizes = [1, 32], strides = [1, 1]} : vector<64x32xf32> to vector<1x32xf32>
    %506 = tpu.concatenate %502, %503, %504, %505 in 0 : vector<1x32xf32>, vector<1x32xf32>, vector<1x32xf32>, vector<1x32xf32> -> vector<4x32xf32>
    %c0_157 = arith.constant 0 : index
    %c0_158 = arith.constant 0 : index
    %507 = vector.load %arg8[%c0_157, %c0_158] : memref<32x32xf32, #tpu.memory_space<vmem>>, vector<32x32xf32>
    %cst_159 = arith.constant dense<0.000000e+00> : vector<4x32xf32>
    %508 = tpu.matmul %506, %507, %cst_159 {dimension_numbers = #tpu.dot_dimension_numbers<[1], [0], [0], [1], [0, 0, 1, 1], [], []>} : vector<4x32xf32>, vector<32x32xf32>, vector<4x32xf32> -> vector<4x32xf32>
    %509 = vector.broadcast %9 : vector<1x32xf32> to vector<4x32xf32>
    %510 = arith.addf %508, %509 : vector<4x32xf32>
    %511 = math.tanh %510 : vector<4x32xf32>
    %512 = vector.extract_strided_slice %501 {offsets = [16, 0], sizes = [16, 32], strides = [1, 1]} : vector<64x32xf32> to vector<16x32xf32>
    %cst_160 = arith.constant dense<0.000000e+00> : vector<32xf32>
    %513 = vector.multi_reduction <add>, %512, %cst_160 [0] : vector<16x32xf32> to vector<32xf32>
    %514 = vector.shape_cast %513 : vector<32xf32> to vector<1x32xf32>
    %515 = vector.extract_strided_slice %512 {offsets = [0, 0], sizes = [1, 32], strides = [1, 1]} : vector<16x32xf32> to vector<1x32xf32>
    %516 = arith.subf %514, %515 : vector<1x32xf32>
    %517 = vector.extract_strided_slice %512 {offsets = [15, 0], sizes = [1, 32], strides = [1, 1]} : vector<16x32xf32> to vector<1x32xf32>
    %518 = arith.subf %516, %517 : vector<1x32xf32>
    %cst_161 = arith.constant 0.0666666701 : f32
    %519 = vector.broadcast %cst_161 : f32 to vector<1x32xf32>
    %520 = arith.mulf %516, %519 : vector<1x32xf32>
    %cst_162 = arith.constant 0.0714285746 : f32
    %521 = vector.broadcast %cst_162 : f32 to vector<1x32xf32>
    %522 = arith.mulf %518, %521 : vector<1x32xf32>
    %523 = vector.extract_strided_slice %511 {offsets = [0, 0], sizes = [1, 32], strides = [1, 1]} : vector<4x32xf32> to vector<1x32xf32>
    %524 = vector.extract_strided_slice %511 {offsets = [1, 0], sizes = [1, 32], strides = [1, 1]} : vector<4x32xf32> to vector<1x32xf32>
    %525 = tpu.concatenate %523, %524, %520, %522 in 1 : vector<1x32xf32>, vector<1x32xf32>, vector<1x32xf32>, vector<1x32xf32> -> vector<1x128xf32>
    %526 = vector.extract_strided_slice %501 {offsets = [48, 0], sizes = [16, 32], strides = [1, 1]} : vector<64x32xf32> to vector<16x32xf32>
    %cst_163 = arith.constant dense<0.000000e+00> : vector<32xf32>
    %527 = vector.multi_reduction <add>, %526, %cst_163 [0] : vector<16x32xf32> to vector<32xf32>
    %528 = vector.shape_cast %527 : vector<32xf32> to vector<1x32xf32>
    %529 = vector.extract_strided_slice %526 {offsets = [0, 0], sizes = [1, 32], strides = [1, 1]} : vector<16x32xf32> to vector<1x32xf32>
    %530 = arith.subf %528, %529 : vector<1x32xf32>
    %531 = vector.extract_strided_slice %526 {offsets = [15, 0], sizes = [1, 32], strides = [1, 1]} : vector<16x32xf32> to vector<1x32xf32>
    %532 = arith.subf %530, %531 : vector<1x32xf32>
    %cst_164 = arith.constant 0.0666666701 : f32
    %533 = vector.broadcast %cst_164 : f32 to vector<1x32xf32>
    %534 = arith.mulf %530, %533 : vector<1x32xf32>
    %cst_165 = arith.constant 0.0714285746 : f32
    %535 = vector.broadcast %cst_165 : f32 to vector<1x32xf32>
    %536 = arith.mulf %532, %535 : vector<1x32xf32>
    %537 = vector.extract_strided_slice %511 {offsets = [2, 0], sizes = [1, 32], strides = [1, 1]} : vector<4x32xf32> to vector<1x32xf32>
    %538 = vector.extract_strided_slice %511 {offsets = [3, 0], sizes = [1, 32], strides = [1, 1]} : vector<4x32xf32> to vector<1x32xf32>
    %539 = tpu.concatenate %537, %538, %534, %536 in 1 : vector<1x32xf32>, vector<1x32xf32>, vector<1x32xf32>, vector<1x32xf32> -> vector<1x128xf32>
    %540 = tpu.concatenate %525, %539 in 0 : vector<1x128xf32>, vector<1x128xf32> -> vector<2x128xf32>
    %c0_166 = arith.constant 0 : index
    %c0_167 = arith.constant 0 : index
    %541 = vector.load %arg10[%c0_166, %c0_167] : memref<2x128xf32, #tpu.memory_space<vmem>>, vector<2x128xf32>
    tpu.vector_store %arg10[%c0_166, %c0_167], %540 {strides = array<i32>} : memref<2x128xf32, #tpu.memory_space<vmem>>, vector<2x128xf32>,
    return
  }
}

</mosaic_0001>

<bundles_post_ra>
// kernel: interact_extractor_forward.1
= control target key start
LH: loop header
LB: loop body
LE: loop exit
PB: predicated region body
PF: predicated region fallthrough
CT: control target
= control target key end

     0   :  { %vm46_vm0 = vcmask 261120   ;;  %s5735_s0 = inlined_call_operand.vmem [shape: f32[64,32], index: 0, kind: input, shape index: {}]   ;;  %s5736_s1 = inlined_call_operand.vmem [shape: f32[4,16], index: 1, kind: input, shape index: {}]   ;;  %s5737_s2 = inlined_call_operand.vmem [shape: f32[32,96], index: 2, kind: input, shape index: {}]   ;;  %s5738_s3 = inlined_call_operand.vmem [shape: f32[1,96], index: 3, kind: input, shape index: {}]   ;;  %s5739_s4 = inlined_call_operand.vmem [shape: f32[32,32], index: 4, kind: input, shape index: {}]   ;;  %s5740_s5 = inlined_call_operand.vmem [shape: f32[32,64], index: 5, kind: input, shape index: {}]   ;;  %s5741_s6 = inlined_call_operand.vmem [shape: f32[1,64], index: 6, kind: input, shape index: {}]   ;;  %s5742_s7 = inlined_call_operand.vmem [shape: f32[64,32], index: 7, kind: input, shape index: {}]   ;;  %s5743_s8 = inlined_call_operand.vmem [shape: f32[32,32], index: 8, kind: input, shape index: {}]   ;;  %s5744_s9 = inlined_call_operand.vmem [shape: f32[9,32], index: 9, kind: input, shape index: {}]   ;;  %s5745_s10 = inlined_call_operand.hbm [shape: f32[2,128], index: 10, kind: output, shape index: {}]  }
   0x1   :  { %v38_v0 = vld [vmem:[%s5735_s0] sm:$0xff]  ;;  %v43_v1 = vld [vmem:[%s5735_s0 + $0x28] sm:$0xff] }
   0x2   :  { %v47_v2 = vsel %vm46_vm0, %v38_v0, 0.0  ;;  %v62_v3 = vsel %vm46_vm0, %v43_v1, 0.0 }
   0x3   :  { %48 = vadd.xlane.f32.xlu0 %v47_v2  ;;  %63 = vadd.xlane.f32.xlu2 %v62_v3 }
   0x4   :  { %15 = vsyncpa [#allocation3], 0  ;;  %v39_v4 = vld [vmem:[%s5735_s0 + $0x8] sm:$0xff]  ;;  %v4278_v6 = vmov 32.0   ;;  %v44_v7 = vld [vmem:[%s5735_s0 + $0x30] sm:$0xff]  ;;  %s4279_s14 = smov 96  }
   0x5   :  { %v50_v5 = vsel %vm46_vm0, %v39_v4, 0.0  ;;  %4037 = vrcp.f32 %v4278_v6  ;;  %v65_v8 = vsel %vm46_vm0, %v44_v7, 0.0  ;;  %v45_v11 = vld [vmem:[%s5735_s0 + $0x38] sm:$0xff]  ;;  %v250_v43 = vld [vmem:[%s5737_s2 + $0x10] sm:$0xff]  ;;  %v249_v44 = vld [vmem:[%s5737_s2 + $0x8] sm:$0xff]  ;;  %s4280_s15 = smov 88  }
   0x6   :  { %v68_v12 = vsel %vm46_vm0, %v45_v11, 0.0  ;;  %v251_v42 = vld [vmem:[%s5737_s2 + $0x18] sm:$0xff]  ;;  %v248_v45 = vld [vmem:[%s5737_s2] sm:$0xff]  ;;  %s4281_s16 = smov 120   ;;  %s4283_s23 = smov 80  }
   0x7   :  { %292 = vmatpush.msra.mxu0 %v251_v42  ;;  %3930 = vmatpush.msra.mxu3 %v251_v42  ;;  %v36_v57 = vld [vmem:[%s5744_s9] sm:$0xff]  ;;  %s4284_s24 = smov 56   ;;  %s4285_s25 = smov 112  }
   0x8   :  { %v4416_v61 = vperm.slane %v36_v57, 0  ;;  %s4286_s26 = smov 72   ;;  %s4287_s27 = smov 104  }
   0x9   :  { %293 = vmatpush.msra.mxu0 %v250_v43  ;;  %3931 = vmatpush.msra.mxu3 %v250_v43  ;;  %s4288_s2 = smov 48   ;;  %s4289_s17 = smov 40  }
   0xa   :  { %s4291_s19 = smov [#allocation2]   ;;  %s3768_s22 = sshll.u32 %s5745_s10, 4  ;;  %s3769_s22 = int_to_ptr.hbm [resolvable:$true] %s3768_s22 }
   0xb   :  { %51 = vadd.xlane.f32.xlu0 %v50_v5  ;;  %v4038_v9 = vpop.eup %4037  ;;  %66 = vadd.xlane.f32.xlu2 %v65_v8 }
   0xc   :  { %v72_v10 = vmul.f32 32.0, %v4038_v9  ;;  %vm76_vm1 = vweird.f32 %v4038_v9  ;;  %294 = vmatpush.msra.mxu0 %v249_v44  ;;  %3932 = vmatpush.msra.mxu3 %v249_v44 }
   0xe   :  { %v73_v13 = vsub.f32 1.0, %v72_v10  ;;  %295 = vmatpush.msra.mxu0 %v248_v45  ;;  %3933 = vmatpush.msra.mxu3 %v248_v45 }
  0x10   :  { %v74_v14 = vmul.f32 %v4038_v9, %v73_v13 }
  0x12   :  { %v75_v15 = vadd.f32 %v4038_v9, %v74_v14 }
  0x13   :  { %69 = vadd.xlane.f32.xlu0 %v68_v12 }
  0x14   :  { %v4367_v16 = vsel %vm76_vm1, %v4038_v9, %v75_v15 }
  0x76   :  { %v49_v17 = vpop.xlane.xlu0 %48  ;;  %v64_v21 = vpop.xlane.xlu2 %63 }
  0x77   :  { %v78_v18 = vmul.f32 %v4367_v16, %v49_v17  ;;  %v83_v25 = vmul.f32 %v4367_v16, %v64_v21 }
  0x79   :  { %v4370_v19 = vsub.f32 %v38_v0, %v78_v18  ;;  %v4381_v28 = vsub.f32 %v43_v1, %v83_v25  ;;  %v4419_v1 = vperm.slane %v36_v57, 1 }
  0x7b   :  { %v94_v20 = vmul.f32 %v4370_v19, %v4370_v19  ;;  %v99_v30 = vmul.f32 %v4381_v28, %v4381_v28 }
  0x7d   :  { %v102_v22 = vsel %vm46_vm0, %v94_v20, 0.0  ;;  %v117_v31 = vsel %vm46_vm0, %v99_v30, 0.0 }
  0x7e   :  { %103 = vadd.xlane.f32.xlu1 %v102_v22  ;;  %v52_v23 = vpop.xlane.xlu0 %51  ;;  %v67_v32 = vpop.xlane.xlu2 %66 }
  0x7f   :  { %v79_v24 = vmul.f32 %v4367_v16, %v52_v23  ;;  %v84_v33 = vmul.f32 %v4367_v16, %v67_v32 }
  0x81   :  { %v4377_v26 = vsub.f32 %v39_v4, %v79_v24  ;;  %v4388_v34 = vsub.f32 %v44_v7, %v84_v33 }
  0x83   :  { %v95_v27 = vmul.f32 %v4377_v26, %v4377_v26  ;;  %v100_v35 = vmul.f32 %v4388_v34, %v4388_v34 }
  0x85   :  { %v105_v29 = vsel %vm46_vm0, %v95_v27, 0.0  ;;  %v120_v36 = vsel %vm46_vm0, %v100_v35, 0.0 }
  0x86   :  { %106 = vadd.xlane.f32.xlu1 %v105_v29  ;;  %121 = vadd.xlane.f32.xlu2 %v120_v36  ;;  %v70_v37 = vpop.xlane.xlu0 %69 }
  0x87   :  { %v85_v38 = vmul.f32 %v4367_v16, %v70_v37 }
  0x89   :  { %v4394_v39 = vsub.f32 %v45_v11, %v85_v38 }
  0x8b   :  { %v101_v40 = vmul.f32 %v4394_v39, %v4394_v39 }
  0x8d   :  { %v123_v41 = vsel %vm46_vm0, %v101_v40, 0.0 }
  0x8e   :  { %118 = vadd.xlane.f32.xlu1 %v117_v31  ;;  %124 = vadd.xlane.f32.xlu0 %v123_v41 }
  0xf1   :  { %v104_v46 = vpop.xlane.xlu1 %103 }
  0xf2   :  { %v126_v47 = vmul.f32 %v104_v46, %v4367_v16 }
  0xf4   :  { %v134_v48 = vadd.f32 1e-12, %v126_v47 }
  0xf6   :  { %4039 = vrsqrt.f32 %v134_v48  ;;  %vm148_vm3 = vweird.f32 %v134_v48 }
  0xf9   :  { %v107_v49 = vpop.xlane.xlu1 %106  ;;  %v122_v24 = vpop.xlane.xlu2 %121 }
  0xfa   :  { %v127_v50 = vmul.f32 %v107_v49, %v4367_v16  ;;  %v132_v25 = vmul.f32 %v122_v24, %v4367_v16 }
  0xfc   :  { %v4040_v51 = vpop.eup %4039  ;;  %v135_v52 = vadd.f32 1e-12, %v127_v50  ;;  %v140_v27 = vadd.f32 1e-12, %v132_v25 }
  0xfd   :  { %v143_v53 = vmul.f32 %v4040_v51, %v134_v48  ;;  %vm149_vm2 = vweird.f32 %v4040_v51 }
  0xfe   :  { %4041 = vrsqrt.f32 %v135_v52  ;;  %vm150_vm4 = vmor %vm148_vm3, %vm149_vm2  ;;  %vm158_vm6 = vweird.f32 %v135_v52  ;;  %vm208_vm11 = vweird.f32 %v140_v27  ;;  %vm334_vm2 = vcmask 64512  }
  0xff   :  { %v144_v54 = vmul.f32 %v4040_v51, %v143_v53  ;;  %vm371_vm3 = vcmask 130048  }
 0x101   :  { %v145_v55 = vmul.f32 0.5, %v144_v54  ;;  %v119_v11 = vpop.xlane.xlu1 %118  ;;  %v125_v29 = vpop.xlane.xlu0 %124 }
 0x102   :  { %v131_v12 = vmul.f32 %v119_v11, %v4367_v16  ;;  %v133_v30 = vmul.f32 %v125_v29, %v4367_v16 }
 0x103   :  { %v146_v56 = vsub.f32 1.5, %v145_v55 }
 0x104   :  { %v4042_v58 = vpop.eup %4041  ;;  %v139_v13 = vadd.f32 1e-12, %v131_v12  ;;  %v141_v32 = vadd.f32 1e-12, %v133_v30  ;;  %v325_v12 = vld [vmem:[%s5736_s1] sm:$0xf] }
 0x105   :  { %v147_v59 = vmul.f32 %v4040_v51, %v146_v56  ;;  %v153_v60 = vmul.f32 %v4042_v58, %v135_v52  ;;  %vm159_vm5 = vweird.f32 %v4042_v58  ;;  %v4461_v52 = vld [vmem:[%s5738_s3] ss:$0 sm:$0xff]  ;;  %v40_v56 = vld [vmem:[%s5735_s0 + $0x10] sm:$0xff]  ;;  %s4282_s1 = smov 64  }
 0x106   :  { %vm160_vm7 = vmor %vm158_vm6, %vm159_vm5  ;;  %4043 = vrsqrt.f32 %v139_v13  ;;  %vm198_vm8 = vweird.f32 %v139_v13  ;;  %vm218_vm14 = vweird.f32 %v141_v32  ;;  %v53_v57 = vsel %vm46_vm0, %v40_v56, 0.0 }
 0x107   :  { %v154_v62 = vmul.f32 %v4042_v58, %v153_v60  ;;  %v151_v63 = vsel %vm150_vm4, %v4040_v51, %v147_v59  ;;  %4045 = vrsqrt.f32 %v140_v27 }
 0x108   :  { %v222_v0 = vmul.f32 %v151_v63, %v4370_v19  ;;  %4047 = vrsqrt.f32 %v141_v32 }
 0x109   :  { %v155_v2 = vmul.f32 0.5, %v154_v62 }
 0x10a   :  { %v231_v3 = vmul.f32 %v4416_v61, %v222_v0 }
 0x10b   :  { %v156_v4 = vsub.f32 1.5, %v155_v2 }
 0x10c   :  { %v4423_v5 = vadd.f32 %v4419_v1, %v231_v3  ;;  %v4044_v14 = vpop.eup %4043 }
 0x10d   :  { %v157_v6 = vmul.f32 %v4042_v58, %v156_v4  ;;  %v193_v15 = vmul.f32 %v4044_v14, %v139_v13  ;;  %vm199_vm9 = vweird.f32 %v4044_v14  ;;  %v4046_v31 = vpop.eup %4045 }
 0x10e   :  { %3777 = vmatmul.msk.f32.vlgmr.msra.gmra.mxu0 %vm46_vm0, %v4423_v5  ;;  %vm200_vm10 = vmor %vm198_vm8, %vm199_vm9  ;;  %v203_v33 = vmul.f32 %v4046_v31, %v140_v27  ;;  %vm209_vm12 = vweird.f32 %v4046_v31  ;;  %v4048_v37 = vpop.eup %4047 }
 0x10f   :  { %v161_v7 = vsel %vm160_vm7, %v4042_v58, %v157_v6  ;;  %v194_v17 = vmul.f32 %v4044_v14, %v193_v15  ;;  %vm210_vm13 = vmor %vm208_vm11, %vm209_vm12  ;;  %v213_v40 = vmul.f32 %v4048_v37, %v141_v32  ;;  %vm219_vm15 = vweird.f32 %v4048_v37  ;;  %v41_v58 = vld [vmem:[%s5735_s0 + $0x18] sm:$0xff] }
 0x110   :  { %v223_v8 = vmul.f32 %v161_v7, %v4377_v26  ;;  %vm220_vm1 = vmor %vm218_vm14, %vm219_vm15  ;;  %v56_v59 = vsel %vm46_vm0, %v41_v58, 0.0 }
 0x111   :  { %v195_v18 = vmul.f32 0.5, %v194_v17  ;;  %v214_v41 = vmul.f32 %v4048_v37, %v213_v40 }
 0x112   :  { %v232_v9 = vmul.f32 %v4416_v61, %v223_v8 }
 0x113   :  { %v196_v19 = vsub.f32 1.5, %v195_v18  ;;  %v215_v44 = vmul.f32 0.5, %v214_v41 }
 0x114   :  { %v4430_v10 = vadd.f32 %v4419_v1, %v232_v9 }
 0x115   :  { %v197_v20 = vmul.f32 %v4044_v14, %v196_v19  ;;  %v216_v46 = vsub.f32 1.5, %v215_v44 }
 0x116   :  { %3778 = vmatmul.msk.f32.gmra.mxu0 %vm46_vm0, %v4430_v10 }
 0x117   :  { %v201_v21 = vsel %vm200_vm10, %v4044_v14, %v197_v20  ;;  %v217_v48 = vmul.f32 %v4048_v37, %v216_v46  ;;  %v326_v14 = vsub.f32 1.0, %v325_v12 }
 0x118   :  { %v227_v22 = vmul.f32 %v201_v21, %v4381_v28  ;;  %v204_v28 = vmul.f32 %v4046_v31, %v203_v33 }
 0x119   :  { %v221_v49 = vsel %vm220_vm1, %v4048_v37, %v217_v48  ;;  %v4508_v15 = vmul.f32 -1e+09, %v326_v14 }
 0x11a   :  { %v236_v23 = vmul.f32 %v4416_v61, %v227_v22  ;;  %v205_v35 = vmul.f32 0.5, %v204_v28  ;;  %v229_v50 = vmul.f32 %v221_v49, %v4394_v39 }
 0x11b   :  { %v4513_v18 = vperm.slane %v4508_v15, 0 }
 0x11c   :  { %v4439_v26 = vadd.f32 %v4419_v1, %v236_v23  ;;  %v206_v36 = vsub.f32 1.5, %v205_v35  ;;  %v238_v51 = vmul.f32 %v4416_v61, %v229_v50 }
 0x11e   :  { %3782 = vmatmul.msk.f32.vlgmr.msra.gmra.mxu3 %vm46_vm0, %v4439_v26  ;;  %v207_v38 = vmul.f32 %v4046_v31, %v206_v36 }
 0x120   :  { %v211_v42 = vsel %vm210_vm13, %v4046_v31, %v207_v38 }
 0x121   :  { %v228_v43 = vmul.f32 %v211_v42, %v4388_v34  ;;  %v4454_v34 = vadd.f32 %v4419_v1, %v238_v51 }
 0x123   :  { %v237_v45 = vmul.f32 %v4416_v61, %v228_v43 }
 0x125   :  { %v4447_v47 = vadd.f32 %v4419_v1, %v237_v45 }
 0x127   :  { %3783 = vmatmul.msk.f32.gmra.mxu3 %vm46_vm0, %v4447_v47 }
 0x12f   :  { %3784 = vmatmul.msk.f32.gmra.mxu3 %vm46_vm0, %v4454_v34 }
 0x18b   :  { %v297_v53 = vpop.f32.mrf.mxu0 }
 0x18c   :  { %v4464_v54 = vadd.f32 %v4461_v52, %v297_v53 }
 0x18e   :  { %330 = vrot.lane.b32.xlu2 %v4464_v54, %s4279_s14 }
 0x193   :  { %v300_v39 = vpop.f32.mrf.mxu0 }
 0x194   :  { %v4469_v55 = vadd.f32 %v4461_v52, %v300_v39 }
 0x196   :  { %461 = vrot.lane.b32.xlu0 %v4469_v55, %s4280_s15  ;;  %332 = vrot.lane.b32.xlu1 %v4469_v55, %s4279_s14 }
 0x197   :  { %459 = vrot.lane.b32.xlu2 %v4464_v54, %s4280_s15 }
 0x19e   :  { %457 = vrot.lane.b32.xlu0 %v4469_v55, %s4281_s16  ;;  %455 = vrot.lane.b32.xlu1 %v4464_v54, %s4281_s16 }
 0x1a1   :  { %v4501_v11 = vpop.f32.mrf.mxu3 }
 0x1aa   :  { %v4506_v13 = vpop.f32.mrf.mxu3 }
 0x1b2   :  { %v4510_v17 = vpop.f32.mrf.mxu3 }
 0x1c0   :  { %54 = vadd.xlane.f32.xlu2 %v53_v57 }
 0x1c8   :  { %57 = vadd.xlane.f32.xlu0 %v56_v59 }
 0x1e8   :  { %v331_v60 = vpop.permute.xlu2 %330 }
 0x1f1   :  { %v460_v0 = vpop.permute.xlu2 %459 }
 0x208   :  { %v462_v62 = vpop.permute.xlu0 %461  ;;  %v333_v63 = vpop.permute.xlu1 %332 }
 0x209   :  { %3785 = vmatpush.xpose.msk.msra.mxu1 %vm334_vm2, %v333_v63  ;;  %3791 = vmatpush.xpose.msk.msrb.mxu3 %vm334_vm2, %v462_v62 }
 0x20d   :  { %3786 = vmatpush.xpose.msk.msra.mxu1 %vm334_vm2, %v331_v60  ;;  %3792 = vmatpush.xpose.msk.msrb.mxu3 %vm334_vm2, %v460_v0 }
 0x210   :  { %v456_v2 = vpop.permute.xlu1 %455  ;;  %3787 = vmatmul.msk.f32.vlgmr.msra.gmra.mxu1 %vm334_vm2, %v4464_v54  ;;  %v458_v3 = vpop.permute.xlu0 %457 }
 0x211   :  { %3793 = vmatmul.msk.f32.vlgmr.msrb.gmra.mxu3 %vm334_vm2, %v456_v2 }
 0x218   :  { %3788 = vmatmul.msk.f32.gmra.mxu1 %vm334_vm2, %v4469_v55 }
 0x219   :  { %3794 = vmatmul.msk.f32.gmra.mxu3 %vm334_vm2, %v458_v3 }
 0x233   :  { %v55_v4 = vpop.xlane.xlu2 %54 }
 0x234   :  { %v80_v6 = vmul.f32 %v4367_v16, %v55_v4 }
 0x236   :  { %v88_v7 = vsub.f32 %v40_v56, %v80_v6 }
 0x238   :  { %v96_v8 = vmul.f32 %v88_v7, %v88_v7 }
 0x23a   :  { %v108_v9 = vsel %vm46_vm0, %v96_v8, 0.0 }
 0x23b   :  { %109 = vadd.xlane.f32.xlu2 %v108_v9  ;;  %v58_v22 = vpop.xlane.xlu0 %57 }
 0x23c   :  { %v81_v25 = vmul.f32 %v4367_v16, %v58_v22 }
 0x23e   :  { %v4519_v32 = vsub.f32 %v41_v58, %v81_v25 }
 0x240   :  { %v97_v37 = vmul.f32 %v4519_v32, %v4519_v32 }
 0x242   :  { %v111_v41 = vsel %vm46_vm0, %v97_v37, 0.0 }
 0x28d   :  { %v360_v19 = vpop.f32.mrf.mxu1 }
 0x28e   :  { %v366_v20 = vmul.f32 0.35355338, %v360_v19 }
 0x290   :  { %v369_v21 = vadd.f32 %v4513_v18, %v366_v20 }
 0x292   :  { %v372_v23 = vsel %vm371_vm3, %v369_v21, -inf }
 0x293   :  { %373 = vmax.xlane.f32.xlu1 %v372_v23 }
 0x294   :  { %v488_v24 = vpop.f32.mrf.mxu3 }
 0x295   :  { %v494_v27 = vmul.f32 0.35355338, %v488_v24  ;;  %v363_v29 = vpop.f32.mrf.mxu1 }
 0x296   :  { %v367_v30 = vmul.f32 0.35355338, %v363_v29 }
 0x297   :  { %v496_v31 = vadd.f32 %v494_v27, %v4513_v18  ;;  %v4554_v27 = vpack.i.bf16 %v4464_v54, %v4469_v55 }
 0x298   :  { %v370_v33 = vadd.f32 %v4513_v18, %v367_v30 }
 0x299   :  { %v498_v28 = vsel %vm371_vm3, %v496_v31, -inf }
 0x29a   :  { %v375_v35 = vsel %vm371_vm3, %v370_v33, -inf }
 0x29b   :  { %499 = vmax.xlane.f32.xlu1 %v498_v28  ;;  %376 = vmax.xlane.f32.xlu2 %v375_v35 }
 0x29c   :  { %v491_v36 = vpop.f32.mrf.mxu3 }
 0x29d   :  { %v495_v38 = vmul.f32 0.35355338, %v491_v36 }
 0x29f   :  { %v4527_v40 = vadd.f32 %v495_v38, %v4513_v18 }
 0x2a1   :  { %v501_v42 = vsel %vm371_vm3, %v4527_v40, -inf }
 0x2a2   :  { %502 = vmax.xlane.f32.xlu0 %v501_v42 }
 0x2a3   :  { %112 = vadd.xlane.f32.xlu1 %v111_v41 }
 0x2ae   :  { %v110_v43 = vpop.xlane.xlu2 %109 }
 0x2af   :  { %v128_v44 = vmul.f32 %v110_v43, %v4367_v16 }
 0x2b1   :  { %v136_v45 = vadd.f32 1e-12, %v128_v44 }
 0x2b3   :  { %4049 = vrsqrt.f32 %v136_v45  ;;  %vm168_vm4 = vweird.f32 %v136_v45 }
 0x2b9   :  { %v4050_v46 = vpop.eup %4049 }
 0x2ba   :  { %v163_v48 = vmul.f32 %v4050_v46, %v136_v45  ;;  %vm169_vm5 = vweird.f32 %v4050_v46 }
 0x2bb   :  { %vm170_vm6 = vmor %vm168_vm4, %vm169_vm5 }
 0x2bc   :  { %v164_v49 = vmul.f32 %v4050_v46, %v163_v48 }
 0x2be   :  { %v165_v50 = vmul.f32 0.5, %v164_v49 }
 0x2c0   :  { %v166_v51 = vsub.f32 1.5, %v165_v50 }
 0x2c2   :  { %v167_v53 = vmul.f32 %v4050_v46, %v166_v51 }
 0x2c4   :  { %v171_v39 = vsel %vm170_vm6, %v4050_v46, %v167_v53 }
 0x2c5   :  { %v224_v56 = vmul.f32 %v171_v39, %v88_v7 }
 0x2c7   :  { %v233_v57 = vmul.f32 %v4416_v61, %v224_v56 }
 0x2c9   :  { %v4535_v58 = vadd.f32 %v4419_v1, %v233_v57 }
 0x2cb   :  { %3779 = vmatmul.msk.f32.gmra.mxu0 %vm46_vm0, %v4535_v58 }
 0x306   :  { %v374_v59 = vpop.xlane.xlu1 %373 }
 0x307   :  { %v378_v60 = vsub.f32 %v369_v21, %v374_v59 }
 0x309   :  { %v380_v62 = vmul.f32 1.442695, %v378_v60 }
 0x30b   :  { %4051 = vpow2.f32 %v380_v62 }
 0x30e   :  { %v500_v63 = vpop.xlane.xlu1 %499  ;;  %v377_v0 = vpop.xlane.xlu2 %376 }
 0x30f   :  { %v504_v2 = vsub.f32 %v496_v31, %v500_v63  ;;  %v379_v3 = vsub.f32 %v370_v33, %v377_v0 }
 0x311   :  { %v4539_v4 = vpop.eup %4051  ;;  %v506_v6 = vmul.f32 1.442695, %v504_v2  ;;  %v382_v7 = vmul.f32 1.442695, %v379_v3 }
 0x312   :  { %v384_v8 = vsel %vm371_vm3, %v4539_v4, 0.0 }
 0x313   :  { %4053 = vpow2.f32 %v506_v6  ;;  %385 = vadd.xlane.f32.xlu0 %v384_v8 }
 0x314   :  { %4055 = vpow2.f32 %v382_v7 }
 0x316   :  { %v113_v9 = vpop.xlane.xlu1 %112 }
 0x317   :  { %v129_v12 = vmul.f32 %v113_v9, %v4367_v16 }
 0x319   :  { %v4544_v14 = vpop.eup %4053  ;;  %v137_v19 = vadd.f32 1e-12, %v129_v12 }
 0x31a   :  { %v4546_v20 = vpop.eup %4055  ;;  %v510_v21 = vsel %vm371_vm3, %v4544_v14, 0.0 }
 0x31b   :  { %4057 = vrsqrt.f32 %v137_v19  ;;  %511 = vadd.xlane.f32.xlu1 %v510_v21  ;;  %v387_v22 = vsel %vm371_vm3, %v4546_v20, 0.0  ;;  %vm178_vm7 = vweird.f32 %v137_v19 }
 0x31c   :  { %388 = vadd.xlane.f32.xlu2 %v387_v22 }
 0x321   :  { %v4058_v23 = vpop.eup %4057 }
 0x322   :  { %v173_v24 = vmul.f32 %v4058_v23, %v137_v19  ;;  %vm179_vm8 = vweird.f32 %v4058_v23 }
 0x323   :  { %vm180_vm9 = vmor %vm178_vm7, %vm179_vm8 }
 0x324   :  { %v174_v25 = vmul.f32 %v4058_v23, %v173_v24 }
 0x326   :  { %v175_v29 = vmul.f32 0.5, %v174_v25 }
 0x327   :  { %3955 = vrot.lane.b32.xlu0 %v4554_v27, %s4282_s1 }
 0x328   :  { %v176_v30 = vsub.f32 1.5, %v175_v29 }
 0x32a   :  { %v177_v31 = vmul.f32 %v4058_v23, %v176_v30 }
 0x32c   :  { %v181_v33 = vsel %vm180_vm9, %v4058_v23, %v177_v31 }
 0x32d   :  { %v225_v28 = vmul.f32 %v181_v33, %v4519_v32  ;;  %v503_v32 = vpop.xlane.xlu0 %502 }
 0x32e   :  { %v505_v41 = vsub.f32 %v4527_v40, %v503_v32 }
 0x32f   :  { %643 = vrot.lane.b32.xlu0 %v4464_v54, %s4283_s23  ;;  %v234_v35 = vmul.f32 %v4416_v61, %v225_v28 }
 0x330   :  { %v508_v42 = vmul.f32 1.442695, %v505_v41 }
 0x331   :  { %v4563_v36 = vadd.f32 %v4419_v1, %v234_v35 }
 0x332   :  { %4059 = vpow2.f32 %v508_v42 }
 0x333   :  { %3780 = vmatmul.msk.f32.gmra.mxu0 %vm46_vm0, %v4563_v36 }
 0x334   :  { %645 = vrot.lane.b32.xlu2 %v4469_v55, %s4283_s23  ;;  %3960 = vrot.lane.b32.xlu1 %v4554_v27, %s4284_s24 }
 0x337   :  { %639 = vrot.lane.b32.xlu0 %v4464_v54, %s4285_s25 }
 0x338   :  { %v4585_v43 = vpop.eup %4059 }
 0x339   :  { %v513_v44 = vsel %vm371_vm3, %v4585_v43, 0.0 }
 0x33c   :  { %641 = vrot.lane.b32.xlu1 %v4469_v55, %s4285_s25 }
 0x33f   :  { %800 = vrot.lane.b32.xlu0 %v4464_v54, %s4286_s26 }
 0x344   :  { %796 = vrot.lane.b32.xlu1 %v4464_v54, %s4287_s27 }
 0x348   :  { %v303_v37 = vpop.f32.mrf.mxu0 }
 0x349   :  { %v4580_v38 = vadd.f32 %v4461_v52, %v303_v37 }
 0x34c   :  { %955 = vrot.lane.b32.xlu1 %v4580_v38, %s4279_s14 }
 0x35d   :  { %514 = vadd.xlane.f32.xlu2 %v513_v44 }
 0x375   :  { %802 = vrot.lane.b32.xlu2 %v4469_v55, %s4286_s26 }
 0x37d   :  { %798 = vrot.lane.b32.xlu2 %v4469_v55, %s4287_s27 }
 0x386   :  { %v386_v54 = vpop.xlane.xlu0 %385 }
 0x387   :  { %4061 = vrcp.f32 %v386_v54  ;;  %v401_v53 = vand.u32 2147483648, %v386_v54  ;;  %vm395_vm11 = vweird.f32 %v386_v54  ;;  %v399_v56 = vand.u32 2147483647, %v386_v54 }
 0x389   :  { %v402_v62 = vor.u32 1.1754944e-38, %v401_v53  ;;  %vm400_vm13 = vcmp.eq.f32.partialorder %v399_v56, 8.507059e+37 }
 0x38d   :  { %v4062_v40 = vpop.eup %4061 }
 0x38e   :  { %v391_v45 = vmul.f32 %v4062_v40, %v386_v54  ;;  %v512_v46 = vpop.xlane.xlu1 %511  ;;  %vm396_vm10 = vweird.f32 %v4062_v40 }
 0x38f   :  { %4063 = vrcp.f32 %v512_v46  ;;  %v389_v48 = vpop.xlane.xlu2 %388  ;;  %vm397_vm12 = vmor %vm395_vm11, %vm396_vm10  ;;  %v527_v30 = vand.u32 2147483648, %v512_v46  ;;  %vm521_vm6 = vweird.f32 %v512_v46  ;;  %v525_v33 = vand.u32 2147483647, %v512_v46 }
 0x390   :  { %v392_v49 = vsub.f32 1.0, %v391_v45  ;;  %4065 = vrcp.f32 %v389_v48  ;;  %v416_v8 = vand.u32 2147483648, %v389_v48  ;;  %vm410_vm15 = vweird.f32 %v389_v48 }
 0x391   :  { %v414_v21 = vand.u32 2147483647, %v389_v48  ;;  %v528_v32 = vor.u32 1.1754944e-38, %v527_v30  ;;  %vm526_vm8 = vcmp.eq.f32.partialorder %v525_v33, 8.507059e+37 }
 0x392   :  { %v393_v50 = vmul.f32 %v4062_v40, %v392_v49  ;;  %v417_v24 = vor.u32 1.1754944e-38, %v416_v8 }
 0x393   :  { %vm415_vm4 = vcmp.eq.f32.partialorder %v414_v21, 8.507059e+37 }
 0x394   :  { %v394_v51 = vadd.f32 %v4062_v40, %v393_v50 }
 0x395   :  { %v4064_v39 = vpop.eup %4063 }
 0x396   :  { %v4066_v57 = vpop.eup %4065  ;;  %v517_v59 = vmul.f32 %v4064_v39, %v512_v46  ;;  %v398_v60 = vsel %vm397_vm12, %v4062_v40, %v394_v51  ;;  %vm522_vm5 = vweird.f32 %v4064_v39 }
 0x397   :  { %v406_v55 = vmul.f32 %v4066_v57, %v389_v48  ;;  %v403_v3 = vsel %vm400_vm13, %v402_v62, %v398_v60  ;;  %vm411_vm14 = vweird.f32 %v4066_v57  ;;  %vm523_vm7 = vmor %vm521_vm6, %vm522_vm5  ;;  %v646_v42 = vpop.permute.xlu2 %645 }
 0x398   :  { %v518_v6 = vsub.f32 1.0, %v517_v59  ;;  %v404_v12 = vmul.f32 %v4539_v4, %v403_v3  ;;  %vm412_vm1 = vmor %vm410_vm15, %vm411_vm14 }
 0x399   :  { %v407_v63 = vsub.f32 1.0, %v406_v55  ;;  %v3956_v0 = vpop.permute.xlu0 %3955 }
 0x39a   :  { %v3957_v2 = vunpack.i.l.bf16 %v3956_v0  ;;  %v3958_v9 = vunpack.i.h.bf16 %v3956_v0  ;;  %v519_v22 = vmul.f32 %v4064_v39, %v518_v6  ;;  %v4616_v0 = vld [vmem:[%s5739_s4] sm:$0xff] }
 0x39b   :  { %v408_v7 = vmul.f32 %v4066_v57, %v407_v63  ;;  %631 = vmatpush.msra.mxu3 %v4616_v0 }
 0x39c   :  { %446 = vmatpush.msra.mxu2 %v3957_v2  ;;  %v520_v29 = vadd.f32 %v4064_v39, %v519_v22 }
 0x39d   :  { %v409_v19 = vadd.f32 %v4066_v57, %v408_v7 }
 0x39e   :  { %447 = vmatpush.msra.mxu2 %v3958_v9  ;;  %v524_v35 = vsel %vm523_vm7, %v4064_v39, %v520_v29 }
 0x39f   :  { %3789 = vmatmul.msk.f32.vlgmr.msra.gmra.mxu2 %vm371_vm3, %v404_v12  ;;  %v413_v23 = vsel %vm412_vm1, %v4066_v57, %v409_v19  ;;  %v529_v41 = vsel %vm526_vm8, %v528_v32, %v524_v35 }
 0x3a0   :  { %v418_v25 = vsel %vm415_vm4, %v417_v24, %v413_v23  ;;  %v530_v44 = vmul.f32 %v4544_v14, %v529_v41 }
 0x3a1   :  { %v419_v31 = vmul.f32 %v4546_v20, %v418_v25  ;;  %v644_v54 = vpop.permute.xlu0 %643 }
 0x3a6   :  { %v3961_v4 = vpop.permute.xlu1 %3960 }
 0x3a7   :  { %3790 = vmatmul.msk.f32.gmra.mxu2 %vm371_vm3, %v419_v31  ;;  %v3962_v28 = vunpack.i.l.bf16 %v3961_v4  ;;  %v3963_v37 = vunpack.i.h.bf16 %v3961_v4 }
 0x3a9   :  { %572 = vmatpush.msrb.mxu2 %v3962_v28  ;;  %v640_v46 = vpop.permute.xlu0 %639 }
 0x3ab   :  { %573 = vmatpush.msrb.mxu2 %v3963_v37 }
 0x3ad   :  { %3801 = vmatpush.xpose.msk.msra.mxu2 %vm334_vm2, %v646_v42 }
 0x3ae   :  { %v642_v62 = vpop.permute.xlu1 %641 }
 0x3af   :  { %3795 = vmatmul.msk.f32.vlgmr.msrb.gmra.mxu2 %vm371_vm3, %v530_v44 }
 0x3b0   :  { %v306_v20 = vpop.f32.mrf.mxu0 }
 0x3b1   :  { %3802 = vmatpush.xpose.msk.msra.mxu2 %vm334_vm2, %v644_v54  ;;  %v4602_v40 = vadd.f32 %v4461_v52, %v306_v20  ;;  %v801_v53 = vpop.permute.xlu0 %800 }
 0x3b3   :  { %957 = vrot.lane.b32.xlu0 %v4602_v40, %s4279_s14 }
 0x3b6   :  { %v797_v63 = vpop.permute.xlu1 %796 }
 0x3be   :  { %v956_v7 = vpop.permute.xlu1 %955 }
 0x3d0   :  { %v515_v45 = vpop.xlane.xlu2 %514 }
 0x3d1   :  { %4067 = vrcp.f32 %v515_v45  ;;  %v542_v51 = vand.u32 2147483648, %v515_v45  ;;  %v540_v56 = vand.u32 2147483647, %v515_v45  ;;  %vm536_vm10 = vweird.f32 %v515_v45 }
 0x3d3   :  { %v543_v57 = vor.u32 1.1754944e-38, %v542_v51  ;;  %vm541_vm12 = vcmp.eq.f32.partialorder %v540_v56, 8.507059e+37 }
 0x3d7   :  { %v4068_v48 = vpop.eup %4067 }
 0x3d8   :  { %v532_v49 = vmul.f32 %v4068_v48, %v515_v45  ;;  %v803_v50 = vpop.permute.xlu2 %802  ;;  %vm537_vm9 = vweird.f32 %v4068_v48 }
 0x3d9   :  { %3809 = vmatpush.xpose.msk.msrb.mxu2 %vm334_vm2, %v803_v50  ;;  %vm538_vm11 = vmor %vm536_vm10, %vm537_vm9 }
 0x3da   :  { %v533_v14 = vsub.f32 1.0, %v532_v49 }
 0x3dc   :  { %v534_v39 = vmul.f32 %v4068_v48, %v533_v14 }
 0x3dd   :  { %3810 = vmatpush.xpose.msk.msrb.mxu2 %vm334_vm2, %v801_v53 }
 0x3de   :  { %v535_v52 = vadd.f32 %v4068_v48, %v534_v39 }
 0x3e0   :  { %v539_v59 = vsel %vm538_vm11, %v4068_v48, %v535_v52  ;;  %v799_v2 = vpop.permute.xlu2 %798 }
 0x3e1   :  { %v544_v55 = vsel %vm541_vm12, %v543_v57, %v539_v59 }
 0x3e2   :  { %v545_v60 = vmul.f32 %v4585_v43, %v544_v55  ;;  %v322_v43 = vld [vmem:[%s5739_s4 + $0x8] sm:$0xff] }
 0x3e3   :  { %602 = vmatpush.msrb.mxu1 %v322_v43 }
 0x3e4   :  { %3796 = vmatmul.msk.f32.gmra.mxu2 %vm371_vm3, %v545_v60 }
 0x3ec   :  { %3803 = vmatmul.msk.f32.vlgmr.msra.gmra.mxu2 %vm334_vm2, %v640_v46 }
 0x3f4   :  { %3804 = vmatmul.msk.f32.gmra.mxu2 %vm334_vm2, %v642_v62  ;;  %v4662_v62 = vld [vmem:[%s5735_s0 + $0x20] sm:$0xff] }
 0x3fc   :  { %3811 = vmatmul.msk.f32.vlgmr.msrb.gmra.mxu2 %vm334_vm2, %v797_v63 }
 0x404   :  { %3812 = vmatmul.msk.f32.gmra.mxu2 %vm334_vm2, %v799_v2  ;;  %v59_v2 = vsel %vm46_vm0, %v4662_v62, 0.0 }
 0x422   :  { %v449_v3 = vpop.f32.mrf.mxu2 }
 0x423   :  { %3799 = vmatmul.msk.f32.vlgmr.msra.gmra.mxu3 %vm334_vm2, %v449_v3  ;;  %v4667_v3 = vperm.slane %v4508_v15, 1 }
 0x425   :  { %v958_v6 = vpop.permute.xlu0 %957 }
 0x426   :  { %3817 = vmatpush.xpose.msk.msra.mxu2 %vm334_vm2, %v958_v6 }
 0x42a   :  { %v452_v8 = vpop.f32.mrf.mxu2  ;;  %3818 = vmatpush.xpose.msk.msra.mxu2 %vm334_vm2, %v956_v7 }
 0x42b   :  { %3800 = vmatmul.msk.f32.gmra.mxu3 %vm334_vm2, %v452_v8 }
 0x42d   :  { %3819 = vmatmul.msk.f32.vlgmr.msra.gmra.mxu2 %vm334_vm2, %v4580_v38 }
 0x42e   :  { %1225 = vmatpush.msrb.mxu2 %v322_v43 }
 0x432   :  { %v575_v9 = vpop.f32.mrf.mxu2 }
 0x433   :  { %3797 = vmatmul.msk.f32.vlgmr.msrb.gmra.mxu1 %vm334_vm2, %v575_v9 }
 0x435   :  { %3820 = vmatmul.msk.f32.gmra.mxu2 %vm334_vm2, %v4602_v40 }
 0x467   :  { %v578_v12 = vpop.f32.mrf.mxu2 }
 0x468   :  { %3798 = vmatmul.msk.f32.gmra.mxu1 %vm334_vm2, %v578_v12 }
 0x46f   :  { %v672_v19 = vpop.f32.mrf.mxu2 }
 0x470   :  { %v678_v21 = vmul.f32 0.35355338, %v672_v19 }
 0x472   :  { %v680_v22 = vadd.f32 %v678_v21, %v4513_v18 }
 0x474   :  { %v682_v23 = vsel %vm371_vm3, %v680_v22, -inf }
 0x475   :  { %683 = vmax.xlane.f32.xlu2 %v682_v23 }
 0x477   :  { %v675_v24 = vpop.f32.mrf.mxu2 }
 0x478   :  { %v679_v25 = vmul.f32 0.35355338, %v675_v24 }
 0x47a   :  { %v681_v29 = vadd.f32 %v679_v25, %v4513_v18 }
 0x47c   :  { %v685_v30 = vsel %vm371_vm3, %v681_v29, -inf }
 0x47d   :  { %686 = vmax.xlane.f32.xlu0 %v685_v30 }
 0x47f   :  { %v829_v31 = vpop.f32.mrf.mxu2 }
 0x480   :  { %v835_v33 = vmul.f32 0.35355338, %v829_v31 }
 0x482   :  { %v837_v4 = vadd.f32 %v835_v33, %v4513_v18 }
 0x484   :  { %v839_v28 = vsel %vm371_vm3, %v837_v4, -inf }
 0x485   :  { %840 = vmax.xlane.f32.xlu1 %v839_v28 }
 0x487   :  { %v832_v35 = vpop.f32.mrf.mxu2 }
 0x488   :  { %v836_v32 = vmul.f32 0.35355338, %v832_v35 }
 0x48a   :  { %v838_v37 = vadd.f32 %v836_v32, %v4513_v18 }
 0x48c   :  { %v842_v41 = vsel %vm371_vm3, %v838_v37, -inf }
 0x48d   :  { %843 = vmax.xlane.f32.xlu2 %v842_v41 }
 0x4b0   :  { %v984_v63 = vpop.f32.mrf.mxu2 }
 0x4b1   :  { %v990_v43 = vmul.f32 0.35355338, %v984_v63 }
 0x4b3   :  { %v4670_v6 = vadd.f32 %v4667_v3, %v990_v43 }
 0x4b5   :  { %v995_v7 = vsel %vm371_vm3, %v4670_v6, -inf }
 0x4b8   :  { %v987_v8 = vpop.f32.mrf.mxu2 }
 0x4b9   :  { %v991_v9 = vmul.f32 0.35355338, %v987_v8 }
 0x4bb   :  { %v4677_v12 = vadd.f32 %v4667_v3, %v991_v9 }
 0x4bd   :  { %v998_v19 = vsel %vm371_vm3, %v4677_v12, -inf }
 0x4e8   :  { %v684_v42 = vpop.xlane.xlu2 %683 }
 0x4e9   :  { %v688_v44 = vsub.f32 %v680_v22, %v684_v42 }
 0x4eb   :  { %v690_v54 = vmul.f32 1.442695, %v688_v44 }
 0x4ed   :  { %4069 = vpow2.f32 %v690_v54 }
 0x4f0   :  { %v687_v20 = vpop.xlane.xlu0 %686 }
 0x4f1   :  { %v689_v45 = vsub.f32 %v681_v29, %v687_v20 }
 0x4f3   :  { %v4641_v46 = vpop.eup %4069  ;;  %v692_v48 = vmul.f32 1.442695, %v689_v45 }
 0x4f4   :  { %v694_v49 = vsel %vm371_vm3, %v4641_v46, 0.0 }
 0x4f5   :  { %4071 = vpow2.f32 %v692_v48  ;;  %695 = vadd.xlane.f32.xlu0 %v694_v49 }
 0x4f8   :  { %v841_v50 = vpop.xlane.xlu1 %840 }
 0x4f9   :  { %v845_v14 = vsub.f32 %v837_v4, %v841_v50 }
 0x4fb   :  { %v4645_v18 = vpop.eup %4071  ;;  %v847_v51 = vmul.f32 1.442695, %v845_v14 }
 0x4fc   :  { %v697_v53 = vsel %vm371_vm3, %v4645_v18, 0.0 }
 0x4fd   :  { %4073 = vpow2.f32 %v847_v51  ;;  %698 = vadd.xlane.f32.xlu1 %v697_v53 }
 0x500   :  { %v844_v39 = vpop.xlane.xlu2 %843 }
 0x501   :  { %v846_v56 = vsub.f32 %v838_v37, %v844_v39 }
 0x503   :  { %v4649_v52 = vpop.eup %4073  ;;  %v849_v57 = vmul.f32 1.442695, %v846_v56 }
 0x504   :  { %v851_v59 = vsel %vm371_vm3, %v4649_v52, 0.0 }
 0x505   :  { %4075 = vpow2.f32 %v849_v57  ;;  %852 = vadd.xlane.f32.xlu2 %v851_v59 }
 0x509   :  { %3965 = vrot.lane.b32.xlu0 %v4554_v27, %s4288_s2 }
 0x50b   :  { %v4655_v55 = vpop.eup %4075 }
 0x50c   :  { %v854_v60 = vsel %vm371_vm3, %v4655_v55, 0.0 }
 0x50d   :  { %855 = vadd.xlane.f32.xlu1 %v854_v60 }
 0x515   :  { %60 = vadd.xlane.f32.xlu1 %v59_v2 }
 0x51d   :  { %3970 = vrot.lane.b32.xlu2 %v4554_v27, %s4289_s17  ;;  %996 = vmax.xlane.f32.xlu1 %v995_v7 }
 0x533   :  { %999 = vmax.xlane.f32.xlu0 %v998_v19 }
 0x547   :  { %1084 = vrot.lane.b32.xlu0 %v4602_v40, %s4280_s15 }
 0x54f   :  { %1268 = vrot.lane.b32.xlu0 %v4602_v40, %s4283_s23 }
 0x557   :  { %1262 = vrot.lane.b32.xlu0 %v4580_v38, %s4285_s25 }
 0x55f   :  { %1264 = vrot.lane.b32.xlu0 %v4602_v40, %s4285_s25 }
 0x568   :  { %v696_v27 = vpop.xlane.xlu0 %695 }
 0x569   :  { %4077 = vrcp.f32 %v696_v27  ;;  %v711_v30 = vand.u32 2147483648, %v696_v27  ;;  %vm705_vm14 = vweird.f32 %v696_v27  ;;  %v709_v33 = vand.u32 2147483647, %v696_v27 }
 0x56b   :  { %v712_v32 = vor.u32 1.1754944e-38, %v711_v30  ;;  %vm710_vm1 = vcmp.eq.f32.partialorder %v709_v33, 8.507059e+37 }
 0x56f   :  { %v4078_v21 = vpop.eup %4077 }
 0x570   :  { %v701_v22 = vmul.f32 %v4078_v21, %v696_v27  ;;  %v699_v23 = vpop.xlane.xlu1 %698  ;;  %vm706_vm13 = vweird.f32 %v4078_v21 }
 0x571   :  { %4079 = vrcp.f32 %v699_v23  ;;  %vm707_vm15 = vmor %vm705_vm14, %vm706_vm13  ;;  %v726_v48 = vand.u32 2147483648, %v699_v23  ;;  %vm720_vm5 = vweird.f32 %v699_v23  ;;  %v724_v14 = vand.u32 2147483647, %v699_v23 }
 0x572   :  { %v702_v24 = vsub.f32 1.0, %v701_v22 }
 0x573   :  { %v727_v60 = vor.u32 1.1754944e-38, %v726_v48  ;;  %vm725_vm7 = vcmp.eq.f32.partialorder %v724_v14, 8.507059e+37 }
 0x574   :  { %v703_v25 = vmul.f32 %v4078_v21, %v702_v24 }
 0x576   :  { %v704_v29 = vadd.f32 %v4078_v21, %v703_v25 }
 0x577   :  { %v4080_v31 = vpop.eup %4079 }
 0x578   :  { %v716_v4 = vmul.f32 %v4080_v31, %v699_v23  ;;  %v853_v28 = vpop.xlane.xlu2 %852  ;;  %v708_v35 = vsel %vm707_vm15, %v4078_v21, %v704_v29  ;;  %vm721_vm4 = vweird.f32 %v4080_v31 }
 0x579   :  { %4081 = vrcp.f32 %v853_v28  ;;  %v713_v44 = vsel %vm710_vm1, %v712_v32, %v708_v35  ;;  %vm722_vm6 = vmor %vm720_vm5, %vm721_vm4  ;;  %v868_v7 = vand.u32 2147483648, %v853_v28  ;;  %vm862_vm9 = vweird.f32 %v853_v28 }
 0x57a   :  { %v717_v37 = vsub.f32 1.0, %v716_v4  ;;  %v714_v50 = vmul.f32 %v4641_v46, %v713_v44  ;;  %v866_v9 = vand.u32 2147483647, %v853_v28 }
 0x57b   :  { %v3966_v41 = vpop.permute.xlu0 %3965  ;;  %v869_v24 = vor.u32 1.1754944e-38, %v868_v7 }
 0x57c   :  { %v3967_v42 = vunpack.i.l.bf16 %v3966_v41  ;;  %v718_v54 = vmul.f32 %v4080_v31, %v717_v37  ;;  %v3968_v20 = vunpack.i.h.bf16 %v3966_v41  ;;  %vm867_vm11 = vcmp.eq.f32.partialorder %v866_v9, 8.507059e+37 }
 0x57e   :  { %756 = vmatpush.msra.mxu1 %v3967_v42  ;;  %v719_v45 = vadd.f32 %v4080_v31, %v718_v54 }
 0x57f   :  { %v4082_v49 = vpop.eup %4081 }
 0x580   :  { %v858_v51 = vmul.f32 %v4082_v49, %v853_v28  ;;  %757 = vmatpush.msra.mxu1 %v3968_v20  ;;  %v856_v53 = vpop.xlane.xlu1 %855  ;;  %v3971_v39 = vpop.permute.xlu2 %3970  ;;  %v723_v57 = vsel %vm722_vm6, %v4080_v31, %v719_v45  ;;  %vm863_vm8 = vweird.f32 %v4082_v49 }
 0x581   :  { %4083 = vrcp.f32 %v856_v53  ;;  %v3972_v56 = vunpack.i.l.bf16 %v3971_v39  ;;  %3805 = vmatmul.msk.f32.vlgmr.msra.gmra.mxu1 %vm371_vm3, %v714_v50  ;;  %v3973_v63 = vunpack.i.h.bf16 %v3971_v39  ;;  %v728_v43 = vsel %vm725_vm7, %v727_v60, %v723_v57  ;;  %vm864_vm10 = vmor %vm862_vm9, %vm863_vm8  ;;  %v4747_v39 = vld [vmem:[%s5739_s4 + $0x18] sm:$0xff] }
 0x582   :  { %v859_v59 = vsub.f32 1.0, %v858_v51  ;;  %v729_v19 = vmul.f32 %v4645_v18, %v728_v43  ;;  %v883_v4 = vand.u32 2147483648, %v856_v53  ;;  %vm877_vm13 = vweird.f32 %v856_v53  ;;  %v4734_v51 = vld [vmem:[%s5739_s4 + $0x10] sm:$0xff] }
 0x583   :  { %913 = vmatpush.msrb.mxu1 %v3972_v56  ;;  %v881_v32 = vand.u32 2147483647, %v856_v53  ;;  %786 = vmatpush.msrb.mxu3 %v4734_v51 }
 0x584   :  { %v860_v2 = vmul.f32 %v4082_v49, %v859_v59  ;;  %v884_v42 = vor.u32 1.1754944e-38, %v883_v4  ;;  %1409 = vmatpush.msra.mxu2 %v4734_v51 }
 0x585   :  { %914 = vmatpush.msrb.mxu1 %v3973_v63  ;;  %vm882_vm15 = vcmp.eq.f32.partialorder %v881_v32, 8.507059e+37  ;;  %943 = vmatpush.msra.mxu3 %v4747_v39 }
 0x586   :  { %v861_v46 = vadd.f32 %v4082_v49, %v860_v2 }
 0x587   :  { %v4084_v8 = vpop.eup %4083 }
 0x588   :  { %v873_v27 = vmul.f32 %v4084_v8, %v856_v53  ;;  %v61_v21 = vpop.xlane.xlu1 %60  ;;  %v865_v22 = vsel %vm864_vm10, %v4082_v49, %v861_v46  ;;  %vm878_vm12 = vweird.f32 %v4084_v8  ;;  %v4742_v53 = vpop.f32.mrf.mxu1 }
 0x589   :  { %v82_v23 = vmul.f32 %v4367_v16, %v61_v21  ;;  %3806 = vmatmul.msk.f32.gmra.mxu1 %vm371_vm3, %v729_v19  ;;  %v870_v30 = vsel %vm867_vm11, %v869_v24, %v865_v22  ;;  %vm879_vm14 = vmor %vm877_vm13, %vm878_vm12 }
 0x58a   :  { %v874_v25 = vsub.f32 1.0, %v873_v27  ;;  %v871_v35 = vmul.f32 %v4649_v52, %v870_v30 }
 0x58b   :  { %v4695_v29 = vsub.f32 %v4662_v62, %v82_v23 }
 0x58c   :  { %v875_v31 = vmul.f32 %v4084_v8, %v874_v25 }
 0x58d   :  { %v98_v33 = vmul.f32 %v4695_v29, %v4695_v29 }
 0x58e   :  { %v876_v18 = vadd.f32 %v4084_v8, %v875_v31 }
 0x58f   :  { %v114_v28 = vsel %vm46_vm0, %v98_v33, 0.0 }
 0x590   :  { %115 = vadd.xlane.f32.xlu1 %v114_v28  ;;  %v997_v37 = vpop.xlane.xlu1 %996  ;;  %v880_v41 = vsel %vm879_vm14, %v4084_v8, %v876_v18  ;;  %v4752_v56 = vpop.f32.mrf.mxu1 }
 0x591   :  { %v1001_v62 = vsub.f32 %v4670_v6, %v997_v37  ;;  %3813 = vmatmul.msk.f32.vlgmr.msrb.gmra.mxu1 %vm371_vm3, %v871_v35  ;;  %v885_v54 = vsel %vm882_vm15, %v884_v42, %v880_v41 }
 0x592   :  { %v886_v20 = vmul.f32 %v4655_v55, %v885_v54 }
 0x593   :  { %v1003_v44 = vmul.f32 1.442695, %v1001_v62 }
 0x595   :  { %4085 = vpow2.f32 %v1003_v44 }
 0x599   :  { %3814 = vmatmul.msk.f32.gmra.mxu1 %vm371_vm3, %v886_v20 }
 0x59b   :  { %v4705_v52 = vpop.eup %4085 }
 0x59c   :  { %v1007_v45 = vsel %vm371_vm3, %v4705_v52, 0.0 }
 0x59d   :  { %1008 = vadd.xlane.f32.xlu2 %v1007_v45 }
 0x5a6   :  { %v1000_v48 = vpop.xlane.xlu0 %999 }
 0x5a7   :  { %v1002_v6 = vsub.f32 %v4677_v12, %v1000_v48  ;;  %v4723_v12 = vpack.i.bf16 %v4580_v38, %v4602_v40 }
 0x5a9   :  { %v1005_v49 = vmul.f32 1.442695, %v1002_v6 }
 0x5ab   :  { %4087 = vpow2.f32 %v1005_v49 }
 0x5b1   :  { %v4710_v50 = vpop.eup %4087 }
 0x5b2   :  { %v1010_v14 = vsel %vm371_vm3, %v4710_v50, 0.0 }
 0x5b3   :  { %1011 = vadd.xlane.f32.xlu1 %v1010_v14 }
 0x5b5   :  { %1078 = vrot.lane.b32.xlu2 %v4580_v38, %s4281_s16 }
 0x5b9   :  { %v1085_v55 = vpop.permute.xlu0 %1084 }
 0x5ba   :  { %3823 = vmatpush.xpose.msk.msra.mxu1 %vm334_vm2, %v1085_v55 }
 0x5bd   :  { %1423 = vrot.lane.b32.xlu2 %v4580_v38, %s4286_s26 }
 0x5c5   :  { %1421 = vrot.lane.b32.xlu2 %v4602_v40, %s4287_s27 }
 0x5cc   :  { %3975 = vrot.lane.b32.xlu1 %v4723_v12, %s4282_s1 }
 0x5d4   :  { %1082 = vrot.lane.b32.xlu1 %v4580_v38, %s4280_s15 }
 0x5dc   :  { %1080 = vrot.lane.b32.xlu1 %v4602_v40, %s4281_s16 }
 0x5e4   :  { %1266 = vrot.lane.b32.xlu1 %v4580_v38, %s4283_s23 }
 0x5ec   :  { %1425 = vrot.lane.b32.xlu1 %v4602_v40, %s4286_s26 }
 0x5f4   :  { %1419 = vrot.lane.b32.xlu1 %v4580_v38, %s4287_s27 }
 0x5fe   :  { %v759_v57 = vpop.f32.mrf.mxu1 }
 0x5ff   :  { %3807 = vmatmul.msk.f32.vlgmr.msrb.gmra.mxu3 %vm334_vm2, %v759_v57 }
 0x603   :  { %v116_v59 = vpop.xlane.xlu1 %115 }
 0x604   :  { %v130_v40 = vmul.f32 %v116_v59, %v4367_v16 }
 0x606   :  { %v138_v60 = vadd.f32 1e-12, %v130_v40  ;;  %v762_v63 = vpop.f32.mrf.mxu1  ;;  %v1269_v40 = vpop.permute.xlu0 %1268 }
 0x607   :  { %3808 = vmatmul.msk.f32.gmra.mxu3 %vm334_vm2, %v762_v63 }
 0x608   :  { %4089 = vrsqrt.f32 %v138_v60  ;;  %vm188_vm1 = vweird.f32 %v138_v60 }
 0x60e   :  { %v4090_v2 = vpop.eup %4089  ;;  %v916_v43 = vpop.f32.mrf.mxu1 }
 0x60f   :  { %v183_v46 = vmul.f32 %v4090_v2, %v138_v60  ;;  %3815 = vmatmul.msk.f32.vlgmr.msra.gmra.mxu3 %vm334_vm2, %v916_v43  ;;  %vm189_vm4 = vweird.f32 %v4090_v2  ;;  %v1263_v63 = vpop.permute.xlu0 %1262 }
 0x610   :  { %vm190_vm5 = vmor %vm188_vm1, %vm189_vm4  ;;  %v1009_v24 = vpop.xlane.xlu2 %1008 }
 0x611   :  { %v184_v7 = vmul.f32 %v4090_v2, %v183_v46  ;;  %4091 = vrcp.f32 %v1009_v24  ;;  %vm1018_vm8 = vweird.f32 %v1009_v24  ;;  %v1022_v62 = vand.u32 2147483647, %v1009_v24  ;;  %v633_v46 = vpop.f32.mrf.mxu3 }
 0x613   :  { %v185_v38 = vmul.f32 0.5, %v184_v7  ;;  %vm1023_vm12 = vcmp.eq.f32.partialorder %v1022_v62, 8.507059e+37 }
 0x615   :  { %v186_v8 = vsub.f32 1.5, %v185_v38 }
 0x616   :  { %v919_v9 = vpop.f32.mrf.mxu1 }
 0x617   :  { %v187_v19 = vmul.f32 %v4090_v2, %v186_v8  ;;  %3816 = vmatmul.msk.f32.gmra.mxu3 %vm334_vm2, %v919_v9  ;;  %v4092_v30 = vpop.eup %4091  ;;  %v634_v9 = vadd.f32 %v633_v46, %v4742_v53 }
 0x618   :  { %v1014_v31 = vmul.f32 %v4092_v30, %v1009_v24  ;;  %vm1019_vm6 = vweird.f32 %v4092_v30  ;;  %v1079_v60 = vpop.permute.xlu2 %1078 }
 0x619   :  { %v191_v27 = vsel %vm190_vm5, %v4090_v2, %v187_v19  ;;  %vm1020_vm9 = vmor %vm1018_vm8, %vm1019_vm6  ;;  %v636_v7 = vpop.f32.mrf.mxu3 }
 0x61a   :  { %v226_v21 = vmul.f32 %v191_v27, %v4695_v29  ;;  %v1015_v4 = vsub.f32 1.0, %v1014_v31 }
 0x61c   :  { %v235_v22 = vmul.f32 %v4416_v61, %v226_v21  ;;  %v1016_v35 = vmul.f32 %v4092_v30, %v1015_v4 }
 0x61e   :  { %v4762_v23 = vadd.f32 %v4419_v1, %v235_v22  ;;  %v1017_v61 = vadd.f32 %v4092_v30, %v1016_v35  ;;  %v1024_v1 = vand.u32 2147483648, %v1009_v24  ;;  %v637_v22 = vadd.f32 %v636_v7, %v4752_v56 }
 0x620   :  { %3781 = vmatmul.msk.f32.gmra.mxu0 %vm46_vm0, %v4762_v23  ;;  %v1021_v44 = vsel %vm1020_vm9, %v4092_v30, %v1017_v61  ;;  %v1025_v54 = vor.u32 1.1754944e-38, %v1024_v1  ;;  %v1424_v43 = vpop.permute.xlu2 %1423 }
 0x622   :  { %v1026_v49 = vsel %vm1023_vm12, %v1025_v54, %v1021_v44 }
 0x623   :  { %v1027_v55 = vmul.f32 %v4705_v52, %v1026_v49 }
 0x626   :  { %v1012_v25 = vpop.xlane.xlu1 %1011 }
 0x627   :  { %4093 = vrcp.f32 %v1012_v25  ;;  %v1039_v37 = vand.u32 2147483648, %v1012_v25  ;;  %vm1033_vm10 = vweird.f32 %v1012_v25  ;;  %v1037_v41 = vand.u32 2147483647, %v1012_v25 }
 0x629   :  { %v1040_v20 = vor.u32 1.1754944e-38, %v1039_v37  ;;  %vm1038_vm13 = vcmp.eq.f32.partialorder %v1037_v41, 8.507059e+37  ;;  %v1422_v41 = vpop.permute.xlu2 %1421 }
 0x62d   :  { %v4094_v33 = vpop.eup %4093 }
 0x62e   :  { %v1029_v18 = vmul.f32 %v4094_v33, %v1012_v25  ;;  %vm1034_vm7 = vweird.f32 %v4094_v33 }
 0x62f   :  { %vm1035_vm11 = vmor %vm1033_vm10, %vm1034_vm7 }
 0x630   :  { %v1030_v28 = vsub.f32 1.0, %v1029_v18 }
 0x632   :  { %v1031_v29 = vmul.f32 %v4094_v33, %v1030_v28 }
 0x634   :  { %v1032_v32 = vadd.f32 %v4094_v33, %v1031_v29 }
 0x636   :  { %v1036_v42 = vsel %vm1035_vm11, %v4094_v33, %v1032_v32 }
 0x637   :  { %v1041_v48 = vsel %vm1038_vm13, %v1040_v20, %v1036_v42 }
 0x638   :  { %v1042_v57 = vmul.f32 %v4710_v50, %v1041_v48 }
 0x63e   :  { %v3976_v45 = vpop.permute.xlu1 %3975 }
 0x63f   :  { %v3977_v6 = vunpack.i.l.bf16 %v3976_v45  ;;  %v3978_v14 = vunpack.i.h.bf16 %v3976_v45 }
 0x641   :  { %1069 = vmatpush.msrb.mxu0 %v3977_v6  ;;  %3934 = vmatpush.msrb.mxu3 %v3977_v6 }
 0x643   :  { %1070 = vmatpush.msrb.mxu0 %v3978_v14  ;;  %3935 = vmatpush.msrb.mxu3 %v3978_v14 }
 0x644   :  { %3821 = vmatmul.msk.f32.vlgmr.msrb.gmra.mxu0 %vm371_vm3, %v1027_v55  ;;  %3822 = vmatmul.msk.f32.vlgmr.msrb.gmra.mxu3 %vm371_vm3, %v1042_v57 }
 0x645   :  { %1254 = vmatpush.msra.mxu0 %v4616_v0  ;;  %v1265_v0 = vpop.permute.xlu0 %1264 }
 0x646   :  { %v1083_v59 = vpop.permute.xlu1 %1082 }
 0x647   :  { %3824 = vmatpush.xpose.msk.msra.mxu1 %vm334_vm2, %v1083_v59 }
 0x64a   :  { %3825 = vmatmul.msk.f32.vlgmr.msra.gmra.mxu1 %vm334_vm2, %v1079_v60 }
 0x64b   :  { %3833 = vmatpush.xpose.msk.msrb.mxu1 %vm334_vm2, %v1269_v40 }
 0x64e   :  { %v1081_v52 = vpop.permute.xlu1 %1080 }
 0x652   :  { %3826 = vmatmul.msk.f32.gmra.mxu1 %vm334_vm2, %v1081_v52 }
 0x656   :  { %v1267_v50 = vpop.permute.xlu1 %1266 }
 0x657   :  { %3834 = vmatpush.xpose.msk.msrb.mxu1 %vm334_vm2, %v1267_v50 }
 0x65a   :  { %3835 = vmatmul.msk.f32.vlgmr.msrb.gmra.mxu1 %vm334_vm2, %v1263_v63 }
 0x65e   :  { %v1426_v2 = vpop.permute.xlu1 %1425 }
 0x65f   :  { %3841 = vmatpush.xpose.msk.msrb.mxu0 %vm334_vm2, %v1426_v2 }
 0x662   :  { %3836 = vmatmul.msk.f32.gmra.mxu1 %vm334_vm2, %v1265_v0 }
 0x663   :  { %3842 = vmatpush.xpose.msk.msrb.mxu0 %vm334_vm2, %v1424_v43 }
 0x666   :  { %v1420_v61 = vpop.permute.xlu1 %1419 }
 0x682   :  { %v788_v38 = vpop.f32.mrf.mxu3 }
 0x683   :  { %v794_v19 = vadd.f32 %v788_v38, %v634_v9 }
 0x68a   :  { %v791_v8 = vpop.f32.mrf.mxu3 }
 0x68b   :  { %v795_v24 = vadd.f32 %v791_v8, %v637_v22 }
 0x692   :  { %v945_v27 = vpop.f32.mrf.mxu3 }
 0x693   :  { %v4781_v21 = vadd.f32 %v945_v27, %v794_v19 }
 0x69a   :  { %v948_v25 = vpop.f32.mrf.mxu3 }
 0x69b   :  { %v4784_v30 = vadd.f32 %v948_v25, %v795_v24 }
 0x69d   :  { %v4786_v31 = vpop.f32.mrf.mxu0 }
 0x6c1   :  { %v1072_v33 = vpop.f32.mrf.mxu0 }
 0x6c2   :  { %3831 = vmatmul.msk.f32.vlgmr.msra.gmra.mxu0 %vm334_vm2, %v1072_v33 }
 0x6c7   :  { %v1111_v18 = vpop.f32.mrf.mxu1  ;;  %v1075_v28 = vpop.f32.mrf.mxu3 }
 0x6c8   :  { %v1117_v4 = vmul.f32 0.35355338, %v1111_v18 }
 0x6ca   :  { %3832 = vmatmul.msk.f32.gmra.mxu0 %vm334_vm2, %v1075_v28  ;;  %v1119_v53 = vadd.f32 %v1117_v4, %v4667_v3 }
 0x6cc   :  { %v1121_v35 = vsel %vm371_vm3, %v1119_v53, -inf }
 0x6cd   :  { %1122 = vmax.xlane.f32.xlu0 %v1121_v35  ;;  %v4829_v35 = vld [vmem:[%s5738_s3] ss:$0 sm:$0xff] }
 0x6cf   :  { %v1114_v56 = vpop.f32.mrf.mxu1 }
 0x6d0   :  { %v1118_v29 = vmul.f32 0.35355338, %v1114_v56  ;;  %v4833_v56 = vadd.f32 %v4829_v35, %v4501_v11 }
 0x6d2   :  { %3843 = vmatmul.msk.f32.vlgmr.msrb.gmra.mxu0 %vm334_vm2, %v1420_v61  ;;  %v1120_v32 = vadd.f32 %v1118_v29, %v4667_v3  ;;  %v4839_v29 = vadd.f32 %v4829_v35, %v4786_v31 }
 0x6d4   :  { %v1124_v1 = vsel %vm371_vm3, %v1120_v32, -inf }
 0x6d5   :  { %1125 = vmax.xlane.f32.xlu1 %v1124_v1 }
 0x6d7   :  { %v1295_v37 = vpop.f32.mrf.mxu1 }
 0x6d8   :  { %v1301_v62 = vmul.f32 0.35355338, %v1295_v37 }
 0x6da   :  { %3844 = vmatmul.msk.f32.gmra.mxu0 %vm334_vm2, %v1422_v41  ;;  %v1303_v42 = vadd.f32 %v1301_v62, %v4667_v3 }
 0x6dc   :  { %v1305_v44 = vsel %vm371_vm3, %v1303_v42, -inf }
 0x6dd   :  { %1306 = vmax.xlane.f32.xlu2 %v1305_v44 }
 0x6df   :  { %v1298_v54 = vpop.f32.mrf.mxu1 }
 0x6e0   :  { %v1302_v20 = vmul.f32 0.35355338, %v1298_v54 }
 0x6e2   :  { %v1304_v45 = vadd.f32 %v1302_v20, %v4667_v3 }
 0x6e4   :  { %v1308_v48 = vsel %vm371_vm3, %v1304_v45, -inf }
 0x6e5   :  { %1309 = vmax.xlane.f32.xlu0 %v1308_v48 }
 0x73f   :  { %v4800_v6 = vpop.f32.mrf.mxu0 }
 0x740   :  { %v1123_v49 = vpop.xlane.xlu0 %1122 }
 0x741   :  { %v1127_v14 = vsub.f32 %v1119_v53, %v1123_v49 }
 0x743   :  { %v1129_v55 = vmul.f32 1.442695, %v1127_v14 }
 0x745   :  { %4095 = vpow2.f32 %v1129_v55 }
 0x747   :  { %v4802_v57 = vpop.f32.mrf.mxu0 }
 0x748   :  { %v1126_v59 = vpop.xlane.xlu1 %1125 }
 0x749   :  { %v1128_v40 = vsub.f32 %v1120_v32, %v1126_v59 }
 0x74b   :  { %v4804_v60 = vpop.eup %4095  ;;  %v1131_v52 = vmul.f32 1.442695, %v1128_v40 }
 0x74c   :  { %v1133_v50 = vsel %vm371_vm3, %v4804_v60, 0.0 }
 0x74d   :  { %4097 = vpow2.f32 %v1131_v52  ;;  %1134 = vadd.xlane.f32.xlu0 %v1133_v50 }
 0x74f   :  { %v1452_v63 = vpop.f32.mrf.mxu0 }
 0x750   :  { %v1307_v2 = vpop.xlane.xlu2 %1306  ;;  %v1458_v46 = vmul.f32 0.35355338, %v1452_v63 }
 0x751   :  { %v1311_v43 = vsub.f32 %v1303_v42, %v1307_v2 }
 0x752   :  { %v1460_v27 = vadd.f32 %v1458_v46, %v4667_v3 }
 0x753   :  { %v4808_v0 = vpop.eup %4097  ;;  %v1313_v38 = vmul.f32 1.442695, %v1311_v43 }
 0x754   :  { %v1136_v7 = vsel %vm371_vm3, %v4808_v0, 0.0  ;;  %v1462_v33 = vsel %vm371_vm3, %v1460_v27, -inf }
 0x755   :  { %1137 = vadd.xlane.f32.xlu1 %v1136_v7  ;;  %4099 = vpow2.f32 %v1313_v38 }
 0x757   :  { %v1455_v8 = vpop.f32.mrf.mxu0 }
 0x758   :  { %v1459_v9 = vmul.f32 0.35355338, %v1455_v8  ;;  %v1310_v19 = vpop.xlane.xlu0 %1309 }
 0x759   :  { %v1312_v22 = vsub.f32 %v1304_v45, %v1310_v19 }
 0x75a   :  { %v1461_v24 = vadd.f32 %v1459_v9, %v4667_v3 }
 0x75b   :  { %v1315_v25 = vmul.f32 1.442695, %v1312_v22  ;;  %v4816_v4 = vpop.eup %4099 }
 0x75c   :  { %v1465_v18 = vsel %vm371_vm3, %v1461_v24, -inf  ;;  %v1317_v3 = vsel %vm371_vm3, %v4816_v4, 0.0 }
 0x75d   :  { %4101 = vpow2.f32 %v1315_v25  ;;  %1463 = vmax.xlane.f32.xlu1 %v1462_v33  ;;  %1466 = vmax.xlane.f32.xlu2 %v1465_v18 }
 0x761   :  { %3980 = vrot.lane.b32.xlu0 %v4723_v12, %s4284_s24 }
 0x763   :  { %v4820_v28 = vpop.eup %4101 }
 0x764   :  { %v1320_v53 = vsel %vm371_vm3, %v4820_v28, 0.0 }
 0x765   :  { %1321 = vadd.xlane.f32.xlu1 %v1320_v53  ;;  %1318 = vadd.xlane.f32.xlu2 %v1317_v3 }
 0x769   :  { %1707 = vrot.lane.b32.xlu0 %v4833_v56, %s4280_s15 }
 0x771   :  { %1705 = vrot.lane.b32.xlu0 %v4839_v29, %s4280_s15 }
 0x779   :  { %1701 = vrot.lane.b32.xlu0 %v4839_v29, %s4281_s16 }
 0x77e   :  { %3990 = vrot.lane.b32.xlu1 %v4723_v12, %s4289_s17 }
 0x781   :  { %1889 = vrot.lane.b32.xlu0 %v4839_v29, %s4283_s23 }
 0x789   :  { %1580 = vrot.lane.b32.xlu0 %v4833_v56, %s4279_s14 }
 0x7c0   :  { %v1135_v11 = vpop.xlane.xlu0 %1134 }
 0x7c1   :  { %4103 = vrcp.f32 %v1135_v11  ;;  %v1150_v41 = vand.u32 2147483648, %v1135_v11  ;;  %vm1144_vm15 = vweird.f32 %v1135_v11  ;;  %v1148_v44 = vand.u32 2147483647, %v1135_v11 }
 0x7c3   :  { %v1151_v55 = vor.u32 1.1754944e-38, %v1150_v41  ;;  %vm1149_vm4 = vcmp.eq.f32.partialorder %v1148_v44, 8.507059e+37 }
 0x7c7   :  { %v4104_v61 = vpop.eup %4103 }
 0x7c8   :  { %v1140_v31 = vmul.f32 %v4104_v61, %v1135_v11  ;;  %v1138_v32 = vpop.xlane.xlu1 %1137  ;;  %vm1145_vm14 = vweird.f32 %v4104_v61 }
 0x7c9   :  { %4105 = vrcp.f32 %v1138_v32  ;;  %vm1146_vm1 = vmor %vm1144_vm15, %vm1145_vm14  ;;  %v1165_v46 = vand.u32 2147483648, %v1138_v32  ;;  %vm1159_vm6 = vweird.f32 %v1138_v32  ;;  %v1163_v9 = vand.u32 2147483647, %v1138_v32 }
 0x7ca   :  { %v1141_v1 = vsub.f32 1.0, %v1140_v31 }
 0x7cb   :  { %vm1164_vm8 = vcmp.eq.f32.partialorder %v1163_v9, 8.507059e+37 }
 0x7cc   :  { %v1142_v37 = vmul.f32 %v4104_v61, %v1141_v1 }
 0x7ce   :  { %v1143_v62 = vadd.f32 %v4104_v61, %v1142_v37 }
 0x7cf   :  { %v4106_v42 = vpop.eup %4105 }
 0x7d0   :  { %v1155_v54 = vmul.f32 %v4106_v42, %v1138_v32  ;;  %v1464_v20 = vpop.xlane.xlu1 %1463  ;;  %v1467_v45 = vpop.xlane.xlu2 %1466  ;;  %v1147_v48 = vsel %vm1146_vm1, %v4104_v61, %v1143_v62  ;;  %vm1160_vm5 = vweird.f32 %v4106_v42 }
 0x7d1   :  { %v1468_v49 = vsub.f32 %v1460_v27, %v1464_v20  ;;  %v1469_v14 = vsub.f32 %v1461_v24, %v1467_v45  ;;  %v1152_v63 = vsel %vm1149_vm4, %v1151_v55, %v1147_v48  ;;  %vm1161_vm7 = vmor %vm1159_vm6, %vm1160_vm5  ;;  %v1166_v27 = vor.u32 1.1754944e-38, %v1165_v46 }
 0x7d2   :  { %v1156_v59 = vsub.f32 1.0, %v1155_v54  ;;  %v1153_v8 = vmul.f32 %v4804_v60, %v1152_v63 }
 0x7d3   :  { %v1470_v40 = vmul.f32 1.442695, %v1468_v49  ;;  %v1472_v52 = vmul.f32 1.442695, %v1469_v14  ;;  %v3981_v50 = vpop.permute.xlu0 %3980 }
 0x7d4   :  { %v1157_v2 = vmul.f32 %v4106_v42, %v1156_v59  ;;  %v3982_v43 = vunpack.i.l.bf16 %v3981_v50  ;;  %v3983_v7 = vunpack.i.h.bf16 %v3981_v50 }
 0x7d5   :  { %4107 = vpow2.f32 %v1470_v40 }
 0x7d6   :  { %4109 = vpow2.f32 %v1472_v52  ;;  %1195 = vmatpush.msra.mxu3 %v3982_v43  ;;  %v1158_v38 = vadd.f32 %v4106_v42, %v1157_v2 }
 0x7d8   :  { %1196 = vmatpush.msra.mxu3 %v3983_v7  ;;  %v1162_v19 = vsel %vm1161_vm7, %v4106_v42, %v1158_v38  ;;  %v4863_v53 = vpop.xlane.xlu1 %1321 }
 0x7d9   :  { %3827 = vmatmul.msk.f32.vlgmr.msra.gmra.mxu3 %vm371_vm3, %v1153_v8  ;;  %v1167_v33 = vsel %vm1164_vm8, %v1166_v27, %v1162_v19  ;;  %vm1343_vm13 = vweird.f32 %v4863_v53  ;;  %v1349_v8 = vand.u32 2147483648, %v4863_v53 }
 0x7da   :  { %v1168_v18 = vmul.f32 %v4808_v0, %v1167_v33 }
 0x7db   :  { %v4853_v22 = vpop.eup %4107  ;;  %v1708_v3 = vpop.permute.xlu0 %1707 }
 0x7dc   :  { %v4855_v24 = vpop.eup %4109  ;;  %v1474_v25 = vsel %vm371_vm3, %v4853_v22, 0.0 }
 0x7dd   :  { %1475 = vadd.xlane.f32.xlu2 %v1474_v25  ;;  %v1477_v60 = vsel %vm371_vm3, %v4855_v24, 0.0 }
 0x7de   :  { %1478 = vadd.xlane.f32.xlu1 %v1477_v60  ;;  %v1347_v60 = vand.u32 2147483647, %v4863_v53 }
 0x7e0   :  { %vm1348_vm6 = vcmp.eq.f32.partialorder %v1347_v60, 8.507059e+37 }
 0x7e1   :  { %3828 = vmatmul.msk.f32.gmra.mxu3 %vm371_vm3, %v1168_v18 }
 0x7e3   :  { %v1706_v32 = vpop.permute.xlu0 %1705 }
 0x7eb   :  { %v4880_v37 = vpop.permute.xlu0 %1701 }
 0x7f0   :  { %v3991_v11 = vpop.permute.xlu1 %3990 }
 0x7f1   :  { %v3992_v61 = vunpack.i.l.bf16 %v3991_v11  ;;  %v3993_v31 = vunpack.i.h.bf16 %v3991_v11 }
 0x7f3   :  { %1536 = vmatpush.msra.mxu1 %v3992_v61  ;;  %v4889_v14 = vpop.permute.xlu0 %1889 }
 0x7f5   :  { %1537 = vmatpush.msra.mxu1 %v3993_v31  ;;  %3985 = vrot.lane.b32.xlu2 %v4723_v12, %s4288_s2  ;;  %v1319_v12 = vpop.xlane.xlu2 %1318 }
 0x7f6   :  { %4111 = vrcp.f32 %v1319_v12  ;;  %v1334_v49 = vand.u32 2147483648, %v1319_v12  ;;  %vm1328_vm10 = vweird.f32 %v1319_v12  ;;  %v1332_v55 = vand.u32 2147483647, %v1319_v12 }
 0x7f7   :  { %3855 = vmatpush.xpose.msk.msrb.mxu1 %vm334_vm2, %v1708_v3  ;;  %1891 = vrot.lane.b32.xlu1 %v4833_v56, %s4283_s23  ;;  %4113 = vrcp.f32 %v4863_v53 }
 0x7f8   :  { %v1335_v50 = vor.u32 1.1754944e-38, %v1334_v49  ;;  %vm1333_vm12 = vcmp.eq.f32.partialorder %v1332_v55, 8.507059e+37 }
 0x7fb   :  { %3856 = vmatpush.xpose.msk.msrb.mxu1 %vm334_vm2, %v1706_v32  ;;  %v1581_v31 = vpop.permute.xlu0 %1580 }
 0x7fc   :  { %v4112_v0 = vpop.eup %4111 }
 0x7fd   :  { %1703 = vrot.lane.b32.xlu2 %v4833_v56, %s4281_s16  ;;  %v1324_v1 = vmul.f32 %v4112_v0, %v1319_v12  ;;  %v4882_v41 = vpop.eup %4113  ;;  %vm1329_vm9 = vweird.f32 %v4112_v0 }
 0x7fe   :  { %v1339_v42 = vmul.f32 %v4882_v41, %v4863_v53  ;;  %vm1330_vm11 = vmor %vm1328_vm10, %vm1329_vm9  ;;  %vm1344_vm14 = vweird.f32 %v4882_v41 }
 0x7ff   :  { %1887 = vrot.lane.b32.xlu1 %v4833_v56, %s4285_s25  ;;  %v1325_v62 = vsub.f32 1.0, %v1324_v1  ;;  %vm4904_vm1 = vmor %vm1343_vm13, %vm1344_vm14  ;;  %v1350_v1 = vor.u32 1.1754944e-38, %v1349_v8 }
 0x800   :  { %v1340_v45 = vsub.f32 1.0, %v1339_v42 }
 0x801   :  { %v1326_v44 = vmul.f32 %v4112_v0, %v1325_v62 }
 0x802   :  { %v1341_v59 = vmul.f32 %v4882_v41, %v1340_v45 }
 0x803   :  { %v1327_v48 = vadd.f32 %v4112_v0, %v1326_v44 }
 0x804   :  { %v1342_v19 = vadd.f32 %v4882_v41, %v1341_v59 }
 0x805   :  { %1885 = vrot.lane.b32.xlu2 %v4839_v29, %s4285_s25  ;;  %v1331_v40 = vsel %vm1330_vm11, %v4112_v0, %v1327_v48 }
 0x806   :  { %v1336_v46 = vsel %vm1333_vm12, %v1335_v50, %v1331_v40 }
 0x807   :  { %v1337_v61 = vmul.f32 %v4816_v4, %v1336_v46  ;;  %v1346_v4 = vsel %vm4904_vm1, %v4882_v41, %v1342_v19  ;;  %v4945_v46 = vperm.slane %v4508_v15, 2 }
 0x808   :  { %v1351_v48 = vsel %vm1348_vm6, %v1350_v1, %v1346_v4 }
 0x80d   :  { %1578 = vrot.lane.b32.xlu2 %v4839_v29, %s4279_s14 }
 0x850   :  { %v1476_v54 = vpop.xlane.xlu2 %1475 }
 0x851   :  { %v4886_v20 = vpop.xlane.xlu1 %1478  ;;  %4115 = vrcp.f32 %v1476_v54  ;;  %v1491_v25 = vand.u32 2147483648, %v1476_v54  ;;  %v1489_v3 = vand.u32 2147483647, %v1476_v54  ;;  %vm1485_vm4 = vweird.f32 %v1476_v54 }
 0x852   :  { %4117 = vrcp.f32 %v4886_v20  ;;  %vm1500_vm9 = vweird.f32 %v4886_v20  ;;  %v1504_v49 = vand.u32 2147483647, %v4886_v20 }
 0x853   :  { %v1492_v62 = vor.u32 1.1754944e-38, %v1491_v25  ;;  %vm1490_vm7 = vcmp.eq.f32.partialorder %v1489_v3, 8.507059e+37 }
 0x854   :  { %vm1505_vm11 = vcmp.eq.f32.partialorder %v1504_v49, 8.507059e+37 }
 0x857   :  { %v4116_v52 = vpop.eup %4115 }
 0x858   :  { %v4118_v63 = vpop.eup %4117  ;;  %v1481_v2 = vmul.f32 %v4116_v52, %v1476_v54  ;;  %v3986_v43 = vpop.permute.xlu2 %3985  ;;  %vm1486_vm15 = vweird.f32 %v4116_v52  ;;  %v1506_v54 = vand.u32 2147483648, %v4886_v20 }
 0x859   :  { %v1496_v7 = vmul.f32 %v4118_v63, %v4886_v20  ;;  %v3987_v38 = vunpack.i.l.bf16 %v3986_v43  ;;  %v3988_v33 = vunpack.i.h.bf16 %v3986_v43  ;;  %vm1487_vm5 = vmor %vm1485_vm4, %vm1486_vm15  ;;  %vm1501_vm8 = vweird.f32 %v4118_v63 }
 0x85a   :  { %v1482_v9 = vsub.f32 1.0, %v1481_v2  ;;  %vm1502_vm10 = vmor %vm1500_vm9, %vm1501_vm8  ;;  %v1507_v40 = vor.u32 1.1754944e-38, %v1506_v54 }
 0x85b   :  { %v1497_v27 = vsub.f32 1.0, %v1496_v7  ;;  %1379 = vmatpush.msrb.mxu3 %v3987_v38 }
 0x85c   :  { %v1483_v18 = vmul.f32 %v4116_v52, %v1482_v9  ;;  %v1198_v11 = vpop.f32.mrf.mxu3 }
 0x85d   :  { %v1498_v32 = vmul.f32 %v4118_v63, %v1497_v27  ;;  %3829 = vmatmul.msk.f32.vlgmr.msrb.gmra.mxu2 %vm334_vm2, %v1198_v11  ;;  %1380 = vmatpush.msrb.mxu3 %v3988_v33 }
 0x85e   :  { %v1484_v0 = vadd.f32 %v4116_v52, %v1483_v18  ;;  %3849 = vmatpush.xpose.msk.msrb.mxu2 %vm334_vm2, %v1581_v31  ;;  %3837 = vmatmul.msk.f32.vlgmr.msrb.gmra.mxu3 %vm371_vm3, %v1337_v61 }
 0x85f   :  { %1566 = vmatpush.msra.mxu3 %v4747_v39  ;;  %v1499_v44 = vadd.f32 %v4118_v63, %v1498_v32  ;;  %v1352_v39 = vmul.f32 %v4820_v28, %v1351_v48 }
 0x860   :  { %v1488_v53 = vsel %vm1487_vm5, %v4116_v52, %v1484_v0  ;;  %v1704_v42 = vpop.permute.xlu2 %1703 }
 0x861   :  { %v1493_v45 = vsel %vm1490_vm7, %v1492_v62, %v1488_v53  ;;  %v1503_v59 = vsel %vm1502_vm10, %v4118_v63, %v1499_v44 }
 0x862   :  { %v1494_v41 = vmul.f32 %v4853_v22, %v1493_v45  ;;  %v1508_v52 = vsel %vm1505_vm11, %v1507_v40, %v1503_v59 }
 0x863   :  { %v1509_v22 = vmul.f32 %v4855_v24, %v1508_v52 }
 0x864   :  { %v1201_v55 = vpop.f32.mrf.mxu3  ;;  %3845 = vmatmul.msk.f32.vlgmr.msra.gmra.mxu1 %vm371_vm3, %v1494_v41 }
 0x865   :  { %3830 = vmatmul.msk.f32.gmra.mxu2 %vm334_vm2, %v1201_v55 }
 0x866   :  { %3838 = vmatmul.msk.f32.gmra.mxu3 %vm371_vm3, %v1352_v39 }
 0x868   :  { %v1886_v50 = vpop.permute.xlu2 %1885 }
 0x869   :  { %v1892_v2 = vpop.permute.xlu1 %1891 }
 0x86a   :  { %3865 = vmatpush.xpose.msk.msra.mxu1 %vm334_vm2, %v1892_v2 }
 0x86c   :  { %3846 = vmatmul.msk.f32.gmra.mxu1 %vm371_vm3, %v1509_v22 }
 0x86e   :  { %3866 = vmatpush.xpose.msk.msra.mxu1 %vm334_vm2, %v4889_v14  ;;  %v4939_v14 = vld [vmem:[%s5739_s4 + $0x8] sm:$0xff] }
 0x870   :  { %v1579_v28 = vpop.permute.xlu2 %1578 }
 0x871   :  { %3850 = vmatpush.xpose.msk.msrb.mxu2 %vm334_vm2, %v1579_v28  ;;  %v1888_v20 = vpop.permute.xlu1 %1887 }
 0x874   :  { %3857 = vmatmul.msk.f32.vlgmr.msrb.gmra.mxu1 %vm334_vm2, %v4880_v37 }
 0x87c   :  { %3858 = vmatmul.msk.f32.gmra.mxu1 %vm334_vm2, %v1704_v42 }
 0x884   :  { %3867 = vmatmul.msk.f32.vlgmr.msra.gmra.mxu1 %vm334_vm2, %v1886_v50 }
 0x88c   :  { %3868 = vmatmul.msk.f32.gmra.mxu1 %vm334_vm2, %v1888_v20 }
 0x8e0   :  { %v1227_v12 = vpop.f32.mrf.mxu2 }
 0x8e1   :  { %v1382_v63 = vpop.f32.mrf.mxu3  ;;  %v1539_v24 = vpop.f32.mrf.mxu1  ;;  %v1257_v4 = vadd.f32 %v4800_v6, %v1227_v12 }
 0x8e2   :  { %3839 = vmatmul.msk.f32.vlgmr.msra.gmra.mxu2 %vm334_vm2, %v1382_v63  ;;  %3847 = vmatmul.msk.f32.vlgmr.msra.gmra.mxu3 %vm334_vm2, %v1539_v24 }
 0x8e3   :  { %1848 = vmatpush.msra.mxu2 %v4939_v14 }
 0x8e8   :  { %v4960_v0 = vpop.f32.mrf.mxu2 }
 0x8e9   :  { %v1385_v37 = vpop.f32.mrf.mxu3  ;;  %v1542_v43 = vpop.f32.mrf.mxu1 }
 0x8ea   :  { %3840 = vmatmul.msk.f32.gmra.mxu2 %vm334_vm2, %v1385_v37  ;;  %3848 = vmatmul.msk.f32.gmra.mxu3 %vm334_vm2, %v1542_v43 }
 0x8f1   :  { %v1734_v7 = vpop.f32.mrf.mxu1 }
 0x8f2   :  { %v1740_v38 = vmul.f32 0.35355338, %v1734_v7  ;;  %3851 = vmatmul.msk.f32.vlgmr.msrb.gmra.mxu2 %vm334_vm2, %v4839_v29  ;;  %v4983_v7 = vpack.i.bf16 %v4839_v29, %v4833_v56 }
 0x8f3   :  { %2032 = vmatpush.msrb.mxu2 %v4734_v51 }
 0x8f4   :  { %v1742_v8 = vadd.f32 %v1740_v38, %v4945_v46 }
 0x8f6   :  { %v1744_v9 = vsel %vm371_vm3, %v1742_v8, -inf }
 0x8f7   :  { %1745 = vmax.xlane.f32.xlu1 %v1744_v9 }
 0x8f9   :  { %v1737_v19 = vpop.f32.mrf.mxu1 }
 0x8fa   :  { %v1741_v27 = vmul.f32 0.35355338, %v1737_v19  ;;  %3852 = vmatmul.msk.f32.gmra.mxu2 %vm334_vm2, %v4833_v56 }
 0x8fc   :  { %v1743_v25 = vadd.f32 %v1741_v27, %v4945_v46 }
 0x8fe   :  { %v1747_v33 = vsel %vm371_vm3, %v1743_v25, -inf }
 0x8ff   :  { %1748 = vmax.xlane.f32.xlu0 %v1747_v33 }
 0x901   :  { %v1918_v60 = vpop.f32.mrf.mxu1 }
 0x902   :  { %v1924_v18 = vmul.f32 0.35355338, %v1918_v60 }
 0x904   :  { %v1926_v3 = vadd.f32 %v1924_v18, %v4945_v46  ;;  %v5005_v18 = vadd.f32 %v4829_v35, %v4506_v13 }
 0x906   :  { %v1928_v51 = vsel %vm371_vm3, %v1926_v3, -inf }
 0x907   :  { %1929 = vmax.xlane.f32.xlu2 %v1928_v51 }
 0x909   :  { %v1921_v11 = vpop.f32.mrf.mxu1 }
 0x90a   :  { %v1925_v61 = vmul.f32 0.35355338, %v1921_v11 }
 0x90c   :  { %v1927_v31 = vadd.f32 %v1925_v61, %v4945_v46 }
 0x90e   :  { %v1931_v32 = vsel %vm371_vm3, %v1927_v31, -inf }
 0x90f   :  { %1932 = vmax.xlane.f32.xlu1 %v1931_v32 }
 0x965   :  { %v1411_v1 = vpop.f32.mrf.mxu2  ;;  %v1568_v53 = vpop.f32.mrf.mxu3 }
 0x966   :  { %v1417_v62 = vadd.f32 %v1411_v1, %v1257_v4 }
 0x968   :  { %v4963_v42 = vadd.f32 %v1568_v53, %v1417_v62 }
 0x96a   :  { %v1746_v44 = vpop.xlane.xlu1 %1745 }
 0x96b   :  { %v1750_v54 = vsub.f32 %v1742_v8, %v1746_v44 }
 0x96d   :  { %v1752_v45 = vmul.f32 1.442695, %v1750_v54  ;;  %v4973_v2 = vpop.f32.mrf.mxu2 }
 0x96f   :  { %4119 = vpow2.f32 %v1752_v45 }
 0x972   :  { %v1749_v48 = vpop.xlane.xlu0 %1748 }
 0x973   :  { %v1751_v41 = vsub.f32 %v1743_v25, %v1749_v48 }
 0x975   :  { %v4965_v49 = vpop.eup %4119  ;;  %v1754_v55 = vmul.f32 1.442695, %v1751_v41  ;;  %v1607_v37 = vpop.f32.mrf.mxu2 }
 0x976   :  { %v1756_v39 = vsel %vm371_vm3, %v4965_v49, 0.0  ;;  %v1613_v38 = vmul.f32 0.35355338, %v1607_v37 }
 0x977   :  { %4121 = vpow2.f32 %v1754_v55  ;;  %1757 = vadd.xlane.f32.xlu2 %v1756_v39 }
 0x978   :  { %v4990_v9 = vadd.f32 %v4945_v46, %v1613_v38 }
 0x97a   :  { %v1930_v6 = vpop.xlane.xlu2 %1929  ;;  %v1618_v25 = vsel %vm371_vm3, %v4990_v9, -inf }
 0x97b   :  { %v1934_v59 = vsub.f32 %v1926_v3, %v1930_v6 }
 0x97d   :  { %v4969_v40 = vpop.eup %4121  ;;  %v1936_v52 = vmul.f32 1.442695, %v1934_v59  ;;  %v1610_v19 = vpop.f32.mrf.mxu2 }
 0x97e   :  { %v1759_v50 = vsel %vm371_vm3, %v4969_v40, 0.0  ;;  %v1614_v27 = vmul.f32 0.35355338, %v1610_v19 }
 0x97f   :  { %4123 = vpow2.f32 %v1936_v52  ;;  %1760 = vadd.xlane.f32.xlu0 %v1759_v50 }
 0x980   :  { %v4995_v33 = vadd.f32 %v4945_v46, %v1614_v27 }
 0x982   :  { %v1933_v22 = vpop.xlane.xlu1 %1932  ;;  %v1621_v60 = vsel %vm371_vm3, %v4995_v33, -inf }
 0x983   :  { %v1935_v28 = vsub.f32 %v1927_v31, %v1933_v22 }
 0x985   :  { %v4975_v20 = vpop.eup %4123  ;;  %v1938_v63 = vmul.f32 1.442695, %v1935_v28 }
 0x986   :  { %v1940_v24 = vsel %vm371_vm3, %v4975_v20, 0.0 }
 0x987   :  { %4125 = vpow2.f32 %v1938_v63  ;;  %1941 = vadd.xlane.f32.xlu1 %v1940_v24 }
 0x98d   :  { %v4979_v43 = vpop.eup %4125 }
 0x98e   :  { %v1943_v8 = vsel %vm371_vm3, %v4979_v43, 0.0 }
 0x98f   :  { %3995 = vrot.lane.b32.xlu2 %v4983_v7, %s4284_s24  ;;  %1944 = vadd.xlane.f32.xlu0 %v1943_v8 }
 0x997   :  { %1619 = vmax.xlane.f32.xlu0 %v1618_v25 }
 0x99f   :  { %1622 = vmax.xlane.f32.xlu0 %v1621_v60 }
 0x9a0   :  { %4000 = vrot.lane.b32.xlu1 %v4983_v7, %s4288_s2 }
 0x9a8   :  { %4005 = vrot.lane.b32.xlu1 %v4983_v7, %s4282_s1 }
 0x9b0   :  { %2201 = vrot.lane.b32.xlu1 %v5005_v18, %s4279_s14 }
 0x9b8   :  { %2048 = vrot.lane.b32.xlu1 %v4833_v56, %s4286_s26 }
 0x9c0   :  { %2042 = vrot.lane.b32.xlu1 %v4839_v29, %s4287_s27 }
 0x9ea   :  { %v1758_v3 = vpop.xlane.xlu2 %1757 }
 0x9eb   :  { %4127 = vrcp.f32 %v1758_v3  ;;  %v1773_v13 = vand.u32 2147483648, %v1758_v3  ;;  %v1771_v1 = vand.u32 2147483647, %v1758_v3  ;;  %vm1767_vm13 = vweird.f32 %v1758_v3 }
 0x9ed   :  { %v1774_v54 = vor.u32 1.1754944e-38, %v1773_v13  ;;  %vm1772_vm15 = vcmp.eq.f32.partialorder %v1771_v1, 8.507059e+37 }
 0x9f1   :  { %v4128_v51 = vpop.eup %4127 }
 0x9f2   :  { %v1763_v11 = vmul.f32 %v4128_v51, %v1758_v3  ;;  %v1761_v61 = vpop.xlane.xlu0 %1760  ;;  %v3996_v31 = vpop.permute.xlu2 %3995  ;;  %vm1768_vm12 = vweird.f32 %v4128_v51 }
 0x9f3   :  { %4129 = vrcp.f32 %v1761_v61  ;;  %v3997_v12 = vunpack.i.l.bf16 %v3996_v31  ;;  %v3998_v62 = vunpack.i.h.bf16 %v3996_v31  ;;  %vm1769_vm14 = vmor %vm1767_vm13, %vm1768_vm12  ;;  %v1788_v59 = vand.u32 2147483648, %v1761_v61 }
 0x9f4   :  { %v1764_v32 = vsub.f32 1.0, %v1763_v11  ;;  %v1786_v50 = vand.u32 2147483647, %v1761_v61  ;;  %vm1782_vm4 = vweird.f32 %v1761_v61 }
 0x9f5   :  { %1818 = vmatpush.msrb.mxu3 %v3997_v12  ;;  %v1789_v63 = vor.u32 1.1754944e-38, %v1788_v59 }
 0x9f6   :  { %v1765_v4 = vmul.f32 %v4128_v51, %v1764_v32  ;;  %vm1787_vm6 = vcmp.eq.f32.partialorder %v1786_v50, 8.507059e+37  ;;  %v5028_v50 = vld [vmem:[%s5739_s4 + $0x18] sm:$0xff] }
 0x9f7   :  { %1819 = vmatpush.msrb.mxu3 %v3998_v62 }
 0x9f8   :  { %v1766_v53 = vadd.f32 %v4128_v51, %v1765_v4 }
 0x9f9   :  { %v4130_v44 = vpop.eup %4129 }
 0x9fa   :  { %v1770_v45 = vsel %vm1769_vm14, %v4128_v51, %v1766_v53  ;;  %v1778_v48 = vmul.f32 %v4130_v44, %v1761_v61  ;;  %v1942_v41 = vpop.xlane.xlu1 %1941  ;;  %vm1783_vm1 = vweird.f32 %v4130_v44 }
 0x9fb   :  { %v1775_v55 = vsel %vm1772_vm15, %v1774_v54, %v1770_v45  ;;  %4131 = vrcp.f32 %v1942_v41  ;;  %vm1784_vm5 = vmor %vm1782_vm4, %vm1783_vm1  ;;  %v1957_v31 = vand.u32 2147483648, %v1942_v41  ;;  %vm1951_vm8 = vweird.f32 %v1942_v41 }
 0x9fc   :  { %v1779_v39 = vsub.f32 1.0, %v1778_v48  ;;  %v1776_v6 = vmul.f32 %v4965_v49, %v1775_v55  ;;  %v1955_v12 = vand.u32 2147483647, %v1942_v41 }
 0x9fe   :  { %v1780_v52 = vmul.f32 %v4130_v44, %v1779_v39  ;;  %3859 = vmatmul.msk.f32.vlgmr.msrb.gmra.mxu3 %vm371_vm3, %v1776_v6  ;;  %vm1956_vm10 = vcmp.eq.f32.partialorder %v1955_v12, 8.507059e+37 }
 0xa00   :  { %v1781_v22 = vadd.f32 %v4130_v44, %v1780_v52 }
 0xa01   :  { %v4132_v28 = vpop.eup %4131 }
 0xa02   :  { %v1947_v24 = vmul.f32 %v4132_v28, %v1942_v41  ;;  %v1945_v37 = vpop.xlane.xlu0 %1944  ;;  %v1785_v38 = vsel %vm1784_vm5, %v4130_v44, %v1781_v22  ;;  %vm1952_vm7 = vweird.f32 %v4132_v28 }
 0xa03   :  { %4133 = vrcp.f32 %v1945_v37  ;;  %v1790_v8 = vsel %vm1787_vm6, %v1789_v63, %v1785_v38  ;;  %vm1953_vm9 = vmor %vm1951_vm8, %vm1952_vm7  ;;  %v1972_v48 = vand.u32 2147483648, %v1945_v37  ;;  %vm1966_vm12 = vweird.f32 %v1945_v37 }
 0xa04   :  { %v1948_v19 = vsub.f32 1.0, %v1947_v24  ;;  %v1791_v49 = vmul.f32 %v4969_v40, %v1790_v8  ;;  %v1958_v40 = vor.u32 1.1754944e-38, %v1957_v31  ;;  %v1970_v59 = vand.u32 2147483647, %v1945_v37  ;;  %v5037_v8 = vld [vmem:[%s5739_s4] sm:$0xff] }
 0xa05   :  { %v1973_v52 = vor.u32 1.1754944e-38, %v1972_v48 }
 0xa06   :  { %3860 = vmatmul.msk.f32.gmra.mxu3 %vm371_vm3, %v1791_v49  ;;  %v1949_v27 = vmul.f32 %v4132_v28, %v1948_v19  ;;  %vm1971_vm14 = vcmp.eq.f32.partialorder %v1970_v59, 8.507059e+37  ;;  %v5042_v19 = vadd.f32 %v4829_v35, %v4510_v17 }
 0xa08   :  { %v1950_v11 = vadd.f32 %v4132_v28, %v1949_v27 }
 0xa09   :  { %v4134_v25 = vpop.eup %4133 }
 0xa0a   :  { %v1962_v60 = vmul.f32 %v4134_v25, %v1945_v37  ;;  %v1620_v3 = vpop.xlane.xlu0 %1619  ;;  %v1954_v13 = vsel %vm1953_vm9, %v4132_v28, %v1950_v11  ;;  %vm1967_vm11 = vweird.f32 %v4134_v25 }
 0xa0b   :  { %v1624_v51 = vsub.f32 %v4990_v9, %v1620_v3  ;;  %v1959_v53 = vsel %vm1956_vm10, %v1958_v40, %v1954_v13  ;;  %vm1968_vm13 = vmor %vm1966_vm12, %vm1967_vm11 }
 0xa0c   :  { %v1963_v61 = vsub.f32 1.0, %v1962_v60  ;;  %v1960_v6 = vmul.f32 %v4975_v20, %v1959_v53 }
 0xa0d   :  { %v1626_v32 = vmul.f32 1.442695, %v1624_v51 }
 0xa0e   :  { %v1964_v4 = vmul.f32 %v4134_v25, %v1963_v61 }
 0xa0f   :  { %4135 = vpow2.f32 %v1626_v32 }
 0xa10   :  { %v1965_v9 = vadd.f32 %v4134_v25, %v1964_v4 }
 0xa12   :  { %v4001_v1 = vpop.permute.xlu1 %4000  ;;  %v1623_v62 = vpop.xlane.xlu0 %1622 }
 0xa13   :  { %v4002_v44 = vunpack.i.l.bf16 %v4001_v1  ;;  %v1625_v54 = vsub.f32 %v4995_v33, %v1623_v62  ;;  %v4003_v55 = vunpack.i.h.bf16 %v4001_v1  ;;  %v1969_v33 = vsel %vm1968_vm13, %v4134_v25, %v1965_v9 }
 0xa14   :  { %v1974_v20 = vsel %vm1971_vm14, %v1973_v52, %v1969_v33  ;;  %v4249_v52 = vld [vmem:[%s5739_s4 + $0x10] sm:$0xff] }
 0xa15   :  { %v5019_v45 = vpop.eup %4135  ;;  %v1628_v39 = vmul.f32 1.442695, %v1625_v54  ;;  %2002 = vmatpush.msra.mxu3 %v4002_v44  ;;  %v1975_v38 = vmul.f32 %v4979_v43, %v1974_v20  ;;  %v5050_v43 = vpop.f32.mrf.mxu3 }
 0xa16   :  { %v1630_v41 = vsel %vm371_vm3, %v5019_v45, 0.0 }
 0xa17   :  { %4137 = vpow2.f32 %v1628_v39  ;;  %2003 = vmatpush.msra.mxu3 %v4003_v55  ;;  %1631 = vadd.xlane.f32.xlu2 %v1630_v41 }
 0xa18   :  { %3869 = vmatmul.msk.f32.vlgmr.msra.gmra.mxu3 %vm371_vm3, %v1960_v6 }
 0xa19   :  { %2189 = vmatpush.msrb.mxu3 %v5028_v50 }
 0xa1a   :  { %v4006_v22 = vpop.permute.xlu1 %4005 }
 0xa1b   :  { %v4007_v28 = vunpack.i.l.bf16 %v4006_v22  ;;  %v4008_v24 = vunpack.i.h.bf16 %v4006_v22 }
 0xa1d   :  { %v4138_v63 = vpop.eup %4137  ;;  %1692 = vmatpush.msra.mxu0 %v4007_v28 }
 0xa1e   :  { %v1633_v37 = vsel %vm371_vm3, %v4138_v63, 0.0 }
 0xa1f   :  { %1693 = vmatpush.msra.mxu0 %v4008_v24  ;;  %1634 = vadd.xlane.f32.xlu0 %v1633_v37 }
 0xa20   :  { %3870 = vmatmul.msk.f32.gmra.mxu3 %vm371_vm3, %v1975_v38  ;;  %v5083_v38 = vperm.slane %v4508_v15, 3 }
 0xa21   :  { %1877 = vmatpush.msrb.mxu0 %v5037_v8 }
 0xa22   :  { %v2202_v3 = vpop.permute.xlu1 %2201 }
 0xa2a   :  { %v2049_v44 = vpop.permute.xlu1 %2048 }
 0xa32   :  { %v2043_v37 = vpop.permute.xlu1 %2042 }
 0xa33   :  { %2203 = vrot.lane.b32.xlu0 %v5042_v19, %s4279_s14 }
 0xa3b   :  { %2046 = vrot.lane.b32.xlu0 %v4839_v29, %s4286_s26 }
 0xa43   :  { %2044 = vrot.lane.b32.xlu0 %v4833_v56, %s4287_s27 }
 0xa81   :  { %v1821_v49 = vpop.f32.mrf.mxu3 }
 0xa82   :  { %3861 = vmatmul.msk.f32.vlgmr.msra.gmra.mxu2 %vm334_vm2, %v1821_v49 }
 0xa89   :  { %v1824_v27 = vpop.f32.mrf.mxu3 }
 0xa8a   :  { %3862 = vmatmul.msk.f32.gmra.mxu2 %vm334_vm2, %v1824_v27  ;;  %v1632_v25 = vpop.xlane.xlu2 %1631 }
 0xa8b   :  { %4139 = vrcp.f32 %v1632_v25  ;;  %v1647_v29 = vand.u32 2147483648, %v1632_v25  ;;  %v1645_v56 = vand.u32 2147483647, %v1632_v25  ;;  %vm1641_vm1 = vweird.f32 %v1632_v25 }
 0xa8d   :  { %v1648_v32 = vor.u32 1.1754944e-38, %v1647_v29  ;;  %vm1646_vm5 = vcmp.eq.f32.partialorder %v1645_v56, 8.507059e+37 }
 0xa91   :  { %v4140_v17 = vpop.eup %4139 }
 0xa92   :  { %v1637_v35 = vmul.f32 %v4140_v17, %v1632_v25  ;;  %v1635_v60 = vpop.xlane.xlu0 %1634  ;;  %vm1642_vm15 = vweird.f32 %v4140_v17 }
 0xa93   :  { %4141 = vrcp.f32 %v1635_v60  ;;  %vm1643_vm4 = vmor %vm1641_vm1, %vm1642_vm15  ;;  %v1662_v53 = vand.u32 2147483648, %v1635_v60  ;;  %v1660_v9 = vand.u32 2147483647, %v1635_v60  ;;  %vm1656_vm7 = vweird.f32 %v1635_v60 }
 0xa94   :  { %v1638_v51 = vsub.f32 1.0, %v1637_v35 }
 0xa95   :  { %v1663_v55 = vor.u32 1.1754944e-38, %v1662_v53  ;;  %vm1661_vm9 = vcmp.eq.f32.partialorder %v1660_v9, 8.507059e+37 }
 0xa96   :  { %v1639_v11 = vmul.f32 %v4140_v17, %v1638_v51 }
 0xa98   :  { %v1640_v61 = vadd.f32 %v4140_v17, %v1639_v11 }
 0xa99   :  { %v4142_v31 = vpop.eup %4141 }
 0xa9a   :  { %v1644_v12 = vsel %vm1643_vm4, %v4140_v17, %v1640_v61  ;;  %v1652_v13 = vmul.f32 %v4142_v31, %v1635_v60  ;;  %vm1657_vm6 = vweird.f32 %v4142_v31 }
 0xa9b   :  { %v1649_v4 = vsel %vm1646_vm5, %v1648_v32, %v1644_v12  ;;  %v2005_v40 = vpop.f32.mrf.mxu3  ;;  %vm1658_vm8 = vmor %vm1656_vm7, %vm1657_vm6 }
 0xa9c   :  { %v1653_v1 = vsub.f32 1.0, %v1652_v13  ;;  %3871 = vmatmul.msk.f32.vlgmr.msrb.gmra.mxu2 %vm334_vm2, %v2005_v40  ;;  %v1650_v62 = vmul.f32 %v5019_v45, %v1649_v4 }
 0xa9e   :  { %v1654_v54 = vmul.f32 %v4142_v31, %v1653_v1  ;;  %3853 = vmatmul.msk.f32.vlgmr.msra.gmra.mxu0 %vm371_vm3, %v1650_v62 }
 0xa9f   :  { %3873 = vmatpush.xpose.msk.msra.mxu0 %vm334_vm2, %v2049_v44 }
 0xaa0   :  { %v1655_v48 = vadd.f32 %v4142_v31, %v1654_v54 }
 0xaa2   :  { %v1659_v39 = vsel %vm1658_vm8, %v4142_v31, %v1655_v48 }
 0xaa3   :  { %v2008_v41 = vpop.f32.mrf.mxu3  ;;  %v1664_v6 = vsel %vm1661_vm9, %v1663_v55, %v1659_v39  ;;  %v5100_v55 = vpack.i.bf16 %v5005_v18, %v5042_v19 }
 0xaa4   :  { %3872 = vmatmul.msk.f32.gmra.mxu2 %vm334_vm2, %v2008_v41  ;;  %v1665_v45 = vmul.f32 %v4138_v63, %v1664_v6 }
 0xaa5   :  { %v2204_v59 = vpop.permute.xlu0 %2203 }
 0xaa6   :  { %3854 = vmatmul.msk.f32.gmra.mxu0 %vm371_vm3, %v1665_v45  ;;  %3881 = vmatpush.xpose.msk.msra.mxu2 %vm334_vm2, %v2204_v59 }
 0xaaa   :  { %3882 = vmatpush.xpose.msk.msra.mxu2 %vm334_vm2, %v2202_v3 }
 0xaad   :  { %3883 = vmatmul.msk.f32.vlgmr.msra.gmra.mxu2 %vm334_vm2, %v5005_v18  ;;  %v2047_v33 = vpop.permute.xlu0 %2046 }
 0xaae   :  { %2471 = vmatpush.msrb.mxu2 %v4939_v14  ;;  %3874 = vmatpush.xpose.msk.msra.mxu0 %vm334_vm2, %v2047_v33 }
 0xab0   :  { %2655 = vmatpush.msra.mxu2 %v4249_v52 }
 0xab5   :  { %3884 = vmatmul.msk.f32.gmra.mxu2 %vm334_vm2, %v5042_v19  ;;  %v2045_v25 = vpop.permute.xlu0 %2044 }
 0xb05   :  { %v5071_v22 = vpop.f32.mrf.mxu2 }
 0xb0d   :  { %v5073_v28 = vpop.f32.mrf.mxu2 }
 0xb1b   :  { %v1695_v20 = vpop.f32.mrf.mxu0 }
 0xb1c   :  { %3863 = vmatmul.msk.f32.vlgmr.msrb.gmra.mxu0 %vm334_vm2, %v1695_v20 }
 0xb1f   :  { %v5076_v14 = vpop.f32.mrf.mxu2 }
 0xb23   :  { %v1698_v63 = vpop.f32.mrf.mxu0 }
 0xb24   :  { %3864 = vmatmul.msk.f32.gmra.mxu0 %vm334_vm2, %v1698_v63 }
 0xb27   :  { %v5079_v24 = vpop.f32.mrf.mxu2 }
 0xb2c   :  { %3875 = vmatmul.msk.f32.vlgmr.msra.gmra.mxu0 %vm334_vm2, %v2043_v37 }
 0xb30   :  { %v2230_v49 = vpop.f32.mrf.mxu2 }
 0xb31   :  { %v2236_v27 = vmul.f32 0.35355338, %v2230_v49 }
 0xb33   :  { %v2239_v17 = vadd.f32 %v5083_v38, %v2236_v27 }
 0xb34   :  { %3876 = vmatmul.msk.f32.gmra.mxu0 %vm334_vm2, %v2045_v25 }
 0xb35   :  { %v2241_v35 = vsel %vm371_vm3, %v2239_v17, -inf }
 0xb36   :  { %2242 = vmax.xlane.f32.xlu1 %v2241_v35 }
 0xb38   :  { %v2233_v60 = vpop.f32.mrf.mxu2 }
 0xb39   :  { %v2237_v3 = vmul.f32 0.35355338, %v2233_v60 }
 0xb3b   :  { %v2240_v51 = vadd.f32 %v5083_v38, %v2237_v3 }
 0xb3d   :  { %v2244_v29 = vsel %vm371_vm3, %v2240_v51, -inf }
 0xb3e   :  { %2245 = vmax.xlane.f32.xlu2 %v2244_v29 }
 0xb99   :  { %v5090_v11 = vpop.f32.mrf.mxu0 }
 0xba1   :  { %v5092_v15 = vpop.f32.mrf.mxu0 }
 0xba9   :  { %v2243_v56 = vpop.xlane.xlu1 %2242  ;;  %v2075_v61 = vpop.f32.mrf.mxu0 }
 0xbaa   :  { %v2247_v31 = vsub.f32 %v2239_v17, %v2243_v56  ;;  %v2081_v39 = vmul.f32 0.35355338, %v2075_v61 }
 0xbac   :  { %v2249_v32 = vmul.f32 1.442695, %v2247_v31  ;;  %v2083_v41 = vadd.f32 %v2081_v39, %v4945_v46 }
 0xbae   :  { %4143 = vpow2.f32 %v2249_v32  ;;  %v2085_v6 = vsel %vm371_vm3, %v2083_v41, -inf }
 0xbb1   :  { %v2246_v12 = vpop.xlane.xlu2 %2245  ;;  %v2078_v13 = vpop.f32.mrf.mxu0 }
 0xbb2   :  { %v2248_v4 = vsub.f32 %v2240_v51, %v2246_v12  ;;  %v2082_v40 = vmul.f32 0.35355338, %v2078_v13 }
 0xbb4   :  { %v4144_v1 = vpop.eup %4143  ;;  %v2251_v62 = vmul.f32 1.442695, %v2248_v4  ;;  %v2084_v53 = vadd.f32 %v2082_v40, %v4945_v46 }
 0xbb5   :  { %v2253_v44 = vsel %vm371_vm3, %v4144_v1, 0.0 }
 0xbb6   :  { %4145 = vpow2.f32 %v2251_v62  ;;  %2254 = vadd.xlane.f32.xlu0 %v2253_v44  ;;  %v2088_v54 = vsel %vm371_vm3, %v2084_v53, -inf }
 0xbb7   :  { %2089 = vmax.xlane.f32.xlu1 %v2088_v54 }
 0xbbc   :  { %v4146_v9 = vpop.eup %4145 }
 0xbbd   :  { %v2256_v48 = vsel %vm371_vm3, %v4146_v9, 0.0 }
 0xbbe   :  { %2257 = vadd.xlane.f32.xlu2 %v2256_v48 }
 0xbd6   :  { %4010 = vrot.lane.b32.xlu2 %v5100_v55, %s4282_s1 }
 0xbff   :  { %2086 = vmax.xlane.f32.xlu2 %v2085_v6 }
 0xc17   :  { %2324 = vrot.lane.b32.xlu2 %v5005_v18, %s4281_s16 }
 0xc1f   :  { %2665 = vrot.lane.b32.xlu2 %v5005_v18, %s4287_s27 }
 0xc29   :  { %v2255_v45 = vpop.xlane.xlu0 %2254 }
 0xc2a   :  { %4147 = vrcp.f32 %v2255_v45  ;;  %v2090_v59 = vpop.xlane.xlu1 %2089  ;;  %v2270_v49 = vand.u32 2147483648, %v2255_v45  ;;  %v2268_v17 = vand.u32 2147483647, %v2255_v45  ;;  %vm2264_vm11 = vweird.f32 %v2255_v45 }
 0xc2b   :  { %v2092_v33 = vsub.f32 %v2084_v53, %v2090_v59 }
 0xc2c   :  { %v2271_v51 = vor.u32 1.1754944e-38, %v2270_v49  ;;  %vm2269_vm13 = vcmp.eq.f32.partialorder %v2268_v17, 8.507059e+37 }
 0xc2d   :  { %v2095_v52 = vmul.f32 1.442695, %v2092_v33 }
 0xc2f   :  { %4149 = vpow2.f32 %v2095_v52 }
 0xc30   :  { %v4148_v20 = vpop.eup %4147 }
 0xc31   :  { %v2260_v63 = vmul.f32 %v4148_v20, %v2255_v45  ;;  %v2258_v37 = vpop.xlane.xlu2 %2257  ;;  %vm2265_vm10 = vweird.f32 %v4148_v20 }
 0xc32   :  { %4151 = vrcp.f32 %v2258_v37  ;;  %vm2266_vm12 = vmor %vm2264_vm11, %vm2265_vm10  ;;  %v2285_v13 = vand.u32 2147483648, %v2258_v37  ;;  %v2283_v53 = vand.u32 2147483647, %v2258_v37  ;;  %vm2279_vm15 = vweird.f32 %v2258_v37 }
 0xc33   :  { %v2261_v46 = vsub.f32 1.0, %v2260_v63 }
 0xc34   :  { %v2286_v54 = vor.u32 1.1754944e-38, %v2285_v13  ;;  %vm2284_vm4 = vcmp.eq.f32.partialorder %v2283_v53, 8.507059e+37 }
 0xc35   :  { %v5110_v27 = vpop.eup %4149  ;;  %v2262_v25 = vmul.f32 %v4148_v20, %v2261_v46 }
 0xc36   :  { %v2100_v35 = vsel %vm371_vm3, %v5110_v27, 0.0 }
 0xc37   :  { %v2263_v60 = vadd.f32 %v4148_v20, %v2262_v25  ;;  %2101 = vadd.xlane.f32.xlu1 %v2100_v35 }
 0xc38   :  { %v4152_v3 = vpop.eup %4151 }
 0xc39   :  { %v2267_v29 = vsel %vm2266_vm12, %v4148_v20, %v2263_v60  ;;  %v2275_v56 = vmul.f32 %v4152_v3, %v2258_v37  ;;  %v4011_v61 = vpop.permute.xlu2 %4010  ;;  %vm2280_vm14 = vweird.f32 %v4152_v3 }
 0xc3a   :  { %v2272_v31 = vsel %vm2269_vm13, %v2271_v51, %v2267_v29  ;;  %v4012_v32 = vunpack.i.l.bf16 %v4011_v61  ;;  %v4013_v4 = vunpack.i.h.bf16 %v4011_v61  ;;  %vm2281_vm1 = vmor %vm2279_vm15, %vm2280_vm14 }
 0xc3b   :  { %v2276_v12 = vsub.f32 1.0, %v2275_v56  ;;  %v2273_v62 = vmul.f32 %v4144_v1, %v2272_v31 }
 0xc3c   :  { %2315 = vmatpush.msrb.mxu0 %v4012_v32 }
 0xc3d   :  { %v2277_v40 = vmul.f32 %v4152_v3, %v2276_v12 }
 0xc3e   :  { %2316 = vmatpush.msrb.mxu0 %v4013_v4 }
 0xc3f   :  { %3885 = vmatmul.msk.f32.vlgmr.msrb.gmra.mxu0 %vm371_vm3, %v2273_v62  ;;  %v2278_v44 = vadd.f32 %v4152_v3, %v2277_v40 }
 0xc40   :  { %2500 = vmatpush.msra.mxu0 %v5037_v8 }
 0xc41   :  { %v2282_v48 = vsel %vm2281_vm1, %v4152_v3, %v2278_v44 }
 0xc42   :  { %v2287_v39 = vsel %vm2284_vm4, %v2286_v54, %v2282_v48 }
 0xc43   :  { %v2288_v6 = vmul.f32 %v4146_v9, %v2287_v39 }
 0xc47   :  { %3886 = vmatmul.msk.f32.gmra.mxu0 %vm371_vm3, %v2288_v6 }
 0xc50   :  { %2330 = vrot.lane.b32.xlu1 %v5042_v19, %s4280_s15 }
 0xc58   :  { %2514 = vrot.lane.b32.xlu1 %v5042_v19, %s4283_s23 }
 0xc60   :  { %2508 = vrot.lane.b32.xlu1 %v5005_v18, %s4285_s25 }
 0xc68   :  { %2669 = vrot.lane.b32.xlu1 %v5005_v18, %s4286_s26 }
 0xc70   :  { %2667 = vrot.lane.b32.xlu1 %v5042_v19, %s4287_s27 }
 0xc72   :  { %v2087_v8 = vpop.xlane.xlu2 %2086 }
 0xc73   :  { %v2091_v1 = vsub.f32 %v2083_v41, %v2087_v8 }
 0xc75   :  { %v2093_v9 = vmul.f32 1.442695, %v2091_v1 }
 0xc77   :  { %4153 = vpow2.f32 %v2093_v9 }
 0xc7a   :  { %v2325_v8 = vpop.permute.xlu2 %2324 }
 0xc7d   :  { %v4154_v45 = vpop.eup %4153 }
 0xc7e   :  { %v2097_v59 = vsel %vm371_vm3, %v4154_v45, 0.0 }
 0xc7f   :  { %2098 = vadd.xlane.f32.xlu0 %v2097_v59 }
 0xc93   :  { %4015 = vrot.lane.b32.xlu0 %v4983_v7, %s4289_s17 }
 0xc9b   :  { %2328 = vrot.lane.b32.xlu0 %v5005_v18, %s4280_s15 }
 0xca3   :  { %2326 = vrot.lane.b32.xlu0 %v5042_v19, %s4281_s16 }
 0xcaa   :  { %v2102_v7 = vpop.xlane.xlu1 %2101 }
 0xcab   :  { %2512 = vrot.lane.b32.xlu0 %v5005_v18, %s4283_s23  ;;  %4155 = vrcp.f32 %v2102_v7  ;;  %v2129_v12 = vand.u32 2147483648, %v2102_v7  ;;  %vm2123_vm10 = vweird.f32 %v2102_v7  ;;  %v2127_v40 = vand.u32 2147483647, %v2102_v7 }
 0xcad   :  { %v2130_v53 = vor.u32 1.1754944e-38, %v2129_v12  ;;  %vm2128_vm12 = vcmp.eq.f32.partialorder %v2127_v40, 8.507059e+37 }
 0xcb1   :  { %v4156_v20 = vpop.eup %4155 }
 0xcb2   :  { %v2119_v18 = vmul.f32 %v4156_v20, %v2102_v7  ;;  %vm2124_vm9 = vweird.f32 %v4156_v20 }
 0xcb3   :  { %2671 = vrot.lane.b32.xlu0 %v5042_v19, %s4286_s26  ;;  %vm2125_vm11 = vmor %vm2123_vm10, %vm2124_vm9 }
 0xcb4   :  { %v2120_v25 = vsub.f32 1.0, %v2119_v18 }
 0xcb6   :  { %v2121_v60 = vmul.f32 %v4156_v20, %v2120_v25 }
 0xcb8   :  { %v2122_v32 = vadd.f32 %v4156_v20, %v2121_v60 }
 0xcba   :  { %v2126_v62 = vsel %vm2125_vm11, %v4156_v20, %v2122_v32 }
 0xcbb   :  { %2510 = vrot.lane.b32.xlu0 %v5042_v19, %s4285_s25  ;;  %v2131_v54 = vsel %vm2128_vm12, %v2130_v53, %v2126_v62 }
 0xcbc   :  { %v2318_v41 = vpop.f32.mrf.mxu0  ;;  %v2132_v39 = vmul.f32 %v5110_v27, %v2131_v54  ;;  %v2666_v27 = vpop.permute.xlu2 %2665 }
 0xcbd   :  { %3895 = vmatmul.msk.f32.vlgmr.msra.gmra.mxu0 %vm334_vm2, %v2318_v41 }
 0xcc2   :  { %v2331_v56 = vpop.permute.xlu1 %2330 }
 0xcc4   :  { %v2321_v33 = vpop.f32.mrf.mxu0 }
 0xcc5   :  { %3896 = vmatmul.msk.f32.gmra.mxu0 %vm334_vm2, %v2321_v33 }
 0xcca   :  { %v2515_v48 = vpop.permute.xlu1 %2514 }
 0xcd2   :  { %v2509_v9 = vpop.permute.xlu1 %2508 }
 0xcda   :  { %v2670_v59 = vpop.permute.xlu1 %2669 }
 0xce2   :  { %v2668_v33 = vpop.permute.xlu1 %2667 }
 0xcf2   :  { %v2099_v52 = vpop.xlane.xlu0 %2098 }
 0xcf3   :  { %4157 = vrcp.f32 %v2099_v52  ;;  %v2114_v19 = vand.u32 2147483648, %v2099_v52  ;;  %vm2108_vm6 = vweird.f32 %v2099_v52  ;;  %v2112_v35 = vand.u32 2147483647, %v2099_v52 }
 0xcf5   :  { %v2115_v51 = vor.u32 1.1754944e-38, %v2114_v19  ;;  %vm2113_vm8 = vcmp.eq.f32.partialorder %v2112_v35, 8.507059e+37 }
 0xcf9   :  { %v4158_v63 = vpop.eup %4157 }
 0xcfa   :  { %v2104_v37 = vmul.f32 %v4158_v63, %v2099_v52  ;;  %vm2109_vm5 = vweird.f32 %v4158_v63 }
 0xcfb   :  { %vm2110_vm7 = vmor %vm2108_vm6, %vm2109_vm5 }
 0xcfc   :  { %v2105_v46 = vsub.f32 1.0, %v2104_v37 }
 0xcfe   :  { %v2106_v49 = vmul.f32 %v4158_v63, %v2105_v46 }
 0xd00   :  { %v2107_v17 = vadd.f32 %v4158_v63, %v2106_v49 }
 0xd02   :  { %v2111_v3 = vsel %vm2110_vm7, %v4158_v63, %v2107_v17 }
 0xd03   :  { %v2116_v61 = vsel %vm2113_vm8, %v2115_v51, %v2111_v3 }
 0xd04   :  { %v2117_v4 = vmul.f32 %v4154_v45, %v2116_v61 }
 0xd05   :  { %v4016_v29 = vpop.permute.xlu0 %4015 }
 0xd06   :  { %v4017_v31 = vunpack.i.l.bf16 %v4016_v29  ;;  %v4018_v13 = vunpack.i.h.bf16 %v4016_v29 }
 0xd08   :  { %2159 = vmatpush.msrb.mxu1 %v4017_v31 }
 0xd0a   :  { %2160 = vmatpush.msrb.mxu1 %v4018_v13 }
 0xd0b   :  { %3877 = vmatmul.msk.f32.vlgmr.msrb.gmra.mxu1 %vm371_vm3, %v2117_v4 }
 0xd0c   :  { %3887 = vmatpush.xpose.msk.msra.mxu1 %vm334_vm2, %v2331_v56 }
 0xd0d   :  { %v2329_v44 = vpop.permute.xlu0 %2328 }
 0xd10   :  { %3888 = vmatpush.xpose.msk.msra.mxu1 %vm334_vm2, %v2329_v44 }
 0xd13   :  { %3878 = vmatmul.msk.f32.gmra.mxu1 %vm371_vm3, %v2132_v39 }
 0xd14   :  { %3897 = vmatpush.xpose.msk.msrb.mxu1 %vm334_vm2, %v2515_v48 }
 0xd15   :  { %v2327_v6 = vpop.permute.xlu0 %2326 }
 0xd1b   :  { %3889 = vmatmul.msk.f32.vlgmr.msra.gmra.mxu1 %vm334_vm2, %v2325_v8 }
 0xd1d   :  { %v2513_v1 = vpop.permute.xlu0 %2512 }
 0xd1e   :  { %3898 = vmatpush.xpose.msk.msrb.mxu1 %vm334_vm2, %v2513_v1 }
 0xd23   :  { %3890 = vmatmul.msk.f32.gmra.mxu1 %vm334_vm2, %v2327_v6 }
 0xd25   :  { %v2672_v45 = vpop.permute.xlu0 %2671 }
 0xd26   :  { %3905 = vmatpush.xpose.msk.msrb.mxu0 %vm334_vm2, %v2672_v45 }
 0xd2a   :  { %3906 = vmatpush.xpose.msk.msrb.mxu0 %vm334_vm2, %v2670_v59 }
 0xd2b   :  { %3899 = vmatmul.msk.f32.vlgmr.msrb.gmra.mxu1 %vm334_vm2, %v2509_v9 }
 0xd2d   :  { %3907 = vmatmul.msk.f32.vlgmr.msrb.gmra.mxu0 %vm334_vm2, %v2666_v27  ;;  %v2511_v41 = vpop.permute.xlu0 %2510 }
 0xd33   :  { %3900 = vmatmul.msk.f32.gmra.mxu1 %vm334_vm2, %v2511_v41 }
 0xd35   :  { %3908 = vmatmul.msk.f32.gmra.mxu0 %vm334_vm2, %v2668_v33 }
 0xd3a   :  { %v5159_v20 = vpop.f32.mrf.mxu0 }
 0xd42   :  { %v5163_v17 = vpop.f32.mrf.mxu0 }
 0xd88   :  { %v2162_v7 = vpop.f32.mrf.mxu1 }
 0xd89   :  { %3879 = vmatmul.msk.f32.vlgmr.msrb.gmra.mxu3 %vm334_vm2, %v2162_v7 }
 0xd90   :  { %v2165_v52 = vpop.f32.mrf.mxu1 }
 0xd91   :  { %3880 = vmatmul.msk.f32.gmra.mxu3 %vm334_vm2, %v2165_v52 }
 0xd98   :  { %v2357_v63 = vpop.f32.mrf.mxu1 }
 0xd99   :  { %v2363_v37 = vmul.f32 0.35355338, %v2357_v63 }
 0xd9b   :  { %v2365_v18 = vadd.f32 %v2363_v37, %v5083_v38 }
 0xd9d   :  { %v2367_v46 = vsel %vm371_vm3, %v2365_v18, -inf }
 0xd9e   :  { %2368 = vmax.xlane.f32.xlu2 %v2367_v46 }
 0xda0   :  { %v2360_v49 = vpop.f32.mrf.mxu1 }
 0xda1   :  { %v2364_v25 = vmul.f32 0.35355338, %v2360_v49 }
 0xda3   :  { %v2366_v19 = vadd.f32 %v2364_v25, %v5083_v38 }
 0xda5   :  { %v2370_v35 = vsel %vm371_vm3, %v2366_v19, -inf }
 0xda6   :  { %2371 = vmax.xlane.f32.xlu0 %v2370_v35  ;;  %v1880_v35 = vadd.f32 %v5090_v11, %v5071_v22 }
 0xda8   :  { %v2541_v60 = vpop.f32.mrf.mxu1 }
 0xda9   :  { %v2547_v3 = vmul.f32 0.35355338, %v2541_v60 }
 0xdaa   :  { %v2698_v51 = vpop.f32.mrf.mxu0 }
 0xdab   :  { %v2549_v29 = vadd.f32 %v2547_v3, %v5083_v38  ;;  %v2704_v56 = vmul.f32 0.35355338, %v2698_v51 }
 0xdad   :  { %v2551_v61 = vsel %vm371_vm3, %v2549_v29, -inf  ;;  %v2706_v31 = vadd.f32 %v2704_v56, %v5083_v38 }
 0xdae   :  { %2552 = vmax.xlane.f32.xlu1 %v2551_v61 }
 0xdaf   :  { %v2708_v32 = vsel %vm371_vm3, %v2706_v31, -inf }
 0xdb0   :  { %2709 = vmax.xlane.f32.xlu2 %v2708_v32  ;;  %v2544_v52 = vpop.f32.mrf.mxu1 }
 0xdb1   :  { %v2548_v63 = vmul.f32 0.35355338, %v2544_v52 }
 0xdb2   :  { %v2701_v46 = vpop.f32.mrf.mxu0 }
 0xdb3   :  { %v5194_v37 = vadd.f32 %v2548_v63, %v5083_v38  ;;  %v2705_v49 = vmul.f32 0.35355338, %v2701_v46 }
 0xdb5   :  { %v5199_v25 = vadd.f32 %v2705_v49, %v5083_v38  ;;  %v2040_v38 = vadd.f32 %v5076_v14, %v1880_v35 }
 0xdb7   :  { %v2711_v3 = vsel %vm371_vm3, %v5199_v25, -inf }
 0xe0c   :  { %v2191_v51 = vpop.f32.mrf.mxu3 }
 0xe11   :  { %v2369_v12 = vpop.xlane.xlu2 %2368 }
 0xe12   :  { %v2373_v13 = vsub.f32 %v2365_v18, %v2369_v12  ;;  %v2554_v18 = vsel %vm371_vm3, %v5194_v37, -inf }
 0xe14   :  { %v2375_v4 = vmul.f32 1.442695, %v2373_v13 }
 0xe16   :  { %4159 = vpow2.f32 %v2375_v4 }
 0xe19   :  { %v2372_v40 = vpop.xlane.xlu0 %2371 }
 0xe1a   :  { %v2374_v62 = vsub.f32 %v2366_v19, %v2372_v40  ;;  %v5204_v19 = vld [vmem:[%s5744_s9] sm:$0xff] }
 0xe1c   :  { %v5171_v53 = vpop.eup %4159  ;;  %v2377_v44 = vmul.f32 1.442695, %v2374_v62 }
 0xe1d   :  { %v2379_v54 = vsel %vm371_vm3, %v5171_v53, 0.0 }
 0xe1e   :  { %4161 = vpow2.f32 %v2377_v44  ;;  %2380 = vadd.xlane.f32.xlu0 %v2379_v54 }
 0xe21   :  { %v2553_v48 = vpop.xlane.xlu1 %2552 }
 0xe22   :  { %v2557_v39 = vsub.f32 %v2549_v29, %v2553_v48  ;;  %v2197_v29 = vadd.f32 %v2191_v51, %v2040_v38 }
 0xe23   :  { %v2710_v6 = vpop.xlane.xlu2 %2709 }
 0xe24   :  { %v5175_v8 = vpop.eup %4161  ;;  %v2559_v1 = vmul.f32 1.442695, %v2557_v39  ;;  %v2714_v9 = vsub.f32 %v2706_v31, %v2710_v6 }
 0xe25   :  { %v2382_v45 = vsel %vm371_vm3, %v5175_v8, 0.0 }
 0xe26   :  { %4163 = vpow2.f32 %v2559_v1  ;;  %v2716_v59 = vmul.f32 1.442695, %v2714_v9  ;;  %2383 = vadd.xlane.f32.xlu1 %v2382_v45 }
 0xe28   :  { %4165 = vpow2.f32 %v2716_v59 }
 0xe2c   :  { %v5179_v27 = vpop.eup %4163 }
 0xe2d   :  { %v2563_v41 = vsel %vm371_vm3, %v5179_v27, 0.0 }
 0xe2e   :  { %v5183_v33 = vpop.eup %4165  ;;  %2564 = vadd.xlane.f32.xlu2 %v2563_v41 }
 0xe2f   :  { %v2720_v7 = vsel %vm371_vm3, %v5183_v33, 0.0 }
 0xe30   :  { %2721 = vadd.xlane.f32.xlu1 %v2720_v7 }
 0xe32   :  { %4020 = vrot.lane.b32.xlu0 %v5100_v55, %s4284_s24 }
 0xe46   :  { %4025 = vrot.lane.b32.xlu2 %v5100_v55, %s4288_s2 }
 0xe49   :  { %4030 = vrot.lane.b32.xlu1 %v5100_v55, %s4289_s17  ;;  %v5207_v55 = vperm.slane %v5204_v19, 2 }
 0xe4b   :  { %v2824_v60 = vadd.f32 %v5207_v55, %v4784_v30  ;;  %v2827_v61 = vadd.f32 %v5207_v55, %v2197_v29 }
 0xe4d   :  { %v5217_v56 = vadd.f32 %v2824_v60, %v4430_v10  ;;  %v5223_v22 = vadd.f32 %v2827_v61, %v4762_v23 }
 0xe4f   :  { %v2842_v31 = vsel %vm46_vm0, %v5217_v56, 0.0  ;;  %v2851_v30 = vsel %vm46_vm0, %v5223_v22, 0.0 }
 0xe5c   :  { %2555 = vmax.xlane.f32.xlu0 %v2554_v18 }
 0xe6f   :  { %2712 = vmax.xlane.f32.xlu2 %v2711_v3 }
 0xe77   :  { %2843 = vadd.xlane.f32.xlu2 %v2842_v31 }
 0xe7f   :  { %2852 = vadd.xlane.f32.xlu2 %v2851_v30 }
 0xe91   :  { %v2381_v11 = vpop.xlane.xlu0 %2380 }
 0xe92   :  { %4167 = vrcp.f32 %v2381_v11  ;;  %v2396_v62 = vand.u32 2147483648, %v2381_v11  ;;  %vm2390_vm14 = vweird.f32 %v2381_v11  ;;  %v2394_v44 = vand.u32 2147483647, %v2381_v11 }
 0xe94   :  { %v2397_v1 = vor.u32 1.1754944e-38, %v2396_v62  ;;  %vm2395_vm1 = vcmp.eq.f32.partialorder %v2394_v44, 8.507059e+37 }
 0xe98   :  { %v4168_v14 = vpop.eup %4167 }
 0xe99   :  { %v2386_v32 = vmul.f32 %v4168_v14, %v2381_v11  ;;  %v2384_v12 = vpop.xlane.xlu1 %2383  ;;  %vm2391_vm13 = vweird.f32 %v4168_v14 }
 0xe9a   :  { %4169 = vrcp.f32 %v2384_v12  ;;  %vm2392_vm15 = vmor %vm2390_vm14, %vm2391_vm13  ;;  %v2411_v63 = vand.u32 2147483648, %v2384_v12  ;;  %vm2405_vm5 = vweird.f32 %v2384_v12  ;;  %v2409_v49 = vand.u32 2147483647, %v2384_v12 }
 0xe9b   :  { %v2387_v10 = vsub.f32 1.0, %v2386_v32 }
 0xe9c   :  { %v2412_v31 = vor.u32 1.1754944e-38, %v2411_v63  ;;  %vm2410_vm7 = vcmp.eq.f32.partialorder %v2409_v49, 8.507059e+37 }
 0xe9d   :  { %v2388_v13 = vmul.f32 %v4168_v14, %v2387_v10 }
 0xe9f   :  { %v2389_v4 = vadd.f32 %v4168_v14, %v2388_v13 }
 0xea0   :  { %v4170_v40 = vpop.eup %4169 }
 0xea1   :  { %v2401_v23 = vmul.f32 %v4170_v40, %v2384_v12  ;;  %v2565_v54 = vpop.xlane.xlu2 %2564  ;;  %v2393_v48 = vsel %vm2392_vm15, %v4168_v14, %v2389_v4  ;;  %vm2406_vm4 = vweird.f32 %v4170_v40 }
 0xea2   :  { %4171 = vrcp.f32 %v2565_v54  ;;  %v2398_v59 = vsel %vm2395_vm1, %v2397_v1, %v2393_v48  ;;  %vm2407_vm6 = vmor %vm2405_vm5, %vm2406_vm4  ;;  %v2580_v12 = vand.u32 2147483648, %v2565_v54  ;;  %vm2574_vm9 = vweird.f32 %v2565_v54 }
 0xea3   :  { %v2402_v39 = vsub.f32 1.0, %v2401_v23  ;;  %v2722_v6 = vpop.xlane.xlu1 %2721  ;;  %v2399_v46 = vmul.f32 %v5171_v53, %v2398_v59  ;;  %v2578_v10 = vand.u32 2147483647, %v2565_v54 }
 0xea4   :  { %4173 = vrcp.f32 %v2722_v6  ;;  %v4021_v9 = vpop.permute.xlu0 %4020  ;;  %v2581_v62 = vor.u32 1.1754944e-38, %v2580_v12  ;;  %v2737_v48 = vand.u32 2147483648, %v2722_v6  ;;  %vm2731_vm13 = vweird.f32 %v2722_v6 }
 0xea5   :  { %v2403_v45 = vmul.f32 %v4170_v40, %v2402_v39  ;;  %v4022_v41 = vunpack.i.l.bf16 %v4021_v9  ;;  %v4023_v18 = vunpack.i.h.bf16 %v4021_v9  ;;  %vm2579_vm11 = vcmp.eq.f32.partialorder %v2578_v10, 8.507059e+37 }
 0xea6   :  { %v2735_v39 = vand.u32 2147483647, %v2722_v6 }
 0xea7   :  { %v2404_v7 = vadd.f32 %v4170_v40, %v2403_v45  ;;  %2441 = vmatpush.msra.mxu3 %v4022_v41 }
 0xea8   :  { %v4172_v52 = vpop.eup %4171  ;;  %vm2736_vm15 = vcmp.eq.f32.partialorder %v2735_v39, 8.507059e+37 }
 0xea9   :  { %v2570_v35 = vmul.f32 %v4172_v52, %v2565_v54  ;;  %v4026_v60 = vpop.permute.xlu2 %4025  ;;  %2442 = vmatpush.msra.mxu3 %v4023_v18  ;;  %v2408_v61 = vsel %vm2407_vm6, %v4170_v40, %v2404_v7  ;;  %vm2575_vm8 = vweird.f32 %v4172_v52  ;;  %v2738_v54 = vor.u32 1.1754944e-38, %v2737_v48 }
 0xeaa   :  { %v4174_v3 = vpop.eup %4173  ;;  %v4027_v51 = vunpack.i.l.bf16 %v4026_v60  ;;  %3891 = vmatmul.msk.f32.vlgmr.msra.gmra.mxu3 %vm371_vm3, %v2399_v46  ;;  %v4028_v30 = vunpack.i.h.bf16 %v4026_v60  ;;  %v2413_v53 = vsel %vm2410_vm7, %v2412_v31, %v2408_v61  ;;  %vm2576_vm10 = vmor %vm2574_vm9, %vm2575_vm8  ;;  %v2825_v18 = vadd.f32 %v5207_v55, %v4963_v42 }
 0xeab   :  { %v2571_v38 = vsub.f32 1.0, %v2570_v35  ;;  %v2727_v29 = vmul.f32 %v4174_v3, %v2722_v6  ;;  %v2414_v4 = vmul.f32 %v5175_v8, %v2413_v53  ;;  %vm2732_vm12 = vweird.f32 %v4174_v3 }
 0xeac   :  { %2625 = vmatpush.msrb.mxu3 %v4027_v51  ;;  %vm2733_vm14 = vmor %vm2731_vm13, %vm2732_vm12  ;;  %v2823_v31 = vadd.f32 %v5207_v55, %v4781_v21 }
 0xead   :  { %v2572_v11 = vmul.f32 %v4172_v52, %v2571_v38  ;;  %v2728_v14 = vsub.f32 1.0, %v2727_v29  ;;  %v1260_v29 = vadd.f32 %v4802_v57, %v4960_v0 }
 0xeae   :  { %2626 = vmatpush.msrb.mxu3 %v4028_v30 }
 0xeaf   :  { %v2573_v32 = vadd.f32 %v4172_v52, %v2572_v11  ;;  %v2729_v13 = vmul.f32 %v4174_v3, %v2728_v14  ;;  %v2831_v14 = vadd.f32 %v2823_v31, %v4423_v5 }
 0xeb0   :  { %2812 = vmatpush.msra.mxu3 %v5028_v50 }
 0xeb1   :  { %v2577_v40 = vsel %vm2576_vm10, %v4172_v52, %v2573_v32  ;;  %v2730_v44 = vadd.f32 %v4174_v3, %v2729_v13  ;;  %v2839_v32 = vsel %vm46_vm0, %v2831_v14, 0.0 }
 0xeb2   :  { %3892 = vmatmul.msk.f32.gmra.mxu3 %vm371_vm3, %v2414_v4  ;;  %v2582_v23 = vsel %vm2579_vm11, %v2581_v62, %v2577_v40 }
 0xeb3   :  { %v2583_v50 = vmul.f32 %v5179_v27, %v2582_v23  ;;  %v2734_v1 = vsel %vm2733_vm14, %v4174_v3, %v2730_v44  ;;  %v1883_v27 = vadd.f32 %v5092_v15, %v5073_v28 }
 0xeb4   :  { %v2739_v9 = vsel %vm2736_vm15, %v2738_v54, %v2734_v1 }
 0xeb5   :  { %v2740_v41 = vmul.f32 %v5183_v33, %v2739_v9  ;;  %v2194_v33 = vpop.f32.mrf.mxu3  ;;  %v2041_v49 = vadd.f32 %v5079_v24, %v1883_v27 }
 0xeb7   :  { %v2198_v35 = vadd.f32 %v2194_v33, %v2041_v49 }
 0xeb9   :  { %v2828_v3 = vadd.f32 %v5207_v55, %v2198_v35 }
 0xeba   :  { %3901 = vmatmul.msk.f32.vlgmr.msrb.gmra.mxu3 %vm371_vm3, %v2583_v50 }
 0xebb   :  { %v4031_v8 = vpop.permute.xlu1 %4030  ;;  %v5254_v51 = vadd.f32 %v2828_v3, %v4439_v26  ;;  %v1418_v26 = vadd.f32 %v4973_v2, %v1260_v29 }
 0xebc   :  { %v4032_v45 = vunpack.i.l.bf16 %v4031_v8  ;;  %v4033_v59 = vunpack.i.h.bf16 %v4031_v8 }
 0xebd   :  { %v1575_v57 = vadd.f32 %v5050_v43, %v1418_v26 }
 0xebe   :  { %2782 = vmatpush.msra.mxu1 %v4032_v45 }
 0xebf   :  { %v2826_v2 = vadd.f32 %v5207_v55, %v1575_v57 }
 0xec0   :  { %2783 = vmatpush.msra.mxu1 %v4033_v59 }
 0xec1   :  { %3909 = vmatmul.msk.f32.vlgmr.msra.gmra.mxu1 %vm371_vm3, %v2740_v41  ;;  %v2834_v43 = vadd.f32 %v2826_v2, %v4563_v36 }
 0xec3   :  { %v2848_v10 = vsel %vm46_vm0, %v2834_v43, 0.0 }
 0xecf   :  { %v2556_v7 = vpop.xlane.xlu0 %2555 }
 0xed0   :  { %v2558_v6 = vsub.f32 %v5194_v37, %v2556_v7  ;;  %v5247_v37 = vadd.f32 %v2825_v18, %v4535_v58  ;;  %v2854_v58 = vsel %vm46_vm0, %v5254_v51, 0.0 }
 0xed2   :  { %v2561_v52 = vmul.f32 1.442695, %v2558_v6  ;;  %v2845_v15 = vsel %vm46_vm0, %v5247_v37, 0.0 }
 0xed4   :  { %4175 = vpow2.f32 %v2561_v52 }
 0xeda   :  { %v5239_v63 = vpop.eup %4175 }
 0xedb   :  { %v2566_v46 = vsel %vm371_vm3, %v5239_v63, 0.0 }
 0xedc   :  { %2567 = vadd.xlane.f32.xlu1 %v2566_v46 }
 0xee2   :  { %v2713_v60 = vpop.xlane.xlu2 %2712 }
 0xee3   :  { %v2715_v28 = vsub.f32 %v5199_v25, %v2713_v60 }
 0xee4   :  { %2846 = vadd.xlane.f32.xlu1 %v2845_v15 }
 0xee5   :  { %v2718_v42 = vmul.f32 1.442695, %v2715_v28 }
 0xee7   :  { %4177 = vpow2.f32 %v2718_v42 }
 0xeea   :  { %v2844_v38 = vpop.xlane.xlu2 %2843 }
 0xeeb   :  { %v2864_v24 = vmul.f32 %v2844_v38, %v4367_v16 }
 0xeec   :  { %2855 = vadd.xlane.f32.xlu1 %v2854_v58 }
 0xeed   :  { %v5261_v25 = vpop.eup %4177  ;;  %v5264_v61 = vsub.f32 %v5217_v56, %v2864_v24 }
 0xeee   :  { %v2723_v30 = vsel %vm371_vm3, %v5261_v25, 0.0 }
 0xeef   :  { %2724 = vadd.xlane.f32.xlu0 %v2723_v30  ;;  %v2880_v11 = vmul.f32 %v5264_v61, %v5264_v61 }
 0xef1   :  { %v2890_v53 = vsel %vm46_vm0, %v2880_v11, 0.0 }
 0xef2   :  { %v2853_v0 = vpop.xlane.xlu2 %2852 }
 0xef3   :  { %v2867_v56 = vmul.f32 %v2853_v0, %v4367_v16 }
 0xef4   :  { %2891 = vadd.xlane.f32.xlu1 %v2890_v53  ;;  %v3035_v53 = vld [vmem:[%s5740_s5 + $0x10] sm:$0xff] }
 0xef5   :  { %v5278_v21 = vsub.f32 %v5223_v22, %v2867_v56 }
 0xef7   :  { %2840 = vadd.xlane.f32.xlu0 %v2839_v32  ;;  %v2883_v12 = vmul.f32 %v5278_v21, %v5278_v21 }
 0xef9   :  { %v2899_v5 = vsel %vm46_vm0, %v2883_v12, 0.0  ;;  %v3034_v12 = vld [vmem:[%s5740_s5 + $0x8] sm:$0xff] }
 0xefc   :  { %2900 = vadd.xlane.f32.xlu1 %v2899_v5 }
 0xeff   :  { %2849 = vadd.xlane.f32.xlu0 %v2848_v10 }
 0xf2d   :  { %v2444_v13 = vpop.f32.mrf.mxu3 }
 0xf2e   :  { %3893 = vmatmul.msk.f32.vlgmr.msrb.gmra.mxu2 %vm334_vm2, %v2444_v13 }
 0xf35   :  { %v2447_v22 = vpop.f32.mrf.mxu3 }
 0xf36   :  { %3894 = vmatmul.msk.f32.gmra.mxu2 %vm334_vm2, %v2447_v22 }
 0xf3d   :  { %v2628_v4 = vpop.f32.mrf.mxu3 }
 0xf3e   :  { %3903 = vmatmul.msk.f32.vlgmr.msra.gmra.mxu2 %vm334_vm2, %v2628_v4  ;;  %v2785_v41 = vpop.f32.mrf.mxu1 }
 0xf4f   :  { %v2568_v40 = vpop.xlane.xlu1 %2567 }
 0xf50   :  { %4179 = vrcp.f32 %v2568_v40  ;;  %v2595_v23 = vand.u32 2147483648, %v2568_v40  ;;  %v2593_v39 = vand.u32 2147483647, %v2568_v40  ;;  %vm2589_vm4 = vweird.f32 %v2568_v40 }
 0xf52   :  { %v2596_v1 = vor.u32 1.1754944e-38, %v2595_v23  ;;  %vm2594_vm6 = vcmp.eq.f32.partialorder %v2593_v39, 8.507059e+37 }
 0xf56   :  { %v4180_v62 = vpop.eup %4179 }
 0xf57   :  { %v2585_v44 = vmul.f32 %v4180_v62, %v2568_v40  ;;  %vm2590_vm1 = vweird.f32 %v4180_v62  ;;  %v2847_v26 = vpop.xlane.xlu1 %2846 }
 0xf58   :  { %vm2591_vm5 = vmor %vm2589_vm4, %vm2590_vm1 }
 0xf59   :  { %v2586_v36 = vsub.f32 1.0, %v2585_v44 }
 0xf5b   :  { %v2587_v48 = vmul.f32 %v4180_v62, %v2586_v36 }
 0xf5d   :  { %v2588_v50 = vadd.f32 %v4180_v62, %v2587_v48 }
 0xf5f   :  { %v2592_v54 = vsel %vm2591_vm5, %v4180_v62, %v2588_v50  ;;  %v2856_v30 = vpop.xlane.xlu1 %2855 }
 0xf60   :  { %v2597_v8 = vsel %vm2594_vm6, %v2596_v1, %v2592_v54 }
 0xf61   :  { %v2598_v9 = vmul.f32 %v5239_v63, %v2597_v8 }
 0xf62   :  { %v2725_v45 = vpop.xlane.xlu0 %2724 }
 0xf63   :  { %4181 = vrcp.f32 %v2725_v45  ;;  %3902 = vmatmul.msk.f32.gmra.mxu3 %vm371_vm3, %v2598_v9  ;;  %v2752_v18 = vand.u32 2147483648, %v2725_v45  ;;  %v2750_v49 = vand.u32 2147483647, %v2725_v45  ;;  %vm2746_vm8 = vweird.f32 %v2725_v45 }
 0xf65   :  { %v2753_v60 = vor.u32 1.1754944e-38, %v2752_v18  ;;  %vm2751_vm10 = vcmp.eq.f32.partialorder %v2750_v49, 8.507059e+37 }
 0xf67   :  { %v2892_v11 = vpop.xlane.xlu1 %2891 }
 0xf68   :  { %v2912_v0 = vmul.f32 %v2892_v11, %v4367_v16 }
 0xf69   :  { %v4182_v59 = vpop.eup %4181 }
 0xf6a   :  { %v2742_v7 = vmul.f32 %v4182_v59, %v2725_v45  ;;  %v2841_v6 = vpop.xlane.xlu0 %2840  ;;  %vm2747_vm7 = vweird.f32 %v4182_v59  ;;  %v2865_v45 = vmul.f32 %v2847_v26, %v4367_v16 }
 0xf6b   :  { %v2863_v52 = vmul.f32 %v2841_v6, %v4367_v16  ;;  %3911 = vmatmul.msk.f32.vlgmr.msra.gmra.mxu3 %vm334_vm2, %v2785_v41  ;;  %vm2748_vm9 = vmor %vm2746_vm8, %vm2747_vm7 }
 0xf6c   :  { %v2743_v27 = vsub.f32 1.0, %v2742_v7 }
 0xf6d   :  { %v5294_v46 = vsub.f32 %v2831_v14, %v2863_v52  ;;  %v5308_v14 = vadd.f32 1e-12, %v2912_v0 }
 0xf6e   :  { %v2744_v33 = vmul.f32 %v4182_v59, %v2743_v27 }
 0xf6f   :  { %v2879_v63 = vmul.f32 %v5294_v46, %v5294_v46  ;;  %v2901_v56 = vpop.xlane.xlu1 %2900  ;;  %4183 = vrsqrt.f32 %v5308_v14  ;;  %vm2943_vm13 = vweird.f32 %v5308_v14 }
 0xf70   :  { %v2745_v35 = vadd.f32 %v4182_v59, %v2744_v33  ;;  %v2915_v2 = vmul.f32 %v2901_v56, %v4367_v16  ;;  %v5348_v33 = vsub.f32 %v5247_v37, %v2865_v45 }
 0xf71   :  { %v2887_v3 = vsel %vm46_vm0, %v2879_v63, 0.0 }
 0xf72   :  { %v2850_v28 = vpop.xlane.xlu0 %2849  ;;  %2888 = vadd.xlane.f32.xlu2 %v2887_v3  ;;  %v2749_v15 = vsel %vm2748_vm9, %v4182_v59, %v2745_v35  ;;  %v5326_v5 = vadd.f32 1e-12, %v2915_v2  ;;  %v2881_v37 = vmul.f32 %v5348_v33, %v5348_v33 }
 0xf73   :  { %v2866_v42 = vmul.f32 %v2850_v28, %v4367_v16  ;;  %v2754_v38 = vsel %vm2751_vm10, %v2753_v60, %v2749_v15  ;;  %v2868_v15 = vmul.f32 %v2856_v30, %v4367_v16  ;;  %v5364_v30 = vperm.slane %v5204_v19, 3 }
 0xf74   :  { %v2755_v24 = vmul.f32 %v5261_v25, %v2754_v38  ;;  %v3036_v25 = vld [vmem:[%s5740_s5 + $0x18] sm:$0xff]  ;;  %4185 = vrsqrt.f32 %v5326_v5  ;;  %v2893_v56 = vsel %vm46_vm0, %v2881_v37, 0.0  ;;  %vm2973_vm6 = vweird.f32 %v5326_v5 }
 0xf75   :  { %v5301_v58 = vsub.f32 %v2834_v43, %v2866_v42  ;;  %3077 = vmatpush.msrb.mxu1 %v3036_v25  ;;  %3936 = vmatpush.msrb.mxu2 %v3036_v25  ;;  %v3033_v43 = vld [vmem:[%s5740_s5] sm:$0xff]  ;;  %v5328_v10 = vpop.eup %4183  ;;  %v5361_v26 = vsub.f32 %v5254_v51, %v2868_v15 }
 0xf76   :  { %3910 = vmatmul.msk.f32.gmra.mxu1 %vm371_vm3, %v2755_v24  ;;  %v2938_v40 = vmul.f32 %v5328_v10, %v5308_v14  ;;  %vm2944_vm11 = vweird.f32 %v5328_v10 }
 0xf77   :  { %v2882_v29 = vmul.f32 %v5301_v58, %v5301_v58  ;;  %3078 = vmatpush.msrb.mxu1 %v3035_v53  ;;  %3937 = vmatpush.msrb.mxu2 %v3035_v53  ;;  %vm2945_vm14 = vmor %vm2943_vm13, %vm2944_vm11  ;;  %v5370_v53 = vperm.slane %v5204_v19, 4 }
 0xf78   :  { %v2939_v23 = vmul.f32 %v5328_v10, %v2938_v40 }
 0xf79   :  { %v2896_v31 = vsel %vm46_vm0, %v2882_v29, 0.0  ;;  %3079 = vmatpush.msrb.mxu1 %v3034_v12  ;;  %3938 = vmatpush.msrb.mxu2 %v3034_v12 }
 0xf7a   :  { %2897 = vadd.xlane.f32.xlu2 %v2896_v31  ;;  %v5337_v50 = vpop.eup %4185  ;;  %v2940_v59 = vmul.f32 0.5, %v2939_v23 }
 0xf7b   :  { %3080 = vmatpush.msrb.mxu1 %v3033_v43  ;;  %3939 = vmatpush.msrb.mxu2 %v3033_v43  ;;  %v2968_v7 = vmul.f32 %v5337_v50, %v5326_v5  ;;  %vm2974_vm1 = vweird.f32 %v5337_v50 }
 0xf7c   :  { %v2941_v49 = vsub.f32 1.5, %v2940_v59  ;;  %vm2975_vm7 = vmor %vm2973_vm6, %vm2974_vm1 }
 0xf7d   :  { %v2969_v63 = vmul.f32 %v5337_v50, %v2968_v7 }
 0xf7f   :  { %v2970_v42 = vmul.f32 0.5, %v2969_v63  ;;  %v5421_v63 = vld [vmem:[%s5741_s6] ss:$0 sm:$0xff] }
 0xf81   :  { %v2971_v0 = vsub.f32 1.5, %v2970_v42 }
 0xf83   :  { %v2972_v43 = vmul.f32 %v5337_v50, %v2971_v0 }
 0xfb1   :  { %v2473_v57 = vpop.f32.mrf.mxu2 }
 0xfb2   :  { %v2503_v36 = vadd.f32 %v5159_v20, %v2473_v57 }
 0xfb9   :  { %v5318_v32 = vpop.f32.mrf.mxu2 }
 0xfc1   :  { %v2657_v44 = vpop.f32.mrf.mxu2 }
 0xfc2   :  { %v2663_v48 = vadd.f32 %v2657_v44, %v2503_v36 }
 0xfe5   :  { %v2889_v13 = vpop.xlane.xlu2 %2888 }
 0xfe6   :  { %v2911_v22 = vmul.f32 %v2889_v13, %v4367_v16  ;;  %v2631_v4 = vpop.f32.mrf.mxu3 }
 0xfe7   :  { %3904 = vmatmul.msk.f32.gmra.mxu2 %vm334_vm2, %v2631_v4 }
 0xfe8   :  { %v2919_v62 = vadd.f32 1e-12, %v2911_v22  ;;  %v2976_v22 = vsel %vm2975_vm7, %v5337_v50, %v2972_v43 }
 0xfea   :  { %4187 = vrsqrt.f32 %v2919_v62 }
 0xfed   :  { %v2898_v39 = vpop.xlane.xlu2 %2897 }
 0xfee   :  { %v2914_v1 = vmul.f32 %v2898_v39, %v4367_v16  ;;  %v2814_v54 = vpop.f32.mrf.mxu3 }
 0xfef   :  { %v2820_v8 = vadd.f32 %v2814_v54, %v2663_v48 }
 0xff0   :  { %v4188_v9 = vpop.eup %4187  ;;  %v2922_v41 = vadd.f32 1e-12, %v2914_v1 }
 0xff1   :  { %v2928_v6 = vmul.f32 %v4188_v9, %v2919_v62  ;;  %v2829_v20 = vadd.f32 %v5207_v55, %v2820_v8  ;;  %vm2934_vm3 = vweird.f32 %v4188_v9 }
 0xff2   :  { %4189 = vrsqrt.f32 %v2922_v41  ;;  %vm2963_vm4 = vweird.f32 %v2922_v41 }
 0xff3   :  { %v2929_v52 = vmul.f32 %v4188_v9, %v2928_v6  ;;  %v2788_v27 = vpop.f32.mrf.mxu1  ;;  %v5345_v18 = vadd.f32 %v2829_v20, %v4447_v47  ;;  %v2942_v47 = vmul.f32 %v5328_v10, %v2941_v49 }
 0xff4   :  { %3912 = vmatmul.msk.f32.gmra.mxu3 %vm334_vm2, %v2788_v27  ;;  %vm2933_vm2 = vweird.f32 %v2919_v62  ;;  %v3011_v62 = vmul.f32 %v2976_v22, %v5278_v21 }
 0xff5   :  { %v2930_v35 = vmul.f32 0.5, %v2929_v52  ;;  %v2857_v60 = vsel %vm46_vm0, %v5345_v18, 0.0  ;;  %vm2935_vm12 = vmor %vm2933_vm2, %vm2934_vm3  ;;  %v2946_v57 = vsel %vm2945_vm14, %v5328_v10, %v2942_v47 }
 0xff6   :  { %2858 = vadd.xlane.f32.xlu0 %v2857_v60  ;;  %v3008_v2 = vmul.f32 %v2946_v57, %v5264_v61 }
 0xff7   :  { %v2931_v3 = vsub.f32 1.5, %v2930_v35 }
 0xff8   :  { %v4190_v28 = vpop.eup %4189  ;;  %v3017_v13 = vmul.f32 %v5364_v30, %v3008_v2 }
 0xff9   :  { %v2932_v38 = vmul.f32 %v4188_v9, %v2931_v3  ;;  %v2958_v24 = vmul.f32 %v4190_v28, %v2922_v41  ;;  %vm2964_vm15 = vweird.f32 %v4190_v28 }
 0xffa   :  { %vm2965_vm5 = vmor %vm2963_vm4, %vm2964_vm15  ;;  %v3026_v5 = vadd.f32 %v5370_v53, %v3017_v13 }
 0xffb   :  { %v2936_v29 = vsel %vm2935_vm12, %v4188_v9, %v2932_v38  ;;  %v2959_v31 = vmul.f32 %v4190_v28, %v2958_v24  ;;  %v2506_v9 = vadd.f32 %v5163_v17, %v5318_v32 }
 0xffc   :  { %v3007_v11 = vmul.f32 %v2936_v29, %v5294_v46  ;;  %v2884_v46 = vmul.f32 %v5361_v26, %v5361_v26 }
 0xffd   :  { %v2960_v25 = vmul.f32 0.5, %v2959_v31 }
 0xffe   :  { %v3016_v14 = vmul.f32 %v5364_v30, %v3007_v11  ;;  %2894 = vadd.xlane.f32.xlu0 %v2893_v56  ;;  %v2902_v4 = vsel %vm46_vm0, %v2884_v46, 0.0  ;;  %v3433_v56 = vld [vmem:[%s5742_s7 + $0x38] sm:$0xff] }
 0xfff   :  { %v2961_v51 = vsub.f32 1.5, %v2960_v25  ;;  %3468 = vmatpush.msra.mxu0 %v3433_v56 }
0x1000   :  { %v5375_v12 = vadd.f32 %v5370_v53, %v3016_v14 }
0x1001   :  { %v2962_v10 = vmul.f32 %v4190_v28, %v2961_v51 }
0x1002   :  { %3913 = vmatmul.msk.f32.vlgmr.msrb.gmra.mxu1 %vm46_vm0, %v5375_v12 }
0x1003   :  { %v2966_v19 = vsel %vm2965_vm5, %v4190_v28, %v2962_v10 }
0x1004   :  { %v3010_v61 = vmul.f32 %v2966_v19, %v5301_v58  ;;  %v3020_v58 = vmul.f32 %v5364_v30, %v3011_v62  ;;  %v3431_v19 = vld [vmem:[%s5742_s7 + $0x28] sm:$0xff] }
0x1006   :  { %v3019_v40 = vmul.f32 %v5364_v30, %v3010_v61  ;;  %2903 = vadd.xlane.f32.xlu0 %v2902_v4  ;;  %v5399_v36 = vadd.f32 %v5370_v53, %v3020_v58 }
0x1008   :  { %v5391_v44 = vadd.f32 %v5370_v53, %v3019_v40  ;;  %v3430_v40 = vld [vmem:[%s5742_s7 + $0x20] sm:$0xff] }
0x100a   :  { %3914 = vmatmul.msk.f32.gmra.mxu1 %vm46_vm0, %v3026_v5  ;;  %3916 = vmatmul.msk.f32.vlgmr.msrb.gmra.mxu2 %vm46_vm0, %v5391_v44 }
0x1012   :  { %3917 = vmatmul.msk.f32.gmra.mxu2 %vm46_vm0, %v5399_v36 }
0x1069   :  { %v2859_v23 = vpop.xlane.xlu0 %2858 }
0x106a   :  { %v2869_v21 = vmul.f32 %v2859_v23, %v4367_v16  ;;  %v2660_v8 = vpop.f32.mrf.mxu2  ;;  %v3429_v23 = vld [vmem:[%s5742_s7 + $0x18] sm:$0xff] }
0x106b   :  { %v2664_v59 = vadd.f32 %v2660_v8, %v2506_v9  ;;  %v3427_v8 = vld [vmem:[%s5742_s7 + $0x8] sm:$0xff] }
0x106c   :  { %v5405_v48 = vsub.f32 %v5345_v18, %v2869_v21 }
0x106e   :  { %v2885_v39 = vmul.f32 %v5405_v48, %v5405_v48 }
0x1070   :  { %v2905_v50 = vsel %vm46_vm0, %v2885_v39, 0.0 }
0x1071   :  { %v2895_v1 = vpop.xlane.xlu0 %2894  ;;  %2906 = vadd.xlane.f32.xlu2 %v2905_v50 }
0x1072   :  { %v2913_v54 = vmul.f32 %v2895_v1, %v4367_v16 }
0x1074   :  { %v2921_v45 = vadd.f32 1e-12, %v2913_v54  ;;  %v3428_v54 = vld [vmem:[%s5742_s7 + $0x10] sm:$0xff] }
0x1076   :  { %4191 = vrsqrt.f32 %v2921_v45  ;;  %vm2953_vm9 = vweird.f32 %v2921_v45 }
0x1077   :  { %v2817_v41 = vpop.f32.mrf.mxu3 }
0x1078   :  { %v2821_v7 = vadd.f32 %v2817_v41, %v2664_v59  ;;  %v3426_v59 = vld [vmem:[%s5742_s7] sm:$0xff] }
0x1079   :  { %v2904_v6 = vpop.xlane.xlu0 %2903 }
0x107a   :  { %v2830_v20 = vadd.f32 %v5207_v55, %v2821_v7  ;;  %v2916_v52 = vmul.f32 %v2904_v6, %v4367_v16 }
0x107c   :  { %v4192_v27 = vpop.eup %4191  ;;  %v2924_v18 = vadd.f32 1e-12, %v2916_v52  ;;  %v5416_v49 = vadd.f32 %v2830_v20, %v4454_v34 }
0x107d   :  { %v2948_v17 = vmul.f32 %v4192_v27, %v2921_v45  ;;  %vm2954_vm8 = vweird.f32 %v4192_v27 }
0x107e   :  { %4193 = vrsqrt.f32 %v2924_v18  ;;  %v2860_v32 = vsel %vm46_vm0, %v5416_v49, 0.0  ;;  %vm2955_vm10 = vmor %vm2953_vm9, %vm2954_vm8  ;;  %vm2983_vm11 = vweird.f32 %v2924_v18  ;;  %vm3435_vm8 = vcmask 523264  }
0x107f   :  { %v2949_v35 = vmul.f32 %v4192_v27, %v2948_v17  ;;  %2861 = vadd.xlane.f32.xlu1 %v2860_v32  ;;  %v3082_v55 = vpop.f32.mrf.mxu1 }
0x1080   :  { %v5426_v60 = vadd.f32 %v5421_v63, %v3082_v55 }
0x1081   :  { %v2950_v3 = vmul.f32 0.5, %v2949_v35 }
0x1082   :  { %v5429_v34 = vmul.f32 0.70710677, %v5426_v60 }
0x1083   :  { %v2951_v28 = vsub.f32 1.5, %v2950_v3 }
0x1084   :  { %v4194_v15 = vpop.eup %4193  ;;  %v5432_v47 = vand.u32 2147483647, %v5429_v34  ;;  %vm3378_vm7 = vcmp.lt.f32.partialorder %v5429_v34, 0.0 }
0x1085   :  { %v2952_v37 = vmul.f32 %v4192_v27, %v2951_v28  ;;  %v2978_v42 = vmul.f32 %v4194_v15, %v2924_v18  ;;  %vm2984_vm3 = vweird.f32 %v4194_v15 }
0x1086   :  { %v3122_v38 = vmul.f32 0.3275911, %v5432_v47  ;;  %vm2985_vm2 = vmor %vm2983_vm11, %vm2984_vm3  ;;  %v3330_v20 = vsub.f32 0.0, %v5432_v47 }
0x1087   :  { %v2956_v24 = vsel %vm2955_vm10, %v4192_v27, %v2952_v37  ;;  %v2979_v29 = vmul.f32 %v4194_v15, %v2978_v42  ;;  %v3085_v31 = vpop.f32.mrf.mxu1 }
0x1088   :  { %v3009_v11 = vmul.f32 %v2956_v24, %v5348_v33  ;;  %v3130_v57 = vadd.f32 1.0, %v3122_v38  ;;  %v5437_v0 = vadd.f32 %v5421_v63, %v3085_v31  ;;  %v3432_v33 = vld [vmem:[%s5742_s7 + $0x30] sm:$0xff]  ;;  %v3338_v35 = vmul.f32 %v3330_v20, %v5432_v47 }
0x1089   :  { %v2980_v25 = vmul.f32 0.5, %v2979_v29  ;;  %3469 = vmatpush.msra.mxu0 %v3432_v33 }
0x108a   :  { %4195 = vrcp.f32 %v3130_v57  ;;  %v5443_v51 = vmul.f32 0.70710677, %v5437_v0  ;;  %v3018_v2 = vmul.f32 %v5364_v30, %v3009_v11  ;;  %v3147_v50 = vand.u32 2147483647, %v3130_v57 }
0x108b   :  { %v2981_v14 = vsub.f32 1.5, %v2980_v25  ;;  %3470 = vmatpush.msra.mxu0 %v3431_v19  ;;  %vm3143_vm13 = vweird.f32 %v3130_v57  ;;  %v3346_v38 = vmul.f32 1.442695, %v3338_v35 }
0x108c   :  { %v5450_v43 = vand.u32 2147483647, %v5443_v51  ;;  %v5453_v10 = vadd.f32 %v5370_v53, %v3018_v2  ;;  %vm3148_vm15 = vcmp.eq.f32.partialorder %v3147_v50, 8.507059e+37  ;;  %vm3379_vm9 = vcmp.lt.f32.partialorder %v5443_v51, 0.0 }
0x108d   :  { %v2982_v46 = vmul.f32 %v4194_v15, %v2981_v14  ;;  %3471 = vmatpush.msra.mxu0 %v3430_v40 }
0x108e   :  { %v3123_v13 = vmul.f32 0.3275911, %v5450_v43  ;;  %3915 = vmatmul.msk.f32.gmra.mxu1 %vm46_vm0, %v5453_v10  ;;  %v3331_v31 = vsub.f32 0.0, %v5450_v43 }
0x108f   :  { %v2986_v61 = vsel %vm2985_vm2, %v4194_v15, %v2982_v46  ;;  %3472 = vmatpush.msra.mxu0 %v3429_v23 }
0x1090   :  { %v4196_v22 = vpop.eup %4195  ;;  %v3012_v4 = vmul.f32 %v2986_v61, %v5361_v26  ;;  %v3131_v5 = vadd.f32 1.0, %v3123_v13  ;;  %v3149_v26 = vand.u32 2147483648, %v3130_v57  ;;  %v3339_v14 = vmul.f32 %v3331_v31, %v5450_v43 }
0x1091   :  { %v3139_v62 = vmul.f32 %v4196_v22, %v3130_v57  ;;  %vm3144_vm12 = vweird.f32 %v4196_v22  ;;  %3473 = vmatpush.msra.mxu0 %v3428_v54 }
0x1092   :  { %v3021_v58 = vmul.f32 %v5364_v30, %v3012_v4  ;;  %4197 = vrcp.f32 %v3131_v5  ;;  %vm3145_vm14 = vmor %vm3143_vm13, %vm3144_vm12  ;;  %v3150_v45 = vor.u32 1.1754944e-38, %v3149_v26  ;;  %v3164_v32 = vand.u32 2147483648, %v3131_v5 }
0x1093   :  { %v3140_v21 = vsub.f32 1.0, %v3139_v62  ;;  %3474 = vmatpush.msra.mxu0 %v3427_v8  ;;  %v3162_v3 = vand.u32 2147483647, %v3131_v5  ;;  %vm3158_vm4 = vweird.f32 %v3131_v5  ;;  %4199 = vpow2.f32 %v3346_v38 }
0x1094   :  { %v3030_v1 = vadd.f32 %v5370_v53, %v3021_v58  ;;  %v3165_v42 = vor.u32 1.1754944e-38, %v3164_v32  ;;  %v3348_v61 = vmul.f32 1.442695, %v3339_v14  ;;  %v3402_v26 = vmul.f32 0.5, %v5426_v60  ;;  %v3091_v60 = vpop.f32.mrf.mxu2 }
0x1095   :  { %v3141_v39 = vmul.f32 %v4196_v22, %v3140_v21  ;;  %3475 = vmatpush.msra.mxu0 %v3426_v59  ;;  %vm3163_vm6 = vcmp.eq.f32.partialorder %v3162_v3, 8.507059e+37  ;;  %v3403_v59 = vmul.f32 0.5, %v5437_v0 }
0x1096   :  { %3918 = vmatmul.msk.f32.gmra.mxu2 %vm46_vm0, %v3030_v1  ;;  %4201 = vpow2.f32 %v3348_v61 }
0x1097   :  { %v3142_v9 = vadd.f32 %v4196_v22, %v3141_v39 }
0x1098   :  { %v4198_v41 = vpop.eup %4197 }
0x1099   :  { %v3146_v7 = vsel %vm3145_vm14, %v4196_v22, %v3142_v9  ;;  %v3154_v52 = vmul.f32 %v4198_v41, %v3131_v5  ;;  %vm3159_vm1 = vweird.f32 %v4198_v41  ;;  %v4200_v13 = vpop.eup %4199 }
0x109a   :  { %v3151_v6 = vsel %vm3148_vm15, %v3150_v45, %v3146_v7  ;;  %vm3160_vm5 = vmor %vm3158_vm4, %vm3159_vm1  ;;  %v5491_v7 = vadd.f32 %v5421_v63, %v3091_v60 }
0x109b   :  { %v3258_v27 = vmul.f32 1.0614054, %v3151_v6  ;;  %v3155_v18 = vsub.f32 1.0, %v3154_v52 }
0x109c   :  { %v4202_v50 = vpop.eup %4201  ;;  %v5494_v20 = vmul.f32 0.70710677, %v5491_v7 }
0x109d   :  { %v3266_v17 = vadd.f32 -1.4531521, %v3258_v27  ;;  %v3156_v55 = vmul.f32 %v4198_v41, %v3155_v18  ;;  %v3094_v27 = vpop.f32.mrf.mxu2 }
0x109e   :  { %v5498_v51 = vand.u32 2147483647, %v5494_v20  ;;  %v5501_v0 = vadd.f32 %v5421_v63, %v3094_v27 }
0x109f   :  { %v3274_v28 = vmul.f32 %v3266_v17, %v3151_v6  ;;  %v3157_v15 = vadd.f32 %v4198_v41, %v3156_v55 }
0x10a0   :  { %v3125_v17 = vmul.f32 0.3275911, %v5498_v51  ;;  %v5505_v32 = vmul.f32 0.70710677, %v5501_v0 }
0x10a1   :  { %v3282_v37 = vadd.f32 1.4214138, %v3274_v28  ;;  %v3161_v24 = vsel %vm3160_vm5, %v4198_v41, %v3157_v15 }
0x10a2   :  { %v3166_v11 = vsel %vm3163_vm6, %v3165_v42, %v3161_v24  ;;  %v3133_v3 = vadd.f32 1.0, %v3125_v17  ;;  %v5508_v28 = vand.u32 2147483647, %v5505_v32 }
0x10a3   :  { %v3290_v29 = vmul.f32 %v3282_v37, %v3151_v6  ;;  %v3259_v57 = vmul.f32 1.0614054, %v3166_v11 }
0x10a4   :  { %vm3188_vm12 = vweird.f32 %v3133_v3 }
0x10a5   :  { %v3298_v25 = vadd.f32 -0.28449672, %v3290_v29  ;;  %v3267_v47 = vadd.f32 -1.4531521, %v3259_v57  ;;  %v3126_v29 = vmul.f32 0.3275911, %v5508_v28 }
0x10a7   :  { %v3306_v56 = vmul.f32 %v3298_v25, %v3151_v6  ;;  %v3275_v2 = vmul.f32 %v3267_v47, %v3166_v11  ;;  %v3134_v47 = vadd.f32 1.0, %v3126_v29 }
0x10a9   :  { %v3314_v33 = vadd.f32 0.2548296, %v3306_v56  ;;  %v3283_v46 = vadd.f32 1.4214138, %v3275_v2  ;;  %vm3203_vm1 = vweird.f32 %v3134_v47 }
0x10ab   :  { %v3322_v19 = vmul.f32 %v3314_v33, %v3151_v6  ;;  %v3291_v22 = vmul.f32 %v3283_v46, %v3166_v11 }
0x10ad   :  { %v3362_v4 = vmul.f32 %v4200_v13, %v3322_v19  ;;  %v3299_v40 = vadd.f32 -0.28449672, %v3291_v22 }
0x10af   :  { %v3370_v62 = vsub.f32 1.0, %v3362_v4  ;;  %v3307_v5 = vmul.f32 %v3299_v40, %v3166_v11  ;;  %v3194_v40 = vand.u32 2147483648, %v3133_v3 }
0x10b1   :  { %v3386_v58 = vsub.f32 0.0, %v3370_v62  ;;  %v3315_v23 = vadd.f32 0.2548296, %v3307_v5 }
0x10b3   :  { %v3394_v21 = vsel %vm3378_vm7, %v3386_v58, %v3370_v62  ;;  %v3323_v39 = vmul.f32 %v3315_v23, %v3166_v11 }
0x10b4   :  { %v3410_v43 = vadd.f32 1.0, %v3394_v21  ;;  %v3195_v21 = vor.u32 1.1754944e-38, %v3194_v40 }
0x10b5   :  { %v3363_v54 = vmul.f32 %v4202_v50, %v3323_v39 }
0x10b6   :  { %v3418_v1 = vmul.f32 %v3410_v43, %v3402_v26 }
0x10b7   :  { %v3371_v8 = vsub.f32 1.0, %v3363_v54 }
0x10b8   :  { %3921 = vmatmul.msk.f32.vlgmr.msra.gmra.mxu0 %vm3435_vm8, %v3418_v1 }
0x10b9   :  { %v3387_v9 = vsub.f32 0.0, %v3371_v8 }
0x10bb   :  { %v3395_v45 = vsel %vm3379_vm9, %v3387_v9, %v3371_v8  ;;  %v3209_v8 = vand.u32 2147483648, %v3134_v47 }
0x10bc   :  { %v3411_v34 = vadd.f32 1.0, %v3395_v45  ;;  %v3207_v45 = vand.u32 2147483647, %v3134_v47 }
0x10bd   :  { %v3210_v60 = vor.u32 1.1754944e-38, %v3209_v8  ;;  %v3334_v8 = vsub.f32 0.0, %v5508_v28 }
0x10be   :  { %v3419_v41 = vmul.f32 %v3411_v34, %v3403_v59  ;;  %vm3208_vm5 = vcmp.eq.f32.partialorder %v3207_v45, 8.507059e+37 }
0x10c0   :  { %3922 = vmatmul.msk.f32.gmra.mxu0 %vm3435_vm8, %v3419_v41 }
0x10e4   :  { %v2907_v6 = vpop.xlane.xlu2 %2906 }
0x10e5   :  { %v2917_v52 = vmul.f32 %v2907_v6, %v4367_v16 }
0x10e7   :  { %v2925_v18 = vadd.f32 1e-12, %v2917_v52 }
0x10e9   :  { %4203 = vrsqrt.f32 %v2925_v18  ;;  %vm2993_vm3 = vweird.f32 %v2925_v18 }
0x10ea   :  { %4205 = vrcp.f32 %v3133_v3 }
0x10eb   :  { %4207 = vrcp.f32 %v3134_v47 }
0x10ef   :  { %v4204_v35 = vpop.eup %4203 }
0x10f0   :  { %v2988_v55 = vmul.f32 %v4204_v35, %v2925_v18  ;;  %vm2994_vm10 = vweird.f32 %v4204_v35  ;;  %v4206_v14 = vpop.eup %4205 }
0x10f1   :  { %vm2995_vm11 = vmor %vm2993_vm3, %vm2994_vm10  ;;  %v3184_v33 = vmul.f32 %v4206_v14, %v3133_v3  ;;  %v4208_v61 = vpop.eup %4207  ;;  %vm3189_vm2 = vweird.f32 %v4206_v14 }
0x10f2   :  { %v2989_v15 = vmul.f32 %v4204_v35, %v2988_v55  ;;  %v2862_v37 = vpop.xlane.xlu1 %2861  ;;  %v3199_v22 = vmul.f32 %v4208_v61, %v3134_v47  ;;  %vm3190_vm13 = vmor %vm3188_vm12, %vm3189_vm2  ;;  %vm3204_vm15 = vweird.f32 %v4208_v61 }
0x10f3   :  { %v2870_v42 = vmul.f32 %v2862_v37, %v4367_v16  ;;  %v3185_v19 = vsub.f32 1.0, %v3184_v33  ;;  %vm3205_vm4 = vmor %vm3203_vm1, %vm3204_vm15  ;;  %vm3382_vm15 = vcmp.lt.f32.partialorder %v5505_v32, 0.0 }
0x10f4   :  { %v2990_v38 = vmul.f32 0.5, %v2989_v15  ;;  %v3200_v62 = vsub.f32 1.0, %v3199_v22 }
0x10f5   :  { %v5512_v24 = vsub.f32 %v5416_v49, %v2870_v42  ;;  %v3186_v13 = vmul.f32 %v4206_v14, %v3185_v19 }
0x10f6   :  { %v2991_v31 = vsub.f32 1.5, %v2990_v38  ;;  %v3201_v26 = vmul.f32 %v4208_v61, %v3200_v62 }
0x10f7   :  { %v2886_v11 = vmul.f32 %v5512_v24, %v5512_v24  ;;  %v3187_v4 = vadd.f32 %v4206_v14, %v3186_v13 }
0x10f8   :  { %v2992_v57 = vmul.f32 %v4204_v35, %v2991_v31  ;;  %v3202_v1 = vadd.f32 %v4208_v61, %v3201_v26 }
0x10f9   :  { %v2908_v25 = vsel %vm46_vm0, %v2886_v11, 0.0  ;;  %v3191_v58 = vsel %vm3190_vm13, %v4206_v14, %v3187_v4 }
0x10fa   :  { %v2996_v56 = vsel %vm2995_vm11, %v4204_v35, %v2992_v57  ;;  %2909 = vadd.xlane.f32.xlu0 %v2908_v25  ;;  %v3206_v34 = vsel %vm3205_vm4, %v4208_v61, %v3202_v1 }
0x10fb   :  { %v3013_v2 = vmul.f32 %v2996_v56, %v5405_v48  ;;  %v3192_v48 = vand.u32 2147483647, %v3133_v3  ;;  %v5535_v6 = vsel %vm3208_vm5, %v3210_v60, %v3206_v34  ;;  %v3333_v56 = vsub.f32 0.0, %v5498_v51 }
0x10fc   :  { %v3262_v17 = vmul.f32 1.0614054, %v5535_v6 }
0x10fd   :  { %v3022_v49 = vmul.f32 %v5364_v30, %v3013_v2  ;;  %vm3193_vm14 = vcmp.eq.f32.partialorder %v3192_v48, 8.507059e+37  ;;  %v3341_v22 = vmul.f32 %v3333_v56, %v5498_v51 }
0x10fe   :  { %v5531_v39 = vsel %vm3193_vm14, %v3195_v21, %v3191_v58  ;;  %v3270_v42 = vadd.f32 -1.4531521, %v3262_v17  ;;  %vm3381_vm14 = vcmp.lt.f32.partialorder %v5494_v20, 0.0 }
0x10ff   :  { %v5521_v46 = vadd.f32 %v5370_v53, %v3022_v49  ;;  %v3261_v54 = vmul.f32 1.0614054, %v5531_v39  ;;  %v3352_v26 = vmul.f32 1.442695, %v3341_v22 }
0x1100   :  { %v3278_v14 = vmul.f32 %v3270_v42, %v5535_v6 }
0x1101   :  { %3919 = vmatmul.msk.f32.gmra.mxu2 %vm46_vm0, %v5521_v46  ;;  %v3269_v41 = vadd.f32 -1.4531521, %v3261_v54 }
0x1102   :  { %v3286_v4 = vadd.f32 1.4214138, %v3278_v14 }
0x1103   :  { %v3277_v18 = vmul.f32 %v3269_v41, %v5531_v39 }
0x1104   :  { %v3294_v1 = vmul.f32 %v3286_v4, %v5535_v6 }
0x1105   :  { %v3285_v37 = vadd.f32 1.4214138, %v3277_v18  ;;  %v3342_v18 = vmul.f32 %v3334_v8, %v5508_v28 }
0x1107   :  { %v3293_v47 = vmul.f32 %v3285_v37, %v5531_v39 }
0x1109   :  { %v3301_v13 = vadd.f32 -0.28449672, %v3293_v47 }
0x110b   :  { %v3088_v5 = vpop.f32.mrf.mxu1  ;;  %v3309_v21 = vmul.f32 %v3301_v13, %v5531_v39 }
0x110c   :  { %v5526_v23 = vadd.f32 %v5421_v63, %v3088_v5 }
0x110d   :  { %v3317_v60 = vadd.f32 0.2548296, %v3309_v21 }
0x110e   :  { %v5529_v43 = vmul.f32 0.70710677, %v5526_v23 }
0x1110   :  { %v3116_v50 = vand.u32 2147483647, %v5529_v43  ;;  %vm3380_vm13 = vcmp.lt.f32.partialorder %v5529_v43, 0.0 }
0x1112   :  { %v3124_v9 = vmul.f32 0.3275911, %v3116_v50  ;;  %v3332_v61 = vsub.f32 0.0, %v3116_v50 }
0x1114   :  { %v3132_v59 = vadd.f32 1.0, %v3124_v9  ;;  %v3340_v5 = vmul.f32 %v3332_v61, %v3116_v50 }
0x1116   :  { %4209 = vrcp.f32 %v3132_v59  ;;  %v3179_v31 = vand.u32 2147483648, %v3132_v59  ;;  %v3177_v57 = vand.u32 2147483647, %v3132_v59  ;;  %vm3173_vm7 = vweird.f32 %v3132_v59 }
0x1117   :  { %v3350_v34 = vmul.f32 1.442695, %v3340_v5 }
0x1118   :  { %v3180_v49 = vor.u32 1.1754944e-38, %v3179_v31  ;;  %vm3178_vm10 = vcmp.eq.f32.partialorder %v3177_v57, 8.507059e+37 }
0x1119   :  { %v3097_v52 = vpop.f32.mrf.mxu2 }
0x111a   :  { %v5538_v27 = vadd.f32 %v5421_v63, %v3097_v52  ;;  %v3302_v52 = vadd.f32 -0.28449672, %v3294_v1 }
0x111c   :  { %v5543_v35 = vmul.f32 0.70710677, %v5538_v27  ;;  %v4210_v55 = vpop.eup %4209  ;;  %v3310_v28 = vmul.f32 %v3302_v52, %v5535_v6 }
0x111d   :  { %v3169_v3 = vmul.f32 %v4210_v55, %v3132_v59  ;;  %vm3174_vm6 = vweird.f32 %v4210_v55 }
0x111e   :  { %v5546_v15 = vand.u32 2147483647, %v5543_v35  ;;  %vm3175_vm9 = vmor %vm3173_vm7, %vm3174_vm6  ;;  %v3318_v22 = vadd.f32 0.2548296, %v3310_v28  ;;  %vm3383_vm1 = vcmp.lt.f32.partialorder %v5543_v35, 0.0 }
0x111f   :  { %v3170_v38 = vsub.f32 1.0, %v3169_v3 }
0x1120   :  { %v3127_v29 = vmul.f32 0.3275911, %v5546_v15  ;;  %v3335_v56 = vsub.f32 0.0, %v5546_v15 }
0x1121   :  { %v3171_v11 = vmul.f32 %v4210_v55, %v3170_v38 }
0x1122   :  { %v3135_v25 = vadd.f32 1.0, %v3127_v29  ;;  %v3325_v29 = vmul.f32 %v3317_v60, %v5531_v39 }
0x1123   :  { %v3172_v2 = vadd.f32 %v4210_v55, %v3171_v11 }
0x1124   :  { %4211 = vrcp.f32 %v3135_v25  ;;  %v3224_v59 = vand.u32 2147483648, %v3135_v25  ;;  %v3222_v51 = vand.u32 2147483647, %v3135_v25  ;;  %vm3218_vm11 = vweird.f32 %v3135_v25 }
0x1125   :  { %v3176_v33 = vsel %vm3175_vm9, %v4210_v55, %v3172_v2  ;;  %4213 = vpow2.f32 %v3352_v26  ;;  %v5560_v55 = vld [vmem:[%s5744_s9] sm:$0xff]  ;;  %v3326_v26 = vmul.f32 %v3318_v22, %v5535_v6 }
0x1126   :  { %v3181_v19 = vsel %vm3178_vm10, %v3180_v49, %v3176_v33  ;;  %v5563_v3 = vperm.slane %v5560_v55, 5  ;;  %v3225_v42 = vor.u32 1.1754944e-38, %v3224_v59  ;;  %4215 = vpow2.f32 %v3350_v34 }
0x1127   :  { %v3260_v40 = vmul.f32 1.0614054, %v3181_v19  ;;  %vm3223_vm12 = vcmp.eq.f32.partialorder %v3222_v51, 8.507059e+37 }
0x1129   :  { %v3268_v48 = vadd.f32 -1.4531521, %v3260_v40 }
0x112a   :  { %v4212_v62 = vpop.eup %4211 }
0x112b   :  { %v3214_v58 = vmul.f32 %v4212_v62, %v3135_v25  ;;  %v3276_v54 = vmul.f32 %v3268_v48, %v3181_v19  ;;  %vm3219_vm3 = vweird.f32 %v4212_v62  ;;  %v3354_v25 = vmul.f32 1.442695, %v3342_v18  ;;  %v4214_v2 = vpop.eup %4213 }
0x112c   :  { %vm3220_vm2 = vmor %vm3218_vm11, %vm3219_vm3  ;;  %v3365_v13 = vmul.f32 %v4214_v2, %v3325_v29  ;;  %v4216_v4 = vpop.eup %4215  ;;  %v3405_v29 = vmul.f32 0.5, %v5491_v7  ;;  %v3407_v7 = vmul.f32 0.5, %v5538_v27 }
0x112d   :  { %v3215_v9 = vsub.f32 1.0, %v3214_v58  ;;  %v3284_v45 = vadd.f32 1.4214138, %v3276_v54  ;;  %4217 = vpow2.f32 %v3354_v25  ;;  %v3406_v25 = vmul.f32 0.5, %v5501_v0 }
0x112e   :  { %v3373_v21 = vsub.f32 1.0, %v3365_v13 }
0x112f   :  { %v3216_v41 = vmul.f32 %v4212_v62, %v3215_v9  ;;  %v3292_v50 = vmul.f32 %v3284_v45, %v3181_v19 }
0x1130   :  { %v3389_v59 = vsub.f32 0.0, %v3373_v21 }
0x1131   :  { %v3217_v17 = vadd.f32 %v4212_v62, %v3216_v41  ;;  %v3300_v37 = vadd.f32 -0.28449672, %v3292_v50  ;;  %v3404_v41 = vmul.f32 0.5, %v5526_v23 }
0x1132   :  { %v3397_v50 = vsel %vm3381_vm14, %v3389_v59, %v3373_v21 }
0x1133   :  { %v3221_v38 = vsel %vm3220_vm2, %v4212_v62, %v3217_v17  ;;  %v3308_v31 = vmul.f32 %v3300_v37, %v3181_v19  ;;  %v3343_v62 = vmul.f32 %v3335_v56, %v5546_v15  ;;  %v3413_v43 = vadd.f32 1.0, %v3397_v50 }
0x1134   :  { %v3226_v11 = vsel %vm3223_vm12, %v3225_v42, %v3221_v38 }
0x1135   :  { %v3477_v57 = vpop.f32.mrf.mxu0  ;;  %v3263_v47 = vmul.f32 1.0614054, %v3226_v11  ;;  %v3316_v49 = vadd.f32 0.2548296, %v3308_v31  ;;  %v3356_v54 = vmul.f32 1.442695, %v3343_v62  ;;  %v3421_v28 = vmul.f32 %v3413_v43, %v3405_v29 }
0x1136   :  { %v3478_v14 = vadd.f32 %v3477_v57, %v5563_v3 }
0x1137   :  { %v3271_v33 = vadd.f32 -1.4531521, %v3263_v47  ;;  %v3324_v39 = vmul.f32 %v3316_v49, %v3181_v19  ;;  %v4218_v19 = vpop.eup %4217  ;;  %4219 = vpow2.f32 %v3356_v54 }
0x1138   :  { %v5570_v61 = vadd.f32 %v3478_v14, %v5375_v12  ;;  %v3366_v15 = vmul.f32 %v4218_v19, %v3326_v26 }
0x1139   :  { %v3279_v40 = vmul.f32 %v3271_v33, %v3226_v11  ;;  %v3364_v5 = vmul.f32 %v4216_v4, %v3324_v39 }
0x113a   :  { %v3505_v48 = vsel %vm46_vm0, %v5570_v61, 0.0  ;;  %v3374_v18 = vsub.f32 1.0, %v3366_v15 }
0x113b   :  { %3506 = vadd.xlane.f32.xlu0 %v3505_v48  ;;  %v3287_v58 = vadd.f32 1.4214138, %v3279_v40  ;;  %v3372_v1 = vsub.f32 1.0, %v3364_v5 }
0x113c   :  { %v3390_v42 = vsub.f32 0.0, %v3374_v18 }
0x113d   :  { %v3295_v12 = vmul.f32 %v3287_v58, %v3226_v11  ;;  %v3480_v8 = vpop.f32.mrf.mxu0  ;;  %v3388_v9 = vsub.f32 0.0, %v3372_v1  ;;  %v4220_v37 = vpop.eup %4219 }
0x113e   :  { %v3398_v23 = vsel %vm3382_vm15, %v3390_v42, %v3374_v18 }
0x113f   :  { %v3303_v45 = vadd.f32 -0.28449672, %v3295_v12  ;;  %v3396_v34 = vsel %vm3380_vm13, %v3388_v9, %v3372_v1  ;;  %v3414_v20 = vadd.f32 1.0, %v3398_v23 }
0x1140   :  { %v3412_v51 = vadd.f32 1.0, %v3396_v34 }
0x1141   :  { %v3311_v60 = vmul.f32 %v3303_v45, %v3226_v11 }
0x1142   :  { %v3420_v6 = vmul.f32 %v3412_v51, %v3404_v41 }
0x1143   :  { %v3319_v52 = vadd.f32 0.2548296, %v3311_v60 }
0x1144   :  { %3923 = vmatmul.msk.f32.gmra.mxu0 %vm3435_vm8, %v3420_v6 }
0x1145   :  { %v3327_v17 = vmul.f32 %v3319_v52, %v3226_v11  ;;  %v3422_v11 = vmul.f32 %v3414_v20, %v3406_v25 }
0x1147   :  { %v3367_v38 = vmul.f32 %v4220_v37, %v3327_v17 }
0x1149   :  { %v3375_v31 = vsub.f32 1.0, %v3367_v38 }
0x114b   :  { %v3391_v57 = vsub.f32 0.0, %v3375_v31 }
0x114c   :  { %3924 = vmatmul.msk.f32.gmra.mxu0 %vm3435_vm8, %v3421_v28 }
0x114d   :  { %v3399_v47 = vsel %vm3383_vm1, %v3391_v57, %v3375_v31 }
0x114e   :  { %v3415_v56 = vadd.f32 1.0, %v3399_v47 }
0x1150   :  { %v3423_v14 = vmul.f32 %v3415_v56, %v3407_v7 }
0x1154   :  { %3925 = vmatmul.msk.f32.gmra.mxu0 %vm3435_vm8, %v3422_v11 }
0x115c   :  { %3926 = vmatmul.msk.f32.gmra.mxu0 %vm3435_vm8, %v3423_v14 }
0x116d   :  { %v2910_v32 = vpop.xlane.xlu0 %2909 }
0x116e   :  { %v2918_v2 = vmul.f32 %v2910_v32, %v4367_v16 }
0x1170   :  { %v2926_v49 = vadd.f32 1e-12, %v2918_v2 }
0x1172   :  { %4221 = vrsqrt.f32 %v2926_v49  ;;  %vm3003_vm5 = vweird.f32 %v2926_v49 }
0x1178   :  { %v4222_v33 = vpop.eup %4221 }
0x1179   :  { %v2998_v13 = vmul.f32 %v4222_v33, %v2926_v49  ;;  %vm3004_vm4 = vweird.f32 %v4222_v33 }
0x117a   :  { %vm3005_vm6 = vmor %vm3003_vm5, %vm3004_vm4 }
0x117b   :  { %v2999_v0 = vmul.f32 %v4222_v33, %v2998_v13 }
0x117d   :  { %v3000_v22 = vmul.f32 0.5, %v2999_v0 }
0x117f   :  { %v3001_v39 = vsub.f32 1.5, %v3000_v22 }
0x1181   :  { %v3002_v35 = vmul.f32 %v4222_v33, %v3001_v39 }
0x1183   :  { %v3006_v4 = vsel %vm3005_vm6, %v4222_v33, %v3002_v35 }
0x1184   :  { %v3014_v27 = vmul.f32 %v3006_v4, %v5512_v24  ;;  %v3100_v40 = vpop.f32.mrf.mxu2 }
0x1185   :  { %v3101_v62 = vadd.f32 %v5421_v63, %v3100_v40 }
0x1186   :  { %v3023_v48 = vmul.f32 %v5364_v30, %v3014_v27 }
0x1187   :  { %v3112_v5 = vmul.f32 0.70710677, %v3101_v62  ;;  %v3408_v31 = vmul.f32 0.5, %v3101_v62 }
0x1188   :  { %v5593_v58 = vadd.f32 %v5370_v53, %v3023_v48 }
0x1189   :  { %v3120_v21 = vand.u32 2147483647, %v3112_v5  ;;  %vm3384_vm11 = vcmp.lt.f32.partialorder %v3112_v5, 0.0 }
0x118a   :  { %3920 = vmatmul.msk.f32.gmra.mxu2 %vm46_vm0, %v5593_v58 }
0x118b   :  { %v3128_v26 = vmul.f32 0.3275911, %v3120_v21  ;;  %v3336_v15 = vsub.f32 0.0, %v3120_v21 }
0x118d   :  { %v3136_v1 = vadd.f32 1.0, %v3128_v26  ;;  %v3344_v51 = vmul.f32 %v3336_v15, %v3120_v21 }
0x118f   :  { %4223 = vrcp.f32 %v3136_v1  ;;  %v3239_v24 = vand.u32 2147483648, %v3136_v1  ;;  %v3237_v19 = vand.u32 2147483647, %v3136_v1  ;;  %vm3233_vm9 = vweird.f32 %v3136_v1 }
0x1190   :  { %v3358_v52 = vmul.f32 1.442695, %v3344_v51 }
0x1191   :  { %v3240_v30 = vor.u32 1.1754944e-38, %v3239_v24  ;;  %vm3238_vm3 = vcmp.eq.f32.partialorder %v3237_v19, 8.507059e+37 }
0x1192   :  { %4225 = vpow2.f32 %v3358_v52 }
0x1195   :  { %v4224_v12 = vpop.eup %4223 }
0x1196   :  { %v3229_v54 = vmul.f32 %v4224_v12, %v3136_v1  ;;  %vm3234_vm7 = vweird.f32 %v4224_v12 }
0x1197   :  { %vm3235_vm10 = vmor %vm3233_vm9, %vm3234_vm7 }
0x1198   :  { %v3230_v8 = vsub.f32 1.0, %v3229_v54  ;;  %v4226_v42 = vpop.eup %4225 }
0x119a   :  { %v3231_v9 = vmul.f32 %v4224_v12, %v3230_v8 }
0x119c   :  { %v3232_v45 = vadd.f32 %v4224_v12, %v3231_v9 }
0x119e   :  { %v3236_v53 = vsel %vm3235_vm10, %v4224_v12, %v3232_v45 }
0x119f   :  { %v3241_v59 = vsel %vm3238_vm3, %v3240_v30, %v3236_v53 }
0x11a0   :  { %v3264_v34 = vmul.f32 1.0614054, %v3241_v59 }
0x11a2   :  { %v3272_v41 = vadd.f32 -1.4531521, %v3264_v34 }
0x11a4   :  { %v3280_v60 = vmul.f32 %v3272_v41, %v3241_v59 }
0x11a6   :  { %v3288_v6 = vadd.f32 1.4214138, %v3280_v60 }
0x11a8   :  { %v3296_v50 = vmul.f32 %v3288_v6, %v3241_v59 }
0x11aa   :  { %v3304_v18 = vadd.f32 -0.28449672, %v3296_v50 }
0x11ac   :  { %v3312_v17 = vmul.f32 %v3304_v18, %v3241_v59 }
0x11ae   :  { %v3320_v37 = vadd.f32 0.2548296, %v3312_v17  ;;  %v3507_v15 = vpop.xlane.xlu0 %3506 }
0x11af   :  { %v3523_v60 = vmul.f32 %v3507_v15, %v4367_v16 }
0x11b0   :  { %v3328_v43 = vmul.f32 %v3320_v37, %v3241_v59 }
0x11b2   :  { %v3368_v38 = vmul.f32 %v4226_v42, %v3328_v43  ;;  %v5615_v43 = vsub.f32 %v5570_v61, %v3523_v60  ;;  %v3667_v60 = vld [vmem:[%s5743_s8 + $0x8] sm:$0xff] }
0x11b4   :  { %v3376_v29 = vsub.f32 1.0, %v3368_v38 }
0x11b6   :  { %v3392_v28 = vsub.f32 0.0, %v3376_v29 }
0x11b8   :  { %v3400_v23 = vsel %vm3384_vm11, %v3392_v28, %v3376_v29 }
0x11b9   :  { %v3416_v20 = vadd.f32 1.0, %v3400_v23 }
0x11bb   :  { %v3424_v57 = vmul.f32 %v3416_v20, %v3408_v31 }
0x11bd   :  { %3927 = vmatmul.msk.f32.gmra.mxu0 %vm3435_vm8, %v3424_v57  ;;  %v3535_v57 = vmul.f32 %v5615_v43, %v5615_v43 }
0x11c1   :  { %v3482_v25 = vpop.f32.mrf.mxu0 }
0x11c2   :  { %v3483_v11 = vadd.f32 %v3482_v25, %v5563_v3 }
0x11c4   :  { %v3500_v47 = vadd.f32 %v3483_v11, %v5453_v10  ;;  %v3541_v11 = vsel %vm46_vm0, %v3535_v57, 0.0 }
0x11c6   :  { %v3508_v56 = vsel %vm46_vm0, %v3500_v47, 0.0 }
0x11c7   :  { %3509 = vadd.xlane.f32.xlu2 %v3508_v56 }
0x11c9   :  { %v5601_v7 = vpop.f32.mrf.mxu0 }
0x11ca   :  { %v3486_v25 = vadd.f32 %v5601_v7, %v5563_v3 }
0x11d1   :  { %v3488_v14 = vpop.f32.mrf.mxu0 }
0x11d2   :  { %v3489_v32 = vadd.f32 %v3488_v14, %v5563_v3 }
0x11d4   :  { %v5605_v2 = vadd.f32 %v3489_v32, %v5399_v36 }
0x11d6   :  { %v3514_v49 = vsel %vm46_vm0, %v5605_v2, 0.0 }
0x11d7   :  { %3515 = vadd.xlane.f32.xlu1 %v3514_v49 }
0x11d9   :  { %v3491_v33 = vpop.f32.mrf.mxu0 }
0x120d   :  { %v3103_v13 = vpop.f32.mrf.mxu2 }
0x120e   :  { %v3104_v0 = vadd.f32 %v5421_v63, %v3103_v13 }
0x1210   :  { %v3113_v10 = vmul.f32 0.70710677, %v3104_v0  ;;  %v3409_v31 = vmul.f32 0.5, %v3104_v0 }
0x1212   :  { %v3121_v22 = vand.u32 2147483647, %v3113_v10  ;;  %vm3385_vm15 = vcmp.lt.f32.partialorder %v3113_v10, 0.0 }
0x1214   :  { %v3129_v39 = vmul.f32 0.3275911, %v3121_v22  ;;  %v3337_v63 = vsub.f32 0.0, %v3121_v22 }
0x1216   :  { %v3137_v35 = vadd.f32 1.0, %v3129_v39  ;;  %v3345_v8 = vmul.f32 %v3337_v63, %v3121_v22 }
0x1218   :  { %4227 = vrcp.f32 %v3137_v35  ;;  %v3254_v62 = vand.u32 2147483648, %v3137_v35  ;;  %v3252_v36 = vand.u32 2147483647, %v3137_v35  ;;  %vm3248_vm12 = vweird.f32 %v3137_v35 }
0x1219   :  { %v3360_v19 = vmul.f32 1.442695, %v3345_v8 }
0x121a   :  { %v3255_v21 = vor.u32 1.1754944e-38, %v3254_v62  ;;  %vm3253_vm14 = vcmp.eq.f32.partialorder %v3252_v36, 8.507059e+37 }
0x121b   :  { %4229 = vpow2.f32 %v3360_v19 }
0x121e   :  { %v4228_v4 = vpop.eup %4227 }
0x121f   :  { %v3244_v27 = vmul.f32 %v4228_v4, %v3137_v35  ;;  %vm3249_vm2 = vweird.f32 %v4228_v4 }
0x1220   :  { %vm3250_vm13 = vmor %vm3248_vm12, %vm3249_vm2 }
0x1221   :  { %v3245_v40 = vsub.f32 1.0, %v3244_v27  ;;  %v4230_v41 = vpop.eup %4229 }
0x1223   :  { %v3246_v48 = vmul.f32 %v4228_v4, %v3245_v40 }
0x1225   :  { %v3247_v5 = vadd.f32 %v4228_v4, %v3246_v48 }
0x1227   :  { %v3251_v26 = vsel %vm3250_vm13, %v4228_v4, %v3247_v5 }
0x1228   :  { %v3256_v1 = vsel %vm3253_vm14, %v3255_v21, %v3251_v26  ;;  %vm3660_vm14 = vcmask 1040384  }
0x1229   :  { %v3265_v12 = vmul.f32 1.0614054, %v3256_v1 }
0x122b   :  { %v3273_v54 = vadd.f32 -1.4531521, %v3265_v12 }
0x122d   :  { %v3281_v24 = vmul.f32 %v3273_v54, %v3256_v1 }
0x122f   :  { %v3289_v9 = vadd.f32 1.4214138, %v3281_v24 }
0x1231   :  { %v3297_v45 = vmul.f32 %v3289_v9, %v3256_v1 }
0x1233   :  { %v3305_v30 = vadd.f32 -0.28449672, %v3297_v45 }
0x1235   :  { %v3313_v53 = vmul.f32 %v3305_v30, %v3256_v1 }
0x1237   :  { %v3321_v59 = vadd.f32 0.2548296, %v3313_v53 }
0x1239   :  { %v3329_v34 = vmul.f32 %v3321_v59, %v3256_v1  ;;  %v3669_v59 = vld [vmem:[%s5743_s8 + $0x18] sm:$0xff] }
0x123a   :  { %v3493_v51 = vpop.f32.mrf.mxu0  ;;  %v3510_v50 = vpop.xlane.xlu2 %3509  ;;  %3686 = vmatpush.msra.mxu1 %v3669_v59 }
0x123b   :  { %v3369_v6 = vmul.f32 %v4230_v41, %v3329_v34  ;;  %v3494_v52 = vadd.f32 %v3493_v51, %v5563_v3  ;;  %v3524_v37 = vmul.f32 %v3510_v50, %v4367_v16  ;;  %v3668_v34 = vld [vmem:[%s5743_s8 + $0x10] sm:$0xff] }
0x123c   :  { %3687 = vmatpush.msra.mxu1 %v3668_v34 }
0x123d   :  { %v3377_v18 = vsub.f32 1.0, %v3369_v6  ;;  %v3503_v17 = vadd.f32 %v3494_v52, %v5521_v46  ;;  %v5617_v38 = vsub.f32 %v3500_v47, %v3524_v37  ;;  %v3501_v47 = vadd.f32 %v3486_v25, %v5391_v44 }
0x123e   :  { %3688 = vmatpush.msra.mxu1 %v3667_v60 }
0x123f   :  { %v3393_v42 = vsub.f32 0.0, %v3377_v18  ;;  %v3517_v29 = vsel %vm46_vm0, %v3503_v17, 0.0  ;;  %v3536_v23 = vmul.f32 %v5617_v38, %v5617_v38  ;;  %v3511_v49 = vsel %vm46_vm0, %v3501_v47, 0.0 }
0x1240   :  { %3518 = vadd.xlane.f32.xlu2 %v3517_v29 }
0x1241   :  { %v3401_v28 = vsel %vm3385_vm15, %v3393_v42, %v3377_v18  ;;  %v3544_v46 = vsel %vm46_vm0, %v3536_v23, 0.0  ;;  %v3666_v18 = vld [vmem:[%s5743_s8] sm:$0xff]  ;;  %vm3662_vm15 = vcmask 1041408  }
0x1242   :  { %v3417_v20 = vadd.f32 1.0, %v3401_v28  ;;  %3545 = vadd.xlane.f32.xlu1 %v3544_v46  ;;  %3689 = vmatpush.msra.mxu1 %v3666_v18 }
0x1244   :  { %v3425_v61 = vmul.f32 %v3417_v20, %v3409_v31 }
0x1246   :  { %3928 = vmatmul.msk.f32.gmra.mxu0 %vm3435_vm8, %v3425_v61 }
0x1248   :  { %3542 = vadd.xlane.f32.xlu2 %v3541_v11 }
0x124a   :  { %v3516_v56 = vpop.xlane.xlu1 %3515 }
0x124b   :  { %v3526_v14 = vmul.f32 %v3516_v56, %v4367_v16 }
0x124d   :  { %v5632_v32 = vsub.f32 %v5605_v2, %v3526_v14 }
0x124f   :  { %v3538_v33 = vmul.f32 %v5632_v32, %v5632_v32 }
0x1250   :  { %3512 = vadd.xlane.f32.xlu2 %v3511_v49  ;;  %v5674_v49 = vperm.slane %v5560_v55, 6 }
0x1251   :  { %v3550_v13 = vsel %vm46_vm0, %v3538_v33, 0.0 }
0x1252   :  { %3551 = vadd.xlane.f32.xlu0 %v3550_v13 }
0x12b3   :  { %v3519_v7 = vpop.xlane.xlu2 %3518 }
0x12b4   :  { %v3527_v0 = vmul.f32 %v3519_v7, %v4367_v16 }
0x12b5   :  { %v3546_v26 = vpop.xlane.xlu1 %3545 }
0x12b6   :  { %v5639_v10 = vsub.f32 %v3503_v17, %v3527_v0  ;;  %v3560_v1 = vmul.f32 %v3546_v26, %v4367_v16 }
0x12b8   :  { %v3539_v44 = vmul.f32 %v5639_v10, %v5639_v10  ;;  %v3566_v12 = vadd.f32 1e-12, %v3560_v1 }
0x12ba   :  { %v3553_v2 = vsel %vm46_vm0, %v3539_v44, 0.0  ;;  %vm3587_vm6 = vweird.f32 %v3566_v12 }
0x12bb   :  { %3554 = vadd.xlane.f32.xlu1 %v3553_v2  ;;  %v3543_v22 = vpop.xlane.xlu2 %3542 }
0x12c3   :  { %v3496_v39 = vpop.f32.mrf.mxu0  ;;  %v3513_v35 = vpop.xlane.xlu2 %3512 }
0x12c4   :  { %v3497_v4 = vadd.f32 %v3496_v39, %v5563_v3  ;;  %v3525_v27 = vmul.f32 %v3513_v35, %v4367_v16 }
0x12c5   :  { %v3552_v21 = vpop.xlane.xlu0 %3551 }
0x12c6   :  { %v5647_v40 = vadd.f32 %v3497_v4, %v5593_v58  ;;  %v5649_v62 = vsub.f32 %v3501_v47, %v3525_v27  ;;  %v3562_v3 = vmul.f32 %v3552_v21, %v4367_v16  ;;  %v3559_v58 = vmul.f32 %v3543_v22, %v4367_v16 }
0x12c8   :  { %v3520_v48 = vsel %vm46_vm0, %v5647_v40, 0.0  ;;  %v3537_v36 = vmul.f32 %v5649_v62, %v5649_v62  ;;  %v3568_v63 = vadd.f32 1e-12, %v3562_v3  ;;  %v3565_v54 = vadd.f32 1e-12, %v3559_v58 }
0x12c9   :  { %3521 = vadd.xlane.f32.xlu0 %v3520_v48 }
0x12ca   :  { %v3547_v5 = vsel %vm46_vm0, %v3537_v36, 0.0  ;;  %4231 = vrsqrt.f32 %v3568_v63  ;;  %vm3607_vm5 = vweird.f32 %v3568_v63  ;;  %vm3577_vm3 = vweird.f32 %v3565_v54 }
0x12cb   :  { %4233 = vrsqrt.f32 %v3566_v12 }
0x12cc   :  { %4235 = vrsqrt.f32 %v3565_v54 }
0x12d0   :  { %v4232_v8 = vpop.eup %4231 }
0x12d1   :  { %3548 = vadd.xlane.f32.xlu0 %v3547_v5  ;;  %v4234_v24 = vpop.eup %4233  ;;  %v3602_v19 = vmul.f32 %v4232_v8, %v3568_v63  ;;  %vm3608_vm1 = vweird.f32 %v4232_v8 }
0x12d2   :  { %v4236_v9 = vpop.eup %4235  ;;  %v3582_v45 = vmul.f32 %v4234_v24, %v3566_v12  ;;  %vm3588_vm4 = vweird.f32 %v4234_v24  ;;  %vm3609_vm9 = vmor %vm3607_vm5, %vm3608_vm1  ;;  %vm3664_vm1 = vcmask 1042432  }
0x12d3   :  { %v3572_v30 = vmul.f32 %v4236_v9, %v3565_v54  ;;  %v3603_v53 = vmul.f32 %v4232_v8, %v3602_v19  ;;  %vm3578_vm7 = vweird.f32 %v4236_v9  ;;  %vm3589_vm10 = vmor %vm3587_vm6, %vm3588_vm4 }
0x12d4   :  { %v3583_v15 = vmul.f32 %v4234_v24, %v3582_v45  ;;  %vm3579_vm11 = vmor %vm3577_vm3, %vm3578_vm7  ;;  %vm3726_vm3 = vcmask 785408  }
0x12d5   :  { %v3573_v41 = vmul.f32 %v4236_v9, %v3572_v30  ;;  %v3604_v51 = vmul.f32 0.5, %v3603_v53 }
0x12d6   :  { %v3584_v6 = vmul.f32 0.5, %v3583_v15 }
0x12d7   :  { %v3574_v17 = vmul.f32 0.5, %v3573_v41  ;;  %v3605_v37 = vsub.f32 1.5, %v3604_v51 }
0x12d8   :  { %v3585_v29 = vsub.f32 1.5, %v3584_v6 }
0x12d9   :  { %v3575_v28 = vsub.f32 1.5, %v3574_v17  ;;  %v3606_v23 = vmul.f32 %v4232_v8, %v3605_v37 }
0x12da   :  { %v3586_v31 = vmul.f32 %v4234_v24, %v3585_v29 }
0x12db   :  { %v3576_v20 = vmul.f32 %v4236_v9, %v3575_v28  ;;  %v3610_v57 = vsel %vm3609_vm9, %v4232_v8, %v3606_v23  ;;  %v4036_v23 = vld [vmem:[%s5744_s9 + $0x8] ss:$0 sm:$0xff]  ;;  %s4290_s9 = smov 32  }
0x12dc   :  { %v3590_v61 = vsel %vm3589_vm10, %v4234_v24, %v3586_v31  ;;  %v3634_v47 = vmul.f32 %v3610_v57, %v5632_v32  ;;  %v5684_v32 = vperm.slane %v5560_v55, 7 }
0x12dd   :  { %v3580_v11 = vsel %vm3579_vm11, %v4236_v9, %v3576_v20  ;;  %v3632_v33 = vmul.f32 %v3590_v61, %v5617_v38 }
0x12de   :  { %v3631_v0 = vmul.f32 %v3580_v11, %v5615_v43  ;;  %v3641_v2 = vmul.f32 %v5674_v49, %v3634_v47 }
0x12df   :  { %v3639_v39 = vmul.f32 %v5674_v49, %v3632_v33 }
0x12e0   :  { %v3638_v4 = vmul.f32 %v5674_v49, %v3631_v0  ;;  %v3648_v27 = vadd.f32 %v5684_v32, %v3641_v2 }
0x12e1   :  { %v5693_v48 = vadd.f32 %v5684_v32, %v3639_v39 }
0x12e2   :  { %v3645_v36 = vadd.f32 %v5684_v32, %v3638_v4  ;;  %v3655_v21 = vrot.slane %v3648_v27, 6 }
0x12e3   :  { %v3652_v3 = vrot.slane %v5693_v48, 7 }
0x12e5   :  { %v3661_v58 = vsel %vm3660_vm14, %v3645_v36, %v3652_v3 }
0x12e6   :  { %v3663_v63 = vsel %vm3662_vm15, %v3661_v58, %v3655_v21 }
0x132e   :  { %v3555_v52 = vpop.xlane.xlu1 %3554 }
0x132f   :  { %v3563_v50 = vmul.f32 %v3555_v52, %v4367_v16 }
0x1331   :  { %v3569_v42 = vadd.f32 1e-12, %v3563_v50  ;;  %v3695_v50 = vsel %vm46_vm0, %v5693_v48, 0.0 }
0x1333   :  { %4237 = vrsqrt.f32 %v3569_v42  ;;  %vm3617_vm12 = vweird.f32 %v3569_v42 }
0x1339   :  { %v4238_v46 = vpop.eup %4237 }
0x133a   :  { %v3612_v25 = vmul.f32 %v4238_v46, %v3569_v42  ;;  %vm3618_vm2 = vweird.f32 %v4238_v46 }
0x133b   :  { %vm3619_vm13 = vmor %vm3617_vm12, %vm3618_vm2 }
0x133c   :  { %v3613_v56 = vmul.f32 %v4238_v46, %v3612_v25  ;;  %v3522_v14 = vpop.xlane.xlu0 %3521 }
0x133d   :  { %v3528_v13 = vmul.f32 %v3522_v14, %v4367_v16 }
0x133e   :  { %v3614_v7 = vmul.f32 0.5, %v3613_v56 }
0x133f   :  { %v5680_v44 = vsub.f32 %v5647_v40, %v3528_v13 }
0x1340   :  { %v3615_v22 = vsub.f32 1.5, %v3614_v7 }
0x1341   :  { %v3540_v38 = vmul.f32 %v5680_v44, %v5680_v44 }
0x1342   :  { %v3616_v35 = vmul.f32 %v4238_v46, %v3615_v22 }
0x1343   :  { %v3556_v43 = vsel %vm46_vm0, %v3540_v38, 0.0 }
0x1344   :  { %v3620_v40 = vsel %vm3619_vm13, %v4238_v46, %v3616_v35  ;;  %3557 = vadd.xlane.f32.xlu1 %v3556_v43 }
0x1345   :  { %v3635_v55 = vmul.f32 %v3620_v40, %v5639_v10  ;;  %v3549_v10 = vpop.xlane.xlu0 %3548 }
0x1346   :  { %v3561_v54 = vmul.f32 %v3549_v10, %v4367_v16 }
0x1347   :  { %v3642_v5 = vmul.f32 %v5674_v49, %v3635_v55 }
0x1348   :  { %v3567_v8 = vadd.f32 1e-12, %v3561_v54 }
0x1349   :  { %v5699_v26 = vadd.f32 %v5684_v32, %v3642_v5 }
0x134a   :  { %4239 = vrsqrt.f32 %v3567_v8  ;;  %vm3597_vm5 = vweird.f32 %v3567_v8 }
0x134b   :  { %v3658_v1 = vrot.slane %v5699_v26, 5  ;;  %v3728_v13 = vsel %vm46_vm0, %v5699_v26, 0.0 }
0x134d   :  { %v3665_v12 = vsel %vm3664_vm1, %v3663_v63, %v3658_v1 }
0x134e   :  { %3929 = vmatmul.msk.f32.vlgmr.msra.gmra.mxu1 %vm46_vm0, %v3665_v12 }
0x1350   :  { %v4240_v24 = vpop.eup %4239 }
0x1351   :  { %v3592_v9 = vmul.f32 %v4240_v24, %v3567_v8  ;;  %vm3598_vm4 = vweird.f32 %v4240_v24 }
0x1352   :  { %vm3599_vm6 = vmor %vm3597_vm5, %vm3598_vm4 }
0x1353   :  { %v3593_v19 = vmul.f32 %v4240_v24, %v3592_v9 }
0x1355   :  { %v3594_v45 = vmul.f32 0.5, %v3593_v19 }
0x1357   :  { %v3595_v30 = vsub.f32 1.5, %v3594_v45 }
0x1359   :  { %v3596_v53 = vmul.f32 %v4240_v24, %v3595_v30 }
0x135b   :  { %v3600_v59 = vsel %vm3599_vm6, %v4240_v24, %v3596_v53 }
0x135c   :  { %v3633_v15 = vmul.f32 %v3600_v59, %v5649_v62 }
0x135e   :  { %v3640_v34 = vmul.f32 %v5674_v49, %v3633_v15 }
0x1360   :  { %v3647_v41 = vadd.f32 %v5684_v32, %v3640_v34 }
0x1362   :  { %v3696_v6 = vsel %vm46_vm0, %v3647_v41, 0.0 }
0x1363   :  { %v3697_v18 = vadd.f32 %v3696_v6, %v3695_v50 }
0x1365   :  { %v3698_v17 = vrot.slane %v3697_v18, 4 }
0x1367   :  { %v3699_v62 = vadd.f32 %v3698_v17, %v3697_v18 }
0x13b7   :  { %v3558_v51 = vpop.xlane.xlu1 %3557 }
0x13b8   :  { %v3564_v60 = vmul.f32 %v3558_v51, %v4367_v16  ;;  %v3700_v16 = vrot.slane %v3699_v62, 2 }
0x13ba   :  { %v3570_v52 = vadd.f32 1e-12, %v3564_v60  ;;  %v3701_v25 = vadd.f32 %v3700_v16, %v3699_v62 }
0x13bc   :  { %4241 = vrsqrt.f32 %v3570_v52  ;;  %vm3627_vm9 = vweird.f32 %v3570_v52  ;;  %v3702_v56 = vrot.slane %v3701_v25, 1 }
0x13be   :  { %v3703_v22 = vadd.f32 %v3702_v56, %v3701_v25 }
0x13c2   :  { %v4242_v37 = vpop.eup %4241 }
0x13c3   :  { %v3622_v42 = vmul.f32 %v4242_v37, %v3570_v52  ;;  %vm3628_vm7 = vweird.f32 %v4242_v37 }
0x13c4   :  { %vm3629_vm10 = vmor %vm3627_vm9, %vm3628_vm7 }
0x13c5   :  { %v3623_v29 = vmul.f32 %v4242_v37, %v3622_v42 }
0x13c7   :  { %v3624_v28 = vmul.f32 0.5, %v3623_v29 }
0x13c9   :  { %v3625_v31 = vsub.f32 1.5, %v3624_v28 }
0x13cb   :  { %v3626_v20 = vmul.f32 %v4242_v37, %v3625_v31  ;;  %v3691_v46 = vpop.f32.mrf.mxu1 }
0x13cc   :  { %v3692_v57 = vadd.f32 %v4036_v23, %v3691_v46 }
0x13cd   :  { %v3630_v61 = vsel %vm3629_vm10, %v4242_v37, %v3626_v20 }
0x13ce   :  { %v3636_v11 = vmul.f32 %v3630_v61, %v5680_v44  ;;  %4243 = vtanh.f32 %v3692_v57  ;;  %v3704_v44 = vsub.f32 %v3703_v22, %v5693_v48  ;;  %v3706_v48 = vrot.slane %v3647_v41, 7 }
0x13d0   :  { %v3643_v47 = vmul.f32 %v5674_v49, %v3636_v11  ;;  %v3709_v49 = vmul.f32 0.06666667, %v3704_v44  ;;  %v3708_v1 = vsub.f32 %v3704_v44, %v3706_v48 }
0x13d2   :  { %v3650_v14 = vadd.f32 %v5684_v32, %v3643_v47  ;;  %v3710_v58 = vmul.f32 0.071428575, %v3708_v1 }
0x13d4   :  { %v4244_v33 = vpop.eup %4243  ;;  %v3729_v7 = vsel %vm46_vm0, %v3650_v14, 0.0  ;;  %v3739_v40 = vrot.slane %v3650_v14, 7 }
0x13d5   :  { %v3730_v0 = vadd.f32 %v3729_v7, %v3728_v13  ;;  %v3712_v2 = vrot.slane %v4244_v33, 1 }
0x13d7   :  { %3713 = vrot.lane.b32.xlu2 %v3712_v2, %s4290_s9  ;;  %v3731_v39 = vrot.slane %v3730_v0, 4 }
0x13d9   :  { %v3732_v38 = vadd.f32 %v3731_v39, %v3730_v0 }
0x13db   :  { %v3733_v35 = vrot.slane %v3732_v38, 2 }
0x13dd   :  { %v3734_v4 = vadd.f32 %v3733_v35, %v3732_v38 }
0x13df   :  { %3717 = vrot.lane.b32.xlu2 %v3709_v49, %s4282_s1  ;;  %v3735_v32 = vrot.slane %v3734_v4, 1 }
0x13e1   :  { %v3736_v43 = vadd.f32 %v3735_v32, %v3734_v4 }
0x13e3   :  { %v3737_v27 = vsub.f32 %v3736_v43, %v5699_v26 }
0x13e5   :  { %v3742_v55 = vmul.f32 0.06666667, %v3737_v27  ;;  %v3741_v36 = vsub.f32 %v3737_v27, %v3739_v40 }
0x13e7   :  { %v3745_v5 = vrot.slane %v3742_v55, 6  ;;  %v3743_v21 = vmul.f32 0.071428575, %v3741_v36 }
0x13e9   :  { %3746 = vrot.lane.b32.xlu1 %v3745_v5, %s4282_s1  ;;  %v3750_v3 = vrot.slane %v3743_v21, 6  ;;  %s3766_s1 = sshll.u32 %s4291_s19, 4  ;;  %s3767_s1 = int_to_ptr.vmem [resolvable:$true] %s3766_s1 }
0x13eb   :  { %3751 = vrot.lane.b32.xlu0 %v3750_v3, %s4279_s14 }
0x13f3   :  { %3721 = vrot.lane.b32.xlu0 %v3710_v58, %s4279_s14 }
0x1431   :  { %v3714_v63 = vpop.permute.xlu2 %3713 }
0x1432   :  { %v3724_v26 = vsel %vm46_vm0, %v4244_v33, %v3714_v63 }
0x1439   :  { %v3718_v8 = vpop.permute.xlu2 %3717 }
0x143a   :  { %v3725_v9 = vsel %vm3435_vm8, %v3724_v26, %v3718_v8 }
0x145b   :  { %v3747_v12 = vpop.permute.xlu1 %3746 }
0x145c   :  { %v3754_v54 = vsel %vm3435_vm8, %v3724_v26, %v3747_v12 }
0x145d   :  { %v3752_v10 = vpop.permute.xlu0 %3751 }
0x145e   :  { %v3755_v24 = vsel %vm3726_vm3, %v3754_v54, %v3752_v10 }
0x145f   :  { %v3757_v19 = vrot.slane %v3755_v24, 1 }
0x1465   :  { %v3722_v45 = vpop.permute.xlu0 %3721 }
0x1466   :  { %v3727_v30 = vsel %vm3726_vm3, %v3725_v9, %v3722_v45 }
0x1467   :  { %v3759_v53 = vsel %vm3660_vm14, %v3727_v30, %v3757_v19 }
0x1468   :  { %3760 = vst [vmem:[#allocation2] sm:$0x3] %v3759_v53 }
0x1469   :  { %3771 = dma.vmem_to_hbm [thread:$0]  %s3767_s1, 32, %s3769_s22, [#allocation3]  }
0x146a   :  { %4276 = dma.done.wait [#allocation3], 32  }
0x146b   :  { %4277 = vsyncadd [#allocation3], 4294967264 }
0x146c   :  { %3776 = vsyncpa [#allocation3], 1 }

</bundles_post_ra>
